<compile_context>
chip_gen: v7x
topology: tpu7x:2x2x1
jax: 0.10.0
libtpu: 0.0.40
codegen_flags: <defaults>
</compile_context>

<pallas_src>
import math
from functools import partial

import jax
import jax.numpy as jnp
from jax.experimental import pallas as pl
from jax.experimental.pallas import tpu as pltpu


def _full_spec(a):
    nd = a.ndim
    return pl.BlockSpec(a.shape, lambda *_: (0,) * nd)


def _make_kernel(geom, agg):
    """Build the fused forward kernel for a fixed (static) geometry."""
    layers = geom["layers"]   # [(h_in, w_in, c_in, h_out, w_out, c_out, kh, kw, sw), ...]
    L = len(layers)
    N = geom["N"]
    E = geom["E"]
    Hf, Wf, _Cf = layers[-1][3], layers[-1][4], layers[-1][5]

    def kernel(*refs):
        # ---- parse refs: inputs..., output, scratch... ----
        idx = 0
        x_ref = refs[idx]; idx += 1
        conv_w, conv_b = [], []
        for _ in range(L):
            conv_w.append(refs[idx]); conv_b.append(refs[idx + 1]); idx += 2
        wf1_ref, bf1_ref, wf2_ref, bf2_ref, wpj_ref, bpj_ref = refs[idx:idx + 6]
        idx += 6
        out_ref = refs[idx]; idx += 1
        patch_refs, act_refs = [], []
        for li in range(L):
            patch_refs.append(refs[idx]); idx += 1
            if li < L - 1:
                act_refs.append(refs[idx]); idx += 1

        # ---- conv stack: in-kernel im2col + one MXU dot per layer ----
        cur_ref = x_ref                      # (N*h_in*w_in, c_in) rows in (n, h, w) order
        last = None
        for li, (h_in, w_in, c_in, h_out, w_out, c_out, kh, kw, sw) in enumerate(layers):
            patch = patch_refs[li]
            for n in range(N):
                for ho in range(h_out):
                    base = (n * h_out + ho) * w_out
                    for i in range(kh):
                        rstart = (n * h_in + ho + i) * w_in
                        row = cur_ref[rstart:rstart + w_in, :]          # (w_in, c_in)
                        for j in range(kw):
                            if sw == 1:
                                sl = row[j:j + w_out, :]
                            else:
                                sl = jax.lax.slice(
                                    row, (j, 0), (j + sw * (w_out - 1) + 1, c_in), (sw, 1))
                            col = (i * kw + j) * c_in
                            patch[base:base + w_out, col:col + c_in] = sl
            a = jnp.dot(patch[...].astype(jnp.bfloat16), conv_w[li][...],
                        preferred_element_type=jnp.float32)
            a = jnp.maximum(a + conv_b[li][...], 0.0)                   # (N*h_out*w_out, c_out) f32
            if li < L - 1:
                act_refs[li][...] = a
                cur_ref = act_refs[li]
            else:
                last = a

        # ---- agg over H fused into the last conv epilogue, then fc1 per batch row ----
        h1_rows = []
        for n in range(N):
            blocks = [last[(n * Hf + ho) * Wf:(n * Hf + ho) * Wf + Wf, :]
                      for ho in range(Hf)]                              # each (Wf, Cf)
            p = blocks[0]
            if agg == "max":
                for blk in blocks[1:]:
                    p = jnp.maximum(p, blk)
            else:  # mean
                for blk in blocks[1:]:
                    p = p + blk
                p = p * (1.0 / Hf)
            # fc1: flatten (c-major torch order) realized as Wf small dots -> no reshape
            acc = jnp.zeros((1, E), jnp.float32)
            for wv in range(Wf):
                acc = acc + jnp.dot(p[wv:wv + 1, :].astype(jnp.bfloat16), wf1_ref[wv],
                                    preferred_element_type=jnp.float32)
            h1_rows.append(jnp.maximum(acc + bf1_ref[...], 0.0))        # (1, E)
        h1 = h1_rows[0] if N == 1 else jnp.concatenate(h1_rows, axis=0)  # (N, E)

        # ---- fc2 + project (batched) ----
        h2 = jnp.maximum(
            jnp.dot(h1.astype(jnp.bfloat16), wf2_ref[...],
                    preferred_element_type=jnp.float32) + bf2_ref[...], 0.0)
        out = jnp.dot(h2.astype(jnp.bfloat16), wpj_ref[...],
                      preferred_element_type=jnp.float32) + bpj_ref[...]
        out_ref[...] = out.astype(out_ref.dtype)

    return kernel


def basic_predictor_forward(params, x, *, stride=1, padding=0, agg="max"):
    """x: (N, Cin, H, W) float32; params in torch layouts. Returns (N, num_classes)."""
    N, C0, H0, W0 = (int(d) for d in x.shape)
    convs = params["conv"]
    kh, kw = int(convs[0][0].shape[2]), int(convs[0][0].shape[3])

    # torch padding=(0, p): pad W only; then NCHW -> rows (n, h, w) x channels (lanes)
    if padding:
        x = jnp.pad(x, ((0, 0), (0, 0), (0, 0), (padding, padding)))
    Wp = W0 + 2 * padding
    x2 = jnp.transpose(x, (0, 2, 3, 1)).reshape(N * H0 * Wp, C0).astype(jnp.float32)

    layers, inputs = [], [x2]
    h_in, w_in, c_in = H0, Wp, C0
    for (wt, bt) in convs:
        c_out = int(wt.shape[0])
        h_out = h_in - kh + 1                       # H stride is 1, H pad is 0
        w_out = (w_in - kw) // stride + 1
        layers.append((h_in, w_in, c_in, h_out, w_out, c_out, kh, kw, stride))
        # torch (Cout, Cin, KH, KW) -> kernel (KH*KW*Cin, Cout), feature order (i, j, ci)
        wk = jnp.transpose(wt, (2, 3, 1, 0)).reshape(kh * kw * c_in, c_out)
        inputs += [wk.astype(jnp.bfloat16), bt.reshape(1, c_out).astype(jnp.float32)]
        h_in, w_in, c_in = h_out, w_out, c_out
    Hf, Wf, Cf = h_in, w_in, c_in

    if agg is None and Hf == 1:
        agg = "max"      # identity pass-through == max when a single H row remains
    if agg not in ("max", "mean"):
        # TODO(synk): agg=None with H_out > 1 (pure NCHW flatten) not supported.
        raise NotImplementedError(f"agg={agg!r} with H_out={Hf} not supported")

    (w1t, b1t), (w2t, b2t) = params["fc"]
    wpj_t, bpj_t = params["project"]
    E = int(w1t.shape[0])
    NC = int(wpj_t.shape[0])
    # torch fc1 (E, Cf*Wf) with column index c*Wf + w  ->  kernel (Wf, Cf, E)
    wf1 = jnp.transpose(w1t.reshape(E, Cf, Wf), (2, 1, 0)).astype(jnp.bfloat16)
    inputs += [wf1, b1t.reshape(1, E).astype(jnp.float32),
               w2t.T.astype(jnp.bfloat16), b2t.reshape(1, E).astype(jnp.float32),
               wpj_t.T.astype(jnp.bfloat16), bpj_t.reshape(1, NC).astype(jnp.float32)]

    # VMEM scratch: im2col patch buffer per conv, activation buffer between convs
    scratch = []
    for li, (_, _, c_i, h_o, w_o, c_o, _, _, _) in enumerate(layers):
        scratch.append(pltpu.VMEM((N * h_o * w_o, kh * kw * c_i), jnp.float32))
        if li < len(layers) - 1:
            scratch.append(pltpu.VMEM((N * h_o * w_o, c_o), jnp.float32))

    kernel = _make_kernel(dict(N=N, layers=layers, E=E), agg)
    return pl.pallas_call(
        kernel,
        out_shape=jax.ShapeDtypeStruct((N, NC), jnp.float32),
        in_specs=[_full_spec(a) for a in inputs],
        out_specs=pl.BlockSpec((N, NC), lambda *_: (0, 0)),
        scratch_shapes=scratch,
    )(*inputs)


# ----------------------------------------------------------------------------
# Parameter init (torch-layout shapes, torch-default-style uniform bounds)
# ----------------------------------------------------------------------------
def init_params(key, *, in_channels, kernel, hidden_dims, width, num_classes,
                encoding_dim, padding, stride):
    kh, kw = kernel
    keys = jax.random.split(key, 2 * len(hidden_dims) + 6)
    ki = iter(range(len(keys)))
    params = {"conv": [], "fc": []}
    cin, out_w = in_channels, width
    for h_dim in hidden_dims:
        bound = 1.0 / math.sqrt(cin * kh * kw)
        w = jax.random.uniform(keys[next(ki)], (h_dim, cin, kh, kw),
                               jnp.float32, -bound, bound)
        b = jax.random.uniform(keys[next(ki)], (h_dim,), jnp.float32, -bound, bound)
        params["conv"].append((w, b))
        out_w = math.floor((out_w - kw + 2 * padding) / stride) + 1
        cin = h_dim
    for din, dout in [(hidden_dims[-1] * out_w, encoding_dim),
                      (encoding_dim, encoding_dim)]:
        bound = 1.0 / math.sqrt(din)
        w = jax.random.uniform(keys[next(ki)], (dout, din), jnp.float32, -bound, bound)
        b = jax.random.uniform(keys[next(ki)], (dout,), jnp.float32, -bound, bound)
        params["fc"].append((w, b))
    bound = 1.0 / math.sqrt(encoding_dim)
    w = jax.random.uniform(keys[next(ki)], (num_classes, encoding_dim),
                           jnp.float32, -bound, bound)
    b = jax.random.uniform(keys[next(ki)], (num_classes,), jnp.float32, -bound, bound)
    params["project"] = (w, b)
    return params


if __name__ == "__main__":
    cfg = dict(in_channels=4, kernel=(3, 3), hidden_dims=[8, 16], width=16,
               num_classes=32, encoding_dim=256, padding=0, stride=1)
    key = jax.random.PRNGKey(0)
    pkey, xkey = jax.random.split(key)
    params = init_params(pkey, **cfg)

    N, H = 2, 8
    x = jax.random.normal(xkey, (N, cfg["in_channels"], H, cfg["width"]), jnp.float32)

    fwd = jax.jit(partial(basic_predictor_forward, stride=cfg["stride"],
                          padding=cfg["padding"], agg="max"))
    out = jax.block_until_ready(fwd(params, x))
    assert out.shape == (N, cfg["num_classes"]), out.shape
    assert bool(jnp.all(jnp.isfinite(out)))
    print("KERNEL_OK")
</pallas_src>

<mosaic_0001>
module attributes {stable_mosaic.version = 11 : i64} {
  func.func @kernel(%arg0: memref<256x4xf32, #tpu.memory_space<vmem>>, %arg1: memref<36x8xbf16, #tpu.memory_space<vmem>>, %arg2: memref<1x8xf32, #tpu.memory_space<vmem>>, %arg3: memref<72x16xbf16, #tpu.memory_space<vmem>>, %arg4: memref<1x16xf32, #tpu.memory_space<vmem>>, %arg5: memref<12x16x256xbf16, #tpu.memory_space<vmem>>, %arg6: memref<1x256xf32, #tpu.memory_space<vmem>>, %arg7: memref<256x256xbf16, #tpu.memory_space<vmem>>, %arg8: memref<1x256xf32, #tpu.memory_space<vmem>>, %arg9: memref<256x32xbf16, #tpu.memory_space<vmem>>, %arg10: memref<1x32xf32, #tpu.memory_space<vmem>>, %arg11: memref<2x32xf32, #tpu.memory_space<vmem>>, %arg12: memref<168x36xf32, #tpu.memory_space<vmem>>, %arg13: memref<168x8xf32, #tpu.memory_space<vmem>>, %arg14: memref<96x72xf32, #tpu.memory_space<vmem>>) attributes {dimension_semantics = [], scalar_prefetch = 0 : i64, scratch_operands = 3 : i64, tpu.core_type = #tpu.core_type<tc>} {
    %c0 = arith.constant 0 : index
    %c0_0 = arith.constant 0 : index
    %0 = vector.load %arg0[%c0, %c0_0] : memref<256x4xf32, #tpu.memory_space<vmem>>, vector<16x4xf32>
    %1 = vector.extract_strided_slice %0 {offsets = [0, 0], sizes = [14, 4], strides = [1, 1]} : vector<16x4xf32> to vector<14x4xf32>
    %c0_1 = arith.constant 0 : index
    %c0_2 = arith.constant 0 : index
    %2 = vector.load %arg12[%c0_1, %c0_2] : memref<168x36xf32, #tpu.memory_space<vmem>>, vector<14x4xf32>
    tpu.vector_store %arg12[%c0_1, %c0_2], %1 {strides = array<i32>} : memref<168x36xf32, #tpu.memory_space<vmem>>, vector<14x4xf32>,
    %3 = vector.extract_strided_slice %0 {offsets = [1, 0], sizes = [14, 4], strides = [1, 1]} : vector<16x4xf32> to vector<14x4xf32>
    %c0_3 = arith.constant 0 : index
    %c4 = arith.constant 4 : index
    %4 = vector.load %arg12[%c0_3, %c4] : memref<168x36xf32, #tpu.memory_space<vmem>>, vector<14x4xf32>
    tpu.vector_store %arg12[%c0_3, %c4], %3 {strides = array<i32>} : memref<168x36xf32, #tpu.memory_space<vmem>>, vector<14x4xf32>,
    %5 = vector.extract_strided_slice %0 {offsets = [2, 0], sizes = [14, 4], strides = [1, 1]} : vector<16x4xf32> to vector<14x4xf32>
    %c0_4 = arith.constant 0 : index
    %c8 = arith.constant 8 : index
    %6 = vector.load %arg12[%c0_4, %c8] : memref<168x36xf32, #tpu.memory_space<vmem>>, vector<14x4xf32>
    tpu.vector_store %arg12[%c0_4, %c8], %5 {strides = array<i32>} : memref<168x36xf32, #tpu.memory_space<vmem>>, vector<14x4xf32>,
    %c16 = arith.constant 16 : index
    %c0_5 = arith.constant 0 : index
    %7 = vector.load %arg0[%c16, %c0_5] : memref<256x4xf32, #tpu.memory_space<vmem>>, vector<16x4xf32>
    %8 = vector.extract_strided_slice %7 {offsets = [0, 0], sizes = [14, 4], strides = [1, 1]} : vector<16x4xf32> to vector<14x4xf32>
    %c0_6 = arith.constant 0 : index
    %c12 = arith.constant 12 : index
    %9 = vector.load %arg12[%c0_6, %c12] : memref<168x36xf32, #tpu.memory_space<vmem>>, vector<14x4xf32>
    tpu.vector_store %arg12[%c0_6, %c12], %8 {strides = array<i32>} : memref<168x36xf32, #tpu.memory_space<vmem>>, vector<14x4xf32>,
    %10 = vector.extract_strided_slice %7 {offsets = [1, 0], sizes = [14, 4], strides = [1, 1]} : vector<16x4xf32> to vector<14x4xf32>
    %c0_7 = arith.constant 0 : index
    %c16_8 = arith.constant 16 : index
    %11 = vector.load %arg12[%c0_7, %c16_8] : memref<168x36xf32, #tpu.memory_space<vmem>>, vector<14x4xf32>
    tpu.vector_store %arg12[%c0_7, %c16_8], %10 {strides = array<i32>} : memref<168x36xf32, #tpu.memory_space<vmem>>, vector<14x4xf32>,
    %12 = vector.extract_strided_slice %7 {offsets = [2, 0], sizes = [14, 4], strides = [1, 1]} : vector<16x4xf32> to vector<14x4xf32>
    %c0_9 = arith.constant 0 : index
    %c20 = arith.constant 20 : index
    %13 = vector.load %arg12[%c0_9, %c20] : memref<168x36xf32, #tpu.memory_space<vmem>>, vector<14x4xf32>
    tpu.vector_store %arg12[%c0_9, %c20], %12 {strides = array<i32>} : memref<168x36xf32, #tpu.memory_space<vmem>>, vector<14x4xf32>,
    %c32 = arith.constant 32 : index
    %c0_10 = arith.constant 0 : index
    %14 = vector.load %arg0[%c32, %c0_10] : memref<256x4xf32, #tpu.memory_space<vmem>>, vector<16x4xf32>
    %15 = vector.extract_strided_slice %14 {offsets = [0, 0], sizes = [14, 4], strides = [1, 1]} : vector<16x4xf32> to vector<14x4xf32>
    %c0_11 = arith.constant 0 : index
    %c24 = arith.constant 24 : index
    %16 = vector.load %arg12[%c0_11, %c24] : memref<168x36xf32, #tpu.memory_space<vmem>>, vector<14x4xf32>
    tpu.vector_store %arg12[%c0_11, %c24], %15 {strides = array<i32>} : memref<168x36xf32, #tpu.memory_space<vmem>>, vector<14x4xf32>,
    %17 = vector.extract_strided_slice %14 {offsets = [1, 0], sizes = [14, 4], strides = [1, 1]} : vector<16x4xf32> to vector<14x4xf32>
    %c0_12 = arith.constant 0 : index
    %c28 = arith.constant 28 : index
    %18 = vector.load %arg12[%c0_12, %c28] : memref<168x36xf32, #tpu.memory_space<vmem>>, vector<14x4xf32>
    tpu.vector_store %arg12[%c0_12, %c28], %17 {strides = array<i32>} : memref<168x36xf32, #tpu.memory_space<vmem>>, vector<14x4xf32>,
    %19 = vector.extract_strided_slice %14 {offsets = [2, 0], sizes = [14, 4], strides = [1, 1]} : vector<16x4xf32> to vector<14x4xf32>
    %c0_13 = arith.constant 0 : index
    %c32_14 = arith.constant 32 : index
    %20 = vector.load %arg12[%c0_13, %c32_14] : memref<168x36xf32, #tpu.memory_space<vmem>>, vector<14x4xf32>
    tpu.vector_store %arg12[%c0_13, %c32_14], %19 {strides = array<i32>} : memref<168x36xf32, #tpu.memory_space<vmem>>, vector<14x4xf32>,
    %c16_15 = arith.constant 16 : index
    %c0_16 = arith.constant 0 : index
    %21 = vector.load %arg0[%c16_15, %c0_16] : memref<256x4xf32, #tpu.memory_space<vmem>>, vector<16x4xf32>
    %22 = vector.extract_strided_slice %21 {offsets = [0, 0], sizes = [14, 4], strides = [1, 1]} : vector<16x4xf32> to vector<14x4xf32>
    %c14 = arith.constant 14 : index
    %c0_17 = arith.constant 0 : index
    %23 = vector.load %arg12[%c14, %c0_17] : memref<168x36xf32, #tpu.memory_space<vmem>>, vector<14x4xf32>
    tpu.vector_store %arg12[%c14, %c0_17], %22 {strides = array<i32>} : memref<168x36xf32, #tpu.memory_space<vmem>>, vector<14x4xf32>,
    %24 = vector.extract_strided_slice %21 {offsets = [1, 0], sizes = [14, 4], strides = [1, 1]} : vector<16x4xf32> to vector<14x4xf32>
    %c14_18 = arith.constant 14 : index
    %c4_19 = arith.constant 4 : index
    %25 = vector.load %arg12[%c14_18, %c4_19] : memref<168x36xf32, #tpu.memory_space<vmem>>, vector<14x4xf32>
    tpu.vector_store %arg12[%c14_18, %c4_19], %24 {strides = array<i32>} : memref<168x36xf32, #tpu.memory_space<vmem>>, vector<14x4xf32>,
    %26 = vector.extract_strided_slice %21 {offsets = [2, 0], sizes = [14, 4], strides = [1, 1]} : vector<16x4xf32> to vector<14x4xf32>
    %c14_20 = arith.constant 14 : index
    %c8_21 = arith.constant 8 : index
    %27 = vector.load %arg12[%c14_20, %c8_21] : memref<168x36xf32, #tpu.memory_space<vmem>>, vector<14x4xf32>
    tpu.vector_store %arg12[%c14_20, %c8_21], %26 {strides = array<i32>} : memref<168x36xf32, #tpu.memory_space<vmem>>, vector<14x4xf32>,
    %c32_22 = arith.constant 32 : index
    %c0_23 = arith.constant 0 : index
    %28 = vector.load %arg0[%c32_22, %c0_23] : memref<256x4xf32, #tpu.memory_space<vmem>>, vector<16x4xf32>
    %29 = vector.extract_strided_slice %28 {offsets = [0, 0], sizes = [14, 4], strides = [1, 1]} : vector<16x4xf32> to vector<14x4xf32>
    %c14_24 = arith.constant 14 : index
    %c12_25 = arith.constant 12 : index
    %30 = vector.load %arg12[%c14_24, %c12_25] : memref<168x36xf32, #tpu.memory_space<vmem>>, vector<14x4xf32>
    tpu.vector_store %arg12[%c14_24, %c12_25], %29 {strides = array<i32>} : memref<168x36xf32, #tpu.memory_space<vmem>>, vector<14x4xf32>,
    %31 = vector.extract_strided_slice %28 {offsets = [1, 0], sizes = [14, 4], strides = [1, 1]} : vector<16x4xf32> to vector<14x4xf32>
    %c14_26 = arith.constant 14 : index
    %c16_27 = arith.constant 16 : index
    %32 = vector.load %arg12[%c14_26, %c16_27] : memref<168x36xf32, #tpu.memory_space<vmem>>, vector<14x4xf32>
    tpu.vector_store %arg12[%c14_26, %c16_27], %31 {strides = array<i32>} : memref<168x36xf32, #tpu.memory_space<vmem>>, vector<14x4xf32>,
    %33 = vector.extract_strided_slice %28 {offsets = [2, 0], sizes = [14, 4], strides = [1, 1]} : vector<16x4xf32> to vector<14x4xf32>
    %c14_28 = arith.constant 14 : index
    %c20_29 = arith.constant 20 : index
    %34 = vector.load %arg12[%c14_28, %c20_29] : memref<168x36xf32, #tpu.memory_space<vmem>>, vector<14x4xf32>
    tpu.vector_store %arg12[%c14_28, %c20_29], %33 {strides = array<i32>} : memref<168x36xf32, #tpu.memory_space<vmem>>, vector<14x4xf32>,
    %c48 = arith.constant 48 : index
    %c0_30 = arith.constant 0 : index
    %35 = vector.load %arg0[%c48, %c0_30] : memref<256x4xf32, #tpu.memory_space<vmem>>, vector<16x4xf32>
    %36 = vector.extract_strided_slice %35 {offsets = [0, 0], sizes = [14, 4], strides = [1, 1]} : vector<16x4xf32> to vector<14x4xf32>
    %c14_31 = arith.constant 14 : index
    %c24_32 = arith.constant 24 : index
    %37 = vector.load %arg12[%c14_31, %c24_32] : memref<168x36xf32, #tpu.memory_space<vmem>>, vector<14x4xf32>
    tpu.vector_store %arg12[%c14_31, %c24_32], %36 {strides = array<i32>} : memref<168x36xf32, #tpu.memory_space<vmem>>, vector<14x4xf32>,
    %38 = vector.extract_strided_slice %35 {offsets = [1, 0], sizes = [14, 4], strides = [1, 1]} : vector<16x4xf32> to vector<14x4xf32>
    %c14_33 = arith.constant 14 : index
    %c28_34 = arith.constant 28 : index
    %39 = vector.load %arg12[%c14_33, %c28_34] : memref<168x36xf32, #tpu.memory_space<vmem>>, vector<14x4xf32>
    tpu.vector_store %arg12[%c14_33, %c28_34], %38 {strides = array<i32>} : memref<168x36xf32, #tpu.memory_space<vmem>>, vector<14x4xf32>,
    %40 = vector.extract_strided_slice %35 {offsets = [2, 0], sizes = [14, 4], strides = [1, 1]} : vector<16x4xf32> to vector<14x4xf32>
    %c14_35 = arith.constant 14 : index
    %c32_36 = arith.constant 32 : index
    %41 = vector.load %arg12[%c14_35, %c32_36] : memref<168x36xf32, #tpu.memory_space<vmem>>, vector<14x4xf32>
    tpu.vector_store %arg12[%c14_35, %c32_36], %40 {strides = array<i32>} : memref<168x36xf32, #tpu.memory_space<vmem>>, vector<14x4xf32>,
    %c32_37 = arith.constant 32 : index
    %c0_38 = arith.constant 0 : index
    %42 = vector.load %arg0[%c32_37, %c0_38] : memref<256x4xf32, #tpu.memory_space<vmem>>, vector<16x4xf32>
    %43 = vector.extract_strided_slice %42 {offsets = [0, 0], sizes = [14, 4], strides = [1, 1]} : vector<16x4xf32> to vector<14x4xf32>
    %c28_39 = arith.constant 28 : index
    %c0_40 = arith.constant 0 : index
    %44 = vector.load %arg12[%c28_39, %c0_40] : memref<168x36xf32, #tpu.memory_space<vmem>>, vector<14x4xf32>
    tpu.vector_store %arg12[%c28_39, %c0_40], %43 {strides = array<i32>} : memref<168x36xf32, #tpu.memory_space<vmem>>, vector<14x4xf32>,
    %45 = vector.extract_strided_slice %42 {offsets = [1, 0], sizes = [14, 4], strides = [1, 1]} : vector<16x4xf32> to vector<14x4xf32>
    %c28_41 = arith.constant 28 : index
    %c4_42 = arith.constant 4 : index
    %46 = vector.load %arg12[%c28_41, %c4_42] : memref<168x36xf32, #tpu.memory_space<vmem>>, vector<14x4xf32>
    tpu.vector_store %arg12[%c28_41, %c4_42], %45 {strides = array<i32>} : memref<168x36xf32, #tpu.memory_space<vmem>>, vector<14x4xf32>,
    %47 = vector.extract_strided_slice %42 {offsets = [2, 0], sizes = [14, 4], strides = [1, 1]} : vector<16x4xf32> to vector<14x4xf32>
    %c28_43 = arith.constant 28 : index
    %c8_44 = arith.constant 8 : index
    %48 = vector.load %arg12[%c28_43, %c8_44] : memref<168x36xf32, #tpu.memory_space<vmem>>, vector<14x4xf32>
    tpu.vector_store %arg12[%c28_43, %c8_44], %47 {strides = array<i32>} : memref<168x36xf32, #tpu.memory_space<vmem>>, vector<14x4xf32>,
    %c48_45 = arith.constant 48 : index
    %c0_46 = arith.constant 0 : index
    %49 = vector.load %arg0[%c48_45, %c0_46] : memref<256x4xf32, #tpu.memory_space<vmem>>, vector<16x4xf32>
    %50 = vector.extract_strided_slice %49 {offsets = [0, 0], sizes = [14, 4], strides = [1, 1]} : vector<16x4xf32> to vector<14x4xf32>
    %c28_47 = arith.constant 28 : index
    %c12_48 = arith.constant 12 : index
    %51 = vector.load %arg12[%c28_47, %c12_48] : memref<168x36xf32, #tpu.memory_space<vmem>>, vector<14x4xf32>
    tpu.vector_store %arg12[%c28_47, %c12_48], %50 {strides = array<i32>} : memref<168x36xf32, #tpu.memory_space<vmem>>, vector<14x4xf32>,
    %52 = vector.extract_strided_slice %49 {offsets = [1, 0], sizes = [14, 4], strides = [1, 1]} : vector<16x4xf32> to vector<14x4xf32>
    %c28_49 = arith.constant 28 : index
    %c16_50 = arith.constant 16 : index
    %53 = vector.load %arg12[%c28_49, %c16_50] : memref<168x36xf32, #tpu.memory_space<vmem>>, vector<14x4xf32>
    tpu.vector_store %arg12[%c28_49, %c16_50], %52 {strides = array<i32>} : memref<168x36xf32, #tpu.memory_space<vmem>>, vector<14x4xf32>,
    %54 = vector.extract_strided_slice %49 {offsets = [2, 0], sizes = [14, 4], strides = [1, 1]} : vector<16x4xf32> to vector<14x4xf32>
    %c28_51 = arith.constant 28 : index
    %c20_52 = arith.constant 20 : index
    %55 = vector.load %arg12[%c28_51, %c20_52] : memref<168x36xf32, #tpu.memory_space<vmem>>, vector<14x4xf32>
    tpu.vector_store %arg12[%c28_51, %c20_52], %54 {strides = array<i32>} : memref<168x36xf32, #tpu.memory_space<vmem>>, vector<14x4xf32>,
    %c64 = arith.constant 64 : index
    %c0_53 = arith.constant 0 : index
    %56 = vector.load %arg0[%c64, %c0_53] : memref<256x4xf32, #tpu.memory_space<vmem>>, vector<16x4xf32>
    %57 = vector.extract_strided_slice %56 {offsets = [0, 0], sizes = [14, 4], strides = [1, 1]} : vector<16x4xf32> to vector<14x4xf32>
    %c28_54 = arith.constant 28 : index
    %c24_55 = arith.constant 24 : index
    %58 = vector.load %arg12[%c28_54, %c24_55] : memref<168x36xf32, #tpu.memory_space<vmem>>, vector<14x4xf32>
    tpu.vector_store %arg12[%c28_54, %c24_55], %57 {strides = array<i32>} : memref<168x36xf32, #tpu.memory_space<vmem>>, vector<14x4xf32>,
    %59 = vector.extract_strided_slice %56 {offsets = [1, 0], sizes = [14, 4], strides = [1, 1]} : vector<16x4xf32> to vector<14x4xf32>
    %c28_56 = arith.constant 28 : index
    %c28_57 = arith.constant 28 : index
    %60 = vector.load %arg12[%c28_56, %c28_57] : memref<168x36xf32, #tpu.memory_space<vmem>>, vector<14x4xf32>
    tpu.vector_store %arg12[%c28_56, %c28_57], %59 {strides = array<i32>} : memref<168x36xf32, #tpu.memory_space<vmem>>, vector<14x4xf32>,
    %61 = vector.extract_strided_slice %56 {offsets = [2, 0], sizes = [14, 4], strides = [1, 1]} : vector<16x4xf32> to vector<14x4xf32>
    %c28_58 = arith.constant 28 : index
    %c32_59 = arith.constant 32 : index
    %62 = vector.load %arg12[%c28_58, %c32_59] : memref<168x36xf32, #tpu.memory_space<vmem>>, vector<14x4xf32>
    tpu.vector_store %arg12[%c28_58, %c32_59], %61 {strides = array<i32>} : memref<168x36xf32, #tpu.memory_space<vmem>>, vector<14x4xf32>,
    %c48_60 = arith.constant 48 : index
    %c0_61 = arith.constant 0 : index
    %63 = vector.load %arg0[%c48_60, %c0_61] : memref<256x4xf32, #tpu.memory_space<vmem>>, vector<16x4xf32>
    %64 = vector.extract_strided_slice %63 {offsets = [0, 0], sizes = [14, 4], strides = [1, 1]} : vector<16x4xf32> to vector<14x4xf32>
    %c42 = arith.constant 42 : index
    %c0_62 = arith.constant 0 : index
    %65 = vector.load %arg12[%c42, %c0_62] : memref<168x36xf32, #tpu.memory_space<vmem>>, vector<14x4xf32>
    tpu.vector_store %arg12[%c42, %c0_62], %64 {strides = array<i32>} : memref<168x36xf32, #tpu.memory_space<vmem>>, vector<14x4xf32>,
    %66 = vector.extract_strided_slice %63 {offsets = [1, 0], sizes = [14, 4], strides = [1, 1]} : vector<16x4xf32> to vector<14x4xf32>
    %c42_63 = arith.constant 42 : index
    %c4_64 = arith.constant 4 : index
    %67 = vector.load %arg12[%c42_63, %c4_64] : memref<168x36xf32, #tpu.memory_space<vmem>>, vector<14x4xf32>
    tpu.vector_store %arg12[%c42_63, %c4_64], %66 {strides = array<i32>} : memref<168x36xf32, #tpu.memory_space<vmem>>, vector<14x4xf32>,
    %68 = vector.extract_strided_slice %63 {offsets = [2, 0], sizes = [14, 4], strides = [1, 1]} : vector<16x4xf32> to vector<14x4xf32>
    %c42_65 = arith.constant 42 : index
    %c8_66 = arith.constant 8 : index
    %69 = vector.load %arg12[%c42_65, %c8_66] : memref<168x36xf32, #tpu.memory_space<vmem>>, vector<14x4xf32>
    tpu.vector_store %arg12[%c42_65, %c8_66], %68 {strides = array<i32>} : memref<168x36xf32, #tpu.memory_space<vmem>>, vector<14x4xf32>,
    %c64_67 = arith.constant 64 : index
    %c0_68 = arith.constant 0 : index
    %70 = vector.load %arg0[%c64_67, %c0_68] : memref<256x4xf32, #tpu.memory_space<vmem>>, vector<16x4xf32>
    %71 = vector.extract_strided_slice %70 {offsets = [0, 0], sizes = [14, 4], strides = [1, 1]} : vector<16x4xf32> to vector<14x4xf32>
    %c42_69 = arith.constant 42 : index
    %c12_70 = arith.constant 12 : index
    %72 = vector.load %arg12[%c42_69, %c12_70] : memref<168x36xf32, #tpu.memory_space<vmem>>, vector<14x4xf32>
    tpu.vector_store %arg12[%c42_69, %c12_70], %71 {strides = array<i32>} : memref<168x36xf32, #tpu.memory_space<vmem>>, vector<14x4xf32>,
    %73 = vector.extract_strided_slice %70 {offsets = [1, 0], sizes = [14, 4], strides = [1, 1]} : vector<16x4xf32> to vector<14x4xf32>
    %c42_71 = arith.constant 42 : index
    %c16_72 = arith.constant 16 : index
    %74 = vector.load %arg12[%c42_71, %c16_72] : memref<168x36xf32, #tpu.memory_space<vmem>>, vector<14x4xf32>
    tpu.vector_store %arg12[%c42_71, %c16_72], %73 {strides = array<i32>} : memref<168x36xf32, #tpu.memory_space<vmem>>, vector<14x4xf32>,
    %75 = vector.extract_strided_slice %70 {offsets = [2, 0], sizes = [14, 4], strides = [1, 1]} : vector<16x4xf32> to vector<14x4xf32>
    %c42_73 = arith.constant 42 : index
    %c20_74 = arith.constant 20 : index
    %76 = vector.load %arg12[%c42_73, %c20_74] : memref<168x36xf32, #tpu.memory_space<vmem>>, vector<14x4xf32>
    tpu.vector_store %arg12[%c42_73, %c20_74], %75 {strides = array<i32>} : memref<168x36xf32, #tpu.memory_space<vmem>>, vector<14x4xf32>,
    %c80 = arith.constant 80 : index
    %c0_75 = arith.constant 0 : index
    %77 = vector.load %arg0[%c80, %c0_75] : memref<256x4xf32, #tpu.memory_space<vmem>>, vector<16x4xf32>
    %78 = vector.extract_strided_slice %77 {offsets = [0, 0], sizes = [14, 4], strides = [1, 1]} : vector<16x4xf32> to vector<14x4xf32>
    %c42_76 = arith.constant 42 : index
    %c24_77 = arith.constant 24 : index
    %79 = vector.load %arg12[%c42_76, %c24_77] : memref<168x36xf32, #tpu.memory_space<vmem>>, vector<14x4xf32>
    tpu.vector_store %arg12[%c42_76, %c24_77], %78 {strides = array<i32>} : memref<168x36xf32, #tpu.memory_space<vmem>>, vector<14x4xf32>,
    %80 = vector.extract_strided_slice %77 {offsets = [1, 0], sizes = [14, 4], strides = [1, 1]} : vector<16x4xf32> to vector<14x4xf32>
    %c42_78 = arith.constant 42 : index
    %c28_79 = arith.constant 28 : index
    %81 = vector.load %arg12[%c42_78, %c28_79] : memref<168x36xf32, #tpu.memory_space<vmem>>, vector<14x4xf32>
    tpu.vector_store %arg12[%c42_78, %c28_79], %80 {strides = array<i32>} : memref<168x36xf32, #tpu.memory_space<vmem>>, vector<14x4xf32>,
    %82 = vector.extract_strided_slice %77 {offsets = [2, 0], sizes = [14, 4], strides = [1, 1]} : vector<16x4xf32> to vector<14x4xf32>
    %c42_80 = arith.constant 42 : index
    %c32_81 = arith.constant 32 : index
    %83 = vector.load %arg12[%c42_80, %c32_81] : memref<168x36xf32, #tpu.memory_space<vmem>>, vector<14x4xf32>
    tpu.vector_store %arg12[%c42_80, %c32_81], %82 {strides = array<i32>} : memref<168x36xf32, #tpu.memory_space<vmem>>, vector<14x4xf32>,
    %c64_82 = arith.constant 64 : index
    %c0_83 = arith.constant 0 : index
    %84 = vector.load %arg0[%c64_82, %c0_83] : memref<256x4xf32, #tpu.memory_space<vmem>>, vector<16x4xf32>
    %85 = vector.extract_strided_slice %84 {offsets = [0, 0], sizes = [14, 4], strides = [1, 1]} : vector<16x4xf32> to vector<14x4xf32>
    %c56 = arith.constant 56 : index
    %c0_84 = arith.constant 0 : index
    %86 = vector.load %arg12[%c56, %c0_84] : memref<168x36xf32, #tpu.memory_space<vmem>>, vector<14x4xf32>
    tpu.vector_store %arg12[%c56, %c0_84], %85 {strides = array<i32>} : memref<168x36xf32, #tpu.memory_space<vmem>>, vector<14x4xf32>,
    %87 = vector.extract_strided_slice %84 {offsets = [1, 0], sizes = [14, 4], strides = [1, 1]} : vector<16x4xf32> to vector<14x4xf32>
    %c56_85 = arith.constant 56 : index
    %c4_86 = arith.constant 4 : index
    %88 = vector.load %arg12[%c56_85, %c4_86] : memref<168x36xf32, #tpu.memory_space<vmem>>, vector<14x4xf32>
    tpu.vector_store %arg12[%c56_85, %c4_86], %87 {strides = array<i32>} : memref<168x36xf32, #tpu.memory_space<vmem>>, vector<14x4xf32>,
    %89 = vector.extract_strided_slice %84 {offsets = [2, 0], sizes = [14, 4], strides = [1, 1]} : vector<16x4xf32> to vector<14x4xf32>
    %c56_87 = arith.constant 56 : index
    %c8_88 = arith.constant 8 : index
    %90 = vector.load %arg12[%c56_87, %c8_88] : memref<168x36xf32, #tpu.memory_space<vmem>>, vector<14x4xf32>
    tpu.vector_store %arg12[%c56_87, %c8_88], %89 {strides = array<i32>} : memref<168x36xf32, #tpu.memory_space<vmem>>, vector<14x4xf32>,
    %c80_89 = arith.constant 80 : index
    %c0_90 = arith.constant 0 : index
    %91 = vector.load %arg0[%c80_89, %c0_90] : memref<256x4xf32, #tpu.memory_space<vmem>>, vector<16x4xf32>
    %92 = vector.extract_strided_slice %91 {offsets = [0, 0], sizes = [14, 4], strides = [1, 1]} : vector<16x4xf32> to vector<14x4xf32>
    %c56_91 = arith.constant 56 : index
    %c12_92 = arith.constant 12 : index
    %93 = vector.load %arg12[%c56_91, %c12_92] : memref<168x36xf32, #tpu.memory_space<vmem>>, vector<14x4xf32>
    tpu.vector_store %arg12[%c56_91, %c12_92], %92 {strides = array<i32>} : memref<168x36xf32, #tpu.memory_space<vmem>>, vector<14x4xf32>,
    %94 = vector.extract_strided_slice %91 {offsets = [1, 0], sizes = [14, 4], strides = [1, 1]} : vector<16x4xf32> to vector<14x4xf32>
    %c56_93 = arith.constant 56 : index
    %c16_94 = arith.constant 16 : index
    %95 = vector.load %arg12[%c56_93, %c16_94] : memref<168x36xf32, #tpu.memory_space<vmem>>, vector<14x4xf32>
    tpu.vector_store %arg12[%c56_93, %c16_94], %94 {strides = array<i32>} : memref<168x36xf32, #tpu.memory_space<vmem>>, vector<14x4xf32>,
    %96 = vector.extract_strided_slice %91 {offsets = [2, 0], sizes = [14, 4], strides = [1, 1]} : vector<16x4xf32> to vector<14x4xf32>
    %c56_95 = arith.constant 56 : index
    %c20_96 = arith.constant 20 : index
    %97 = vector.load %arg12[%c56_95, %c20_96] : memref<168x36xf32, #tpu.memory_space<vmem>>, vector<14x4xf32>
    tpu.vector_store %arg12[%c56_95, %c20_96], %96 {strides = array<i32>} : memref<168x36xf32, #tpu.memory_space<vmem>>, vector<14x4xf32>,
    %c96 = arith.constant 96 : index
    %c0_97 = arith.constant 0 : index
    %98 = vector.load %arg0[%c96, %c0_97] : memref<256x4xf32, #tpu.memory_space<vmem>>, vector<16x4xf32>
    %99 = vector.extract_strided_slice %98 {offsets = [0, 0], sizes = [14, 4], strides = [1, 1]} : vector<16x4xf32> to vector<14x4xf32>
    %c56_98 = arith.constant 56 : index
    %c24_99 = arith.constant 24 : index
    %100 = vector.load %arg12[%c56_98, %c24_99] : memref<168x36xf32, #tpu.memory_space<vmem>>, vector<14x4xf32>
    tpu.vector_store %arg12[%c56_98, %c24_99], %99 {strides = array<i32>} : memref<168x36xf32, #tpu.memory_space<vmem>>, vector<14x4xf32>,
    %101 = vector.extract_strided_slice %98 {offsets = [1, 0], sizes = [14, 4], strides = [1, 1]} : vector<16x4xf32> to vector<14x4xf32>
    %c56_100 = arith.constant 56 : index
    %c28_101 = arith.constant 28 : index
    %102 = vector.load %arg12[%c56_100, %c28_101] : memref<168x36xf32, #tpu.memory_space<vmem>>, vector<14x4xf32>
    tpu.vector_store %arg12[%c56_100, %c28_101], %101 {strides = array<i32>} : memref<168x36xf32, #tpu.memory_space<vmem>>, vector<14x4xf32>,
    %103 = vector.extract_strided_slice %98 {offsets = [2, 0], sizes = [14, 4], strides = [1, 1]} : vector<16x4xf32> to vector<14x4xf32>
    %c56_102 = arith.constant 56 : index
    %c32_103 = arith.constant 32 : index
    %104 = vector.load %arg12[%c56_102, %c32_103] : memref<168x36xf32, #tpu.memory_space<vmem>>, vector<14x4xf32>
    tpu.vector_store %arg12[%c56_102, %c32_103], %103 {strides = array<i32>} : memref<168x36xf32, #tpu.memory_space<vmem>>, vector<14x4xf32>,
    %c80_104 = arith.constant 80 : index
    %c0_105 = arith.constant 0 : index
    %105 = vector.load %arg0[%c80_104, %c0_105] : memref<256x4xf32, #tpu.memory_space<vmem>>, vector<16x4xf32>
    %106 = vector.extract_strided_slice %105 {offsets = [0, 0], sizes = [14, 4], strides = [1, 1]} : vector<16x4xf32> to vector<14x4xf32>
    %c70 = arith.constant 70 : index
    %c0_106 = arith.constant 0 : index
    %107 = vector.load %arg12[%c70, %c0_106] : memref<168x36xf32, #tpu.memory_space<vmem>>, vector<14x4xf32>
    tpu.vector_store %arg12[%c70, %c0_106], %106 {strides = array<i32>} : memref<168x36xf32, #tpu.memory_space<vmem>>, vector<14x4xf32>,
    %108 = vector.extract_strided_slice %105 {offsets = [1, 0], sizes = [14, 4], strides = [1, 1]} : vector<16x4xf32> to vector<14x4xf32>
    %c70_107 = arith.constant 70 : index
    %c4_108 = arith.constant 4 : index
    %109 = vector.load %arg12[%c70_107, %c4_108] : memref<168x36xf32, #tpu.memory_space<vmem>>, vector<14x4xf32>
    tpu.vector_store %arg12[%c70_107, %c4_108], %108 {strides = array<i32>} : memref<168x36xf32, #tpu.memory_space<vmem>>, vector<14x4xf32>,
    %110 = vector.extract_strided_slice %105 {offsets = [2, 0], sizes = [14, 4], strides = [1, 1]} : vector<16x4xf32> to vector<14x4xf32>
    %c70_109 = arith.constant 70 : index
    %c8_110 = arith.constant 8 : index
    %111 = vector.load %arg12[%c70_109, %c8_110] : memref<168x36xf32, #tpu.memory_space<vmem>>, vector<14x4xf32>
    tpu.vector_store %arg12[%c70_109, %c8_110], %110 {strides = array<i32>} : memref<168x36xf32, #tpu.memory_space<vmem>>, vector<14x4xf32>,
    %c96_111 = arith.constant 96 : index
    %c0_112 = arith.constant 0 : index
    %112 = vector.load %arg0[%c96_111, %c0_112] : memref<256x4xf32, #tpu.memory_space<vmem>>, vector<16x4xf32>
    %113 = vector.extract_strided_slice %112 {offsets = [0, 0], sizes = [14, 4], strides = [1, 1]} : vector<16x4xf32> to vector<14x4xf32>
    %c70_113 = arith.constant 70 : index
    %c12_114 = arith.constant 12 : index
    %114 = vector.load %arg12[%c70_113, %c12_114] : memref<168x36xf32, #tpu.memory_space<vmem>>, vector<14x4xf32>
    tpu.vector_store %arg12[%c70_113, %c12_114], %113 {strides = array<i32>} : memref<168x36xf32, #tpu.memory_space<vmem>>, vector<14x4xf32>,
    %115 = vector.extract_strided_slice %112 {offsets = [1, 0], sizes = [14, 4], strides = [1, 1]} : vector<16x4xf32> to vector<14x4xf32>
    %c70_115 = arith.constant 70 : index
    %c16_116 = arith.constant 16 : index
    %116 = vector.load %arg12[%c70_115, %c16_116] : memref<168x36xf32, #tpu.memory_space<vmem>>, vector<14x4xf32>
    tpu.vector_store %arg12[%c70_115, %c16_116], %115 {strides = array<i32>} : memref<168x36xf32, #tpu.memory_space<vmem>>, vector<14x4xf32>,
    %117 = vector.extract_strided_slice %112 {offsets = [2, 0], sizes = [14, 4], strides = [1, 1]} : vector<16x4xf32> to vector<14x4xf32>
    %c70_117 = arith.constant 70 : index
    %c20_118 = arith.constant 20 : index
    %118 = vector.load %arg12[%c70_117, %c20_118] : memref<168x36xf32, #tpu.memory_space<vmem>>, vector<14x4xf32>
    tpu.vector_store %arg12[%c70_117, %c20_118], %117 {strides = array<i32>} : memref<168x36xf32, #tpu.memory_space<vmem>>, vector<14x4xf32>,
    %c112 = arith.constant 112 : index
    %c0_119 = arith.constant 0 : index
    %119 = vector.load %arg0[%c112, %c0_119] : memref<256x4xf32, #tpu.memory_space<vmem>>, vector<16x4xf32>
    %120 = vector.extract_strided_slice %119 {offsets = [0, 0], sizes = [14, 4], strides = [1, 1]} : vector<16x4xf32> to vector<14x4xf32>
    %c70_120 = arith.constant 70 : index
    %c24_121 = arith.constant 24 : index
    %121 = vector.load %arg12[%c70_120, %c24_121] : memref<168x36xf32, #tpu.memory_space<vmem>>, vector<14x4xf32>
    tpu.vector_store %arg12[%c70_120, %c24_121], %120 {strides = array<i32>} : memref<168x36xf32, #tpu.memory_space<vmem>>, vector<14x4xf32>,
    %122 = vector.extract_strided_slice %119 {offsets = [1, 0], sizes = [14, 4], strides = [1, 1]} : vector<16x4xf32> to vector<14x4xf32>
    %c70_122 = arith.constant 70 : index
    %c28_123 = arith.constant 28 : index
    %123 = vector.load %arg12[%c70_122, %c28_123] : memref<168x36xf32, #tpu.memory_space<vmem>>, vector<14x4xf32>
    tpu.vector_store %arg12[%c70_122, %c28_123], %122 {strides = array<i32>} : memref<168x36xf32, #tpu.memory_space<vmem>>, vector<14x4xf32>,
    %124 = vector.extract_strided_slice %119 {offsets = [2, 0], sizes = [14, 4], strides = [1, 1]} : vector<16x4xf32> to vector<14x4xf32>
    %c70_124 = arith.constant 70 : index
    %c32_125 = arith.constant 32 : index
    %125 = vector.load %arg12[%c70_124, %c32_125] : memref<168x36xf32, #tpu.memory_space<vmem>>, vector<14x4xf32>
    tpu.vector_store %arg12[%c70_124, %c32_125], %124 {strides = array<i32>} : memref<168x36xf32, #tpu.memory_space<vmem>>, vector<14x4xf32>,
    %c128 = arith.constant 128 : index
    %c0_126 = arith.constant 0 : index
    %126 = vector.load %arg0[%c128, %c0_126] : memref<256x4xf32, #tpu.memory_space<vmem>>, vector<16x4xf32>
    %127 = vector.extract_strided_slice %126 {offsets = [0, 0], sizes = [14, 4], strides = [1, 1]} : vector<16x4xf32> to vector<14x4xf32>
    %c84 = arith.constant 84 : index
    %c0_127 = arith.constant 0 : index
    %128 = vector.load %arg12[%c84, %c0_127] : memref<168x36xf32, #tpu.memory_space<vmem>>, vector<14x4xf32>
    tpu.vector_store %arg12[%c84, %c0_127], %127 {strides = array<i32>} : memref<168x36xf32, #tpu.memory_space<vmem>>, vector<14x4xf32>,
    %129 = vector.extract_strided_slice %126 {offsets = [1, 0], sizes = [14, 4], strides = [1, 1]} : vector<16x4xf32> to vector<14x4xf32>
    %c84_128 = arith.constant 84 : index
    %c4_129 = arith.constant 4 : index
    %130 = vector.load %arg12[%c84_128, %c4_129] : memref<168x36xf32, #tpu.memory_space<vmem>>, vector<14x4xf32>
    tpu.vector_store %arg12[%c84_128, %c4_129], %129 {strides = array<i32>} : memref<168x36xf32, #tpu.memory_space<vmem>>, vector<14x4xf32>,
    %131 = vector.extract_strided_slice %126 {offsets = [2, 0], sizes = [14, 4], strides = [1, 1]} : vector<16x4xf32> to vector<14x4xf32>
    %c84_130 = arith.constant 84 : index
    %c8_131 = arith.constant 8 : index
    %132 = vector.load %arg12[%c84_130, %c8_131] : memref<168x36xf32, #tpu.memory_space<vmem>>, vector<14x4xf32>
    tpu.vector_store %arg12[%c84_130, %c8_131], %131 {strides = array<i32>} : memref<168x36xf32, #tpu.memory_space<vmem>>, vector<14x4xf32>,
    %c144 = arith.constant 144 : index
    %c0_132 = arith.constant 0 : index
    %133 = vector.load %arg0[%c144, %c0_132] : memref<256x4xf32, #tpu.memory_space<vmem>>, vector<16x4xf32>
    %134 = vector.extract_strided_slice %133 {offsets = [0, 0], sizes = [14, 4], strides = [1, 1]} : vector<16x4xf32> to vector<14x4xf32>
    %c84_133 = arith.constant 84 : index
    %c12_134 = arith.constant 12 : index
    %135 = vector.load %arg12[%c84_133, %c12_134] : memref<168x36xf32, #tpu.memory_space<vmem>>, vector<14x4xf32>
    tpu.vector_store %arg12[%c84_133, %c12_134], %134 {strides = array<i32>} : memref<168x36xf32, #tpu.memory_space<vmem>>, vector<14x4xf32>,
    %136 = vector.extract_strided_slice %133 {offsets = [1, 0], sizes = [14, 4], strides = [1, 1]} : vector<16x4xf32> to vector<14x4xf32>
    %c84_135 = arith.constant 84 : index
    %c16_136 = arith.constant 16 : index
    %137 = vector.load %arg12[%c84_135, %c16_136] : memref<168x36xf32, #tpu.memory_space<vmem>>, vector<14x4xf32>
    tpu.vector_store %arg12[%c84_135, %c16_136], %136 {strides = array<i32>} : memref<168x36xf32, #tpu.memory_space<vmem>>, vector<14x4xf32>,
    %138 = vector.extract_strided_slice %133 {offsets = [2, 0], sizes = [14, 4], strides = [1, 1]} : vector<16x4xf32> to vector<14x4xf32>
    %c84_137 = arith.constant 84 : index
    %c20_138 = arith.constant 20 : index
    %139 = vector.load %arg12[%c84_137, %c20_138] : memref<168x36xf32, #tpu.memory_space<vmem>>, vector<14x4xf32>
    tpu.vector_store %arg12[%c84_137, %c20_138], %138 {strides = array<i32>} : memref<168x36xf32, #tpu.memory_space<vmem>>, vector<14x4xf32>,
    %c160 = arith.constant 160 : index
    %c0_139 = arith.constant 0 : index
    %140 = vector.load %arg0[%c160, %c0_139] : memref<256x4xf32, #tpu.memory_space<vmem>>, vector<16x4xf32>
    %141 = vector.extract_strided_slice %140 {offsets = [0, 0], sizes = [14, 4], strides = [1, 1]} : vector<16x4xf32> to vector<14x4xf32>
    %c84_140 = arith.constant 84 : index
    %c24_141 = arith.constant 24 : index
    %142 = vector.load %arg12[%c84_140, %c24_141] : memref<168x36xf32, #tpu.memory_space<vmem>>, vector<14x4xf32>
    tpu.vector_store %arg12[%c84_140, %c24_141], %141 {strides = array<i32>} : memref<168x36xf32, #tpu.memory_space<vmem>>, vector<14x4xf32>,
    %143 = vector.extract_strided_slice %140 {offsets = [1, 0], sizes = [14, 4], strides = [1, 1]} : vector<16x4xf32> to vector<14x4xf32>
    %c84_142 = arith.constant 84 : index
    %c28_143 = arith.constant 28 : index
    %144 = vector.load %arg12[%c84_142, %c28_143] : memref<168x36xf32, #tpu.memory_space<vmem>>, vector<14x4xf32>
    tpu.vector_store %arg12[%c84_142, %c28_143], %143 {strides = array<i32>} : memref<168x36xf32, #tpu.memory_space<vmem>>, vector<14x4xf32>,
    %145 = vector.extract_strided_slice %140 {offsets = [2, 0], sizes = [14, 4], strides = [1, 1]} : vector<16x4xf32> to vector<14x4xf32>
    %c84_144 = arith.constant 84 : index
    %c32_145 = arith.constant 32 : index
    %146 = vector.load %arg12[%c84_144, %c32_145] : memref<168x36xf32, #tpu.memory_space<vmem>>, vector<14x4xf32>
    tpu.vector_store %arg12[%c84_144, %c32_145], %145 {strides = array<i32>} : memref<168x36xf32, #tpu.memory_space<vmem>>, vector<14x4xf32>,
    %c144_146 = arith.constant 144 : index
    %c0_147 = arith.constant 0 : index
    %147 = vector.load %arg0[%c144_146, %c0_147] : memref<256x4xf32, #tpu.memory_space<vmem>>, vector<16x4xf32>
    %148 = vector.extract_strided_slice %147 {offsets = [0, 0], sizes = [14, 4], strides = [1, 1]} : vector<16x4xf32> to vector<14x4xf32>
    %c98 = arith.constant 98 : index
    %c0_148 = arith.constant 0 : index
    %149 = vector.load %arg12[%c98, %c0_148] : memref<168x36xf32, #tpu.memory_space<vmem>>, vector<14x4xf32>
    tpu.vector_store %arg12[%c98, %c0_148], %148 {strides = array<i32>} : memref<168x36xf32, #tpu.memory_space<vmem>>, vector<14x4xf32>,
    %150 = vector.extract_strided_slice %147 {offsets = [1, 0], sizes = [14, 4], strides = [1, 1]} : vector<16x4xf32> to vector<14x4xf32>
    %c98_149 = arith.constant 98 : index
    %c4_150 = arith.constant 4 : index
    %151 = vector.load %arg12[%c98_149, %c4_150] : memref<168x36xf32, #tpu.memory_space<vmem>>, vector<14x4xf32>
    tpu.vector_store %arg12[%c98_149, %c4_150], %150 {strides = array<i32>} : memref<168x36xf32, #tpu.memory_space<vmem>>, vector<14x4xf32>,
    %152 = vector.extract_strided_slice %147 {offsets = [2, 0], sizes = [14, 4], strides = [1, 1]} : vector<16x4xf32> to vector<14x4xf32>
    %c98_151 = arith.constant 98 : index
    %c8_152 = arith.constant 8 : index
    %153 = vector.load %arg12[%c98_151, %c8_152] : memref<168x36xf32, #tpu.memory_space<vmem>>, vector<14x4xf32>
    tpu.vector_store %arg12[%c98_151, %c8_152], %152 {strides = array<i32>} : memref<168x36xf32, #tpu.memory_space<vmem>>, vector<14x4xf32>,
    %c160_153 = arith.constant 160 : index
    %c0_154 = arith.constant 0 : index
    %154 = vector.load %arg0[%c160_153, %c0_154] : memref<256x4xf32, #tpu.memory_space<vmem>>, vector<16x4xf32>
    %155 = vector.extract_strided_slice %154 {offsets = [0, 0], sizes = [14, 4], strides = [1, 1]} : vector<16x4xf32> to vector<14x4xf32>
    %c98_155 = arith.constant 98 : index
    %c12_156 = arith.constant 12 : index
    %156 = vector.load %arg12[%c98_155, %c12_156] : memref<168x36xf32, #tpu.memory_space<vmem>>, vector<14x4xf32>
    tpu.vector_store %arg12[%c98_155, %c12_156], %155 {strides = array<i32>} : memref<168x36xf32, #tpu.memory_space<vmem>>, vector<14x4xf32>,
    %157 = vector.extract_strided_slice %154 {offsets = [1, 0], sizes = [14, 4], strides = [1, 1]} : vector<16x4xf32> to vector<14x4xf32>
    %c98_157 = arith.constant 98 : index
    %c16_158 = arith.constant 16 : index
    %158 = vector.load %arg12[%c98_157, %c16_158] : memref<168x36xf32, #tpu.memory_space<vmem>>, vector<14x4xf32>
    tpu.vector_store %arg12[%c98_157, %c16_158], %157 {strides = array<i32>} : memref<168x36xf32, #tpu.memory_space<vmem>>, vector<14x4xf32>,
    %159 = vector.extract_strided_slice %154 {offsets = [2, 0], sizes = [14, 4], strides = [1, 1]} : vector<16x4xf32> to vector<14x4xf32>
    %c98_159 = arith.constant 98 : index
    %c20_160 = arith.constant 20 : index
    %160 = vector.load %arg12[%c98_159, %c20_160] : memref<168x36xf32, #tpu.memory_space<vmem>>, vector<14x4xf32>
    tpu.vector_store %arg12[%c98_159, %c20_160], %159 {strides = array<i32>} : memref<168x36xf32, #tpu.memory_space<vmem>>, vector<14x4xf32>,
    %c176 = arith.constant 176 : index
    %c0_161 = arith.constant 0 : index
    %161 = vector.load %arg0[%c176, %c0_161] : memref<256x4xf32, #tpu.memory_space<vmem>>, vector<16x4xf32>
    %162 = vector.extract_strided_slice %161 {offsets = [0, 0], sizes = [14, 4], strides = [1, 1]} : vector<16x4xf32> to vector<14x4xf32>
    %c98_162 = arith.constant 98 : index
    %c24_163 = arith.constant 24 : index
    %163 = vector.load %arg12[%c98_162, %c24_163] : memref<168x36xf32, #tpu.memory_space<vmem>>, vector<14x4xf32>
    tpu.vector_store %arg12[%c98_162, %c24_163], %162 {strides = array<i32>} : memref<168x36xf32, #tpu.memory_space<vmem>>, vector<14x4xf32>,
    %164 = vector.extract_strided_slice %161 {offsets = [1, 0], sizes = [14, 4], strides = [1, 1]} : vector<16x4xf32> to vector<14x4xf32>
    %c98_164 = arith.constant 98 : index
    %c28_165 = arith.constant 28 : index
    %165 = vector.load %arg12[%c98_164, %c28_165] : memref<168x36xf32, #tpu.memory_space<vmem>>, vector<14x4xf32>
    tpu.vector_store %arg12[%c98_164, %c28_165], %164 {strides = array<i32>} : memref<168x36xf32, #tpu.memory_space<vmem>>, vector<14x4xf32>,
    %166 = vector.extract_strided_slice %161 {offsets = [2, 0], sizes = [14, 4], strides = [1, 1]} : vector<16x4xf32> to vector<14x4xf32>
    %c98_166 = arith.constant 98 : index
    %c32_167 = arith.constant 32 : index
    %167 = vector.load %arg12[%c98_166, %c32_167] : memref<168x36xf32, #tpu.memory_space<vmem>>, vector<14x4xf32>
    tpu.vector_store %arg12[%c98_166, %c32_167], %166 {strides = array<i32>} : memref<168x36xf32, #tpu.memory_space<vmem>>, vector<14x4xf32>,
    %c160_168 = arith.constant 160 : index
    %c0_169 = arith.constant 0 : index
    %168 = vector.load %arg0[%c160_168, %c0_169] : memref<256x4xf32, #tpu.memory_space<vmem>>, vector<16x4xf32>
    %169 = vector.extract_strided_slice %168 {offsets = [0, 0], sizes = [14, 4], strides = [1, 1]} : vector<16x4xf32> to vector<14x4xf32>
    %c112_170 = arith.constant 112 : index
    %c0_171 = arith.constant 0 : index
    %170 = vector.load %arg12[%c112_170, %c0_171] : memref<168x36xf32, #tpu.memory_space<vmem>>, vector<14x4xf32>
    tpu.vector_store %arg12[%c112_170, %c0_171], %169 {strides = array<i32>} : memref<168x36xf32, #tpu.memory_space<vmem>>, vector<14x4xf32>,
    %171 = vector.extract_strided_slice %168 {offsets = [1, 0], sizes = [14, 4], strides = [1, 1]} : vector<16x4xf32> to vector<14x4xf32>
    %c112_172 = arith.constant 112 : index
    %c4_173 = arith.constant 4 : index
    %172 = vector.load %arg12[%c112_172, %c4_173] : memref<168x36xf32, #tpu.memory_space<vmem>>, vector<14x4xf32>
    tpu.vector_store %arg12[%c112_172, %c4_173], %171 {strides = array<i32>} : memref<168x36xf32, #tpu.memory_space<vmem>>, vector<14x4xf32>,
    %173 = vector.extract_strided_slice %168 {offsets = [2, 0], sizes = [14, 4], strides = [1, 1]} : vector<16x4xf32> to vector<14x4xf32>
    %c112_174 = arith.constant 112 : index
    %c8_175 = arith.constant 8 : index
    %174 = vector.load %arg12[%c112_174, %c8_175] : memref<168x36xf32, #tpu.memory_space<vmem>>, vector<14x4xf32>
    tpu.vector_store %arg12[%c112_174, %c8_175], %173 {strides = array<i32>} : memref<168x36xf32, #tpu.memory_space<vmem>>, vector<14x4xf32>,
    %c176_176 = arith.constant 176 : index
    %c0_177 = arith.constant 0 : index
    %175 = vector.load %arg0[%c176_176, %c0_177] : memref<256x4xf32, #tpu.memory_space<vmem>>, vector<16x4xf32>
    %176 = vector.extract_strided_slice %175 {offsets = [0, 0], sizes = [14, 4], strides = [1, 1]} : vector<16x4xf32> to vector<14x4xf32>
    %c112_178 = arith.constant 112 : index
    %c12_179 = arith.constant 12 : index
    %177 = vector.load %arg12[%c112_178, %c12_179] : memref<168x36xf32, #tpu.memory_space<vmem>>, vector<14x4xf32>
    tpu.vector_store %arg12[%c112_178, %c12_179], %176 {strides = array<i32>} : memref<168x36xf32, #tpu.memory_space<vmem>>, vector<14x4xf32>,
    %178 = vector.extract_strided_slice %175 {offsets = [1, 0], sizes = [14, 4], strides = [1, 1]} : vector<16x4xf32> to vector<14x4xf32>
    %c112_180 = arith.constant 112 : index
    %c16_181 = arith.constant 16 : index
    %179 = vector.load %arg12[%c112_180, %c16_181] : memref<168x36xf32, #tpu.memory_space<vmem>>, vector<14x4xf32>
    tpu.vector_store %arg12[%c112_180, %c16_181], %178 {strides = array<i32>} : memref<168x36xf32, #tpu.memory_space<vmem>>, vector<14x4xf32>,
    %180 = vector.extract_strided_slice %175 {offsets = [2, 0], sizes = [14, 4], strides = [1, 1]} : vector<16x4xf32> to vector<14x4xf32>
    %c112_182 = arith.constant 112 : index
    %c20_183 = arith.constant 20 : index
    %181 = vector.load %arg12[%c112_182, %c20_183] : memref<168x36xf32, #tpu.memory_space<vmem>>, vector<14x4xf32>
    tpu.vector_store %arg12[%c112_182, %c20_183], %180 {strides = array<i32>} : memref<168x36xf32, #tpu.memory_space<vmem>>, vector<14x4xf32>,
    %c192 = arith.constant 192 : index
    %c0_184 = arith.constant 0 : index
    %182 = vector.load %arg0[%c192, %c0_184] : memref<256x4xf32, #tpu.memory_space<vmem>>, vector<16x4xf32>
    %183 = vector.extract_strided_slice %182 {offsets = [0, 0], sizes = [14, 4], strides = [1, 1]} : vector<16x4xf32> to vector<14x4xf32>
    %c112_185 = arith.constant 112 : index
    %c24_186 = arith.constant 24 : index
    %184 = vector.load %arg12[%c112_185, %c24_186] : memref<168x36xf32, #tpu.memory_space<vmem>>, vector<14x4xf32>
    tpu.vector_store %arg12[%c112_185, %c24_186], %183 {strides = array<i32>} : memref<168x36xf32, #tpu.memory_space<vmem>>, vector<14x4xf32>,
    %185 = vector.extract_strided_slice %182 {offsets = [1, 0], sizes = [14, 4], strides = [1, 1]} : vector<16x4xf32> to vector<14x4xf32>
    %c112_187 = arith.constant 112 : index
    %c28_188 = arith.constant 28 : index
    %186 = vector.load %arg12[%c112_187, %c28_188] : memref<168x36xf32, #tpu.memory_space<vmem>>, vector<14x4xf32>
    tpu.vector_store %arg12[%c112_187, %c28_188], %185 {strides = array<i32>} : memref<168x36xf32, #tpu.memory_space<vmem>>, vector<14x4xf32>,
    %187 = vector.extract_strided_slice %182 {offsets = [2, 0], sizes = [14, 4], strides = [1, 1]} : vector<16x4xf32> to vector<14x4xf32>
    %c112_189 = arith.constant 112 : index
    %c32_190 = arith.constant 32 : index
    %188 = vector.load %arg12[%c112_189, %c32_190] : memref<168x36xf32, #tpu.memory_space<vmem>>, vector<14x4xf32>
    tpu.vector_store %arg12[%c112_189, %c32_190], %187 {strides = array<i32>} : memref<168x36xf32, #tpu.memory_space<vmem>>, vector<14x4xf32>,
    %c176_191 = arith.constant 176 : index
    %c0_192 = arith.constant 0 : index
    %189 = vector.load %arg0[%c176_191, %c0_192] : memref<256x4xf32, #tpu.memory_space<vmem>>, vector<16x4xf32>
    %190 = vector.extract_strided_slice %189 {offsets = [0, 0], sizes = [14, 4], strides = [1, 1]} : vector<16x4xf32> to vector<14x4xf32>
    %c126 = arith.constant 126 : index
    %c0_193 = arith.constant 0 : index
    %191 = vector.load %arg12[%c126, %c0_193] : memref<168x36xf32, #tpu.memory_space<vmem>>, vector<14x4xf32>
    tpu.vector_store %arg12[%c126, %c0_193], %190 {strides = array<i32>} : memref<168x36xf32, #tpu.memory_space<vmem>>, vector<14x4xf32>,
    %192 = vector.extract_strided_slice %189 {offsets = [1, 0], sizes = [14, 4], strides = [1, 1]} : vector<16x4xf32> to vector<14x4xf32>
    %c126_194 = arith.constant 126 : index
    %c4_195 = arith.constant 4 : index
    %193 = vector.load %arg12[%c126_194, %c4_195] : memref<168x36xf32, #tpu.memory_space<vmem>>, vector<14x4xf32>
    tpu.vector_store %arg12[%c126_194, %c4_195], %192 {strides = array<i32>} : memref<168x36xf32, #tpu.memory_space<vmem>>, vector<14x4xf32>,
    %194 = vector.extract_strided_slice %189 {offsets = [2, 0], sizes = [14, 4], strides = [1, 1]} : vector<16x4xf32> to vector<14x4xf32>
    %c126_196 = arith.constant 126 : index
    %c8_197 = arith.constant 8 : index
    %195 = vector.load %arg12[%c126_196, %c8_197] : memref<168x36xf32, #tpu.memory_space<vmem>>, vector<14x4xf32>
    tpu.vector_store %arg12[%c126_196, %c8_197], %194 {strides = array<i32>} : memref<168x36xf32, #tpu.memory_space<vmem>>, vector<14x4xf32>,
    %c192_198 = arith.constant 192 : index
    %c0_199 = arith.constant 0 : index
    %196 = vector.load %arg0[%c192_198, %c0_199] : memref<256x4xf32, #tpu.memory_space<vmem>>, vector<16x4xf32>
    %197 = vector.extract_strided_slice %196 {offsets = [0, 0], sizes = [14, 4], strides = [1, 1]} : vector<16x4xf32> to vector<14x4xf32>
    %c126_200 = arith.constant 126 : index
    %c12_201 = arith.constant 12 : index
    %198 = vector.load %arg12[%c126_200, %c12_201] : memref<168x36xf32, #tpu.memory_space<vmem>>, vector<14x4xf32>
    tpu.vector_store %arg12[%c126_200, %c12_201], %197 {strides = array<i32>} : memref<168x36xf32, #tpu.memory_space<vmem>>, vector<14x4xf32>,
    %199 = vector.extract_strided_slice %196 {offsets = [1, 0], sizes = [14, 4], strides = [1, 1]} : vector<16x4xf32> to vector<14x4xf32>
    %c126_202 = arith.constant 126 : index
    %c16_203 = arith.constant 16 : index
    %200 = vector.load %arg12[%c126_202, %c16_203] : memref<168x36xf32, #tpu.memory_space<vmem>>, vector<14x4xf32>
    tpu.vector_store %arg12[%c126_202, %c16_203], %199 {strides = array<i32>} : memref<168x36xf32, #tpu.memory_space<vmem>>, vector<14x4xf32>,
    %201 = vector.extract_strided_slice %196 {offsets = [2, 0], sizes = [14, 4], strides = [1, 1]} : vector<16x4xf32> to vector<14x4xf32>
    %c126_204 = arith.constant 126 : index
    %c20_205 = arith.constant 20 : index
    %202 = vector.load %arg12[%c126_204, %c20_205] : memref<168x36xf32, #tpu.memory_space<vmem>>, vector<14x4xf32>
    tpu.vector_store %arg12[%c126_204, %c20_205], %201 {strides = array<i32>} : memref<168x36xf32, #tpu.memory_space<vmem>>, vector<14x4xf32>,
    %c208 = arith.constant 208 : index
    %c0_206 = arith.constant 0 : index
    %203 = vector.load %arg0[%c208, %c0_206] : memref<256x4xf32, #tpu.memory_space<vmem>>, vector<16x4xf32>
    %204 = vector.extract_strided_slice %203 {offsets = [0, 0], sizes = [14, 4], strides = [1, 1]} : vector<16x4xf32> to vector<14x4xf32>
    %c126_207 = arith.constant 126 : index
    %c24_208 = arith.constant 24 : index
    %205 = vector.load %arg12[%c126_207, %c24_208] : memref<168x36xf32, #tpu.memory_space<vmem>>, vector<14x4xf32>
    tpu.vector_store %arg12[%c126_207, %c24_208], %204 {strides = array<i32>} : memref<168x36xf32, #tpu.memory_space<vmem>>, vector<14x4xf32>,
    %206 = vector.extract_strided_slice %203 {offsets = [1, 0], sizes = [14, 4], strides = [1, 1]} : vector<16x4xf32> to vector<14x4xf32>
    %c126_209 = arith.constant 126 : index
    %c28_210 = arith.constant 28 : index
    %207 = vector.load %arg12[%c126_209, %c28_210] : memref<168x36xf32, #tpu.memory_space<vmem>>, vector<14x4xf32>
    tpu.vector_store %arg12[%c126_209, %c28_210], %206 {strides = array<i32>} : memref<168x36xf32, #tpu.memory_space<vmem>>, vector<14x4xf32>,
    %208 = vector.extract_strided_slice %203 {offsets = [2, 0], sizes = [14, 4], strides = [1, 1]} : vector<16x4xf32> to vector<14x4xf32>
    %c126_211 = arith.constant 126 : index
    %c32_212 = arith.constant 32 : index
    %209 = vector.load %arg12[%c126_211, %c32_212] : memref<168x36xf32, #tpu.memory_space<vmem>>, vector<14x4xf32>
    tpu.vector_store %arg12[%c126_211, %c32_212], %208 {strides = array<i32>} : memref<168x36xf32, #tpu.memory_space<vmem>>, vector<14x4xf32>,
    %c192_213 = arith.constant 192 : index
    %c0_214 = arith.constant 0 : index
    %210 = vector.load %arg0[%c192_213, %c0_214] : memref<256x4xf32, #tpu.memory_space<vmem>>, vector<16x4xf32>
    %211 = vector.extract_strided_slice %210 {offsets = [0, 0], sizes = [14, 4], strides = [1, 1]} : vector<16x4xf32> to vector<14x4xf32>
    %c140 = arith.constant 140 : index
    %c0_215 = arith.constant 0 : index
    %212 = vector.load %arg12[%c140, %c0_215] : memref<168x36xf32, #tpu.memory_space<vmem>>, vector<14x4xf32>
    tpu.vector_store %arg12[%c140, %c0_215], %211 {strides = array<i32>} : memref<168x36xf32, #tpu.memory_space<vmem>>, vector<14x4xf32>,
    %213 = vector.extract_strided_slice %210 {offsets = [1, 0], sizes = [14, 4], strides = [1, 1]} : vector<16x4xf32> to vector<14x4xf32>
    %c140_216 = arith.constant 140 : index
    %c4_217 = arith.constant 4 : index
    %214 = vector.load %arg12[%c140_216, %c4_217] : memref<168x36xf32, #tpu.memory_space<vmem>>, vector<14x4xf32>
    tpu.vector_store %arg12[%c140_216, %c4_217], %213 {strides = array<i32>} : memref<168x36xf32, #tpu.memory_space<vmem>>, vector<14x4xf32>,
    %215 = vector.extract_strided_slice %210 {offsets = [2, 0], sizes = [14, 4], strides = [1, 1]} : vector<16x4xf32> to vector<14x4xf32>
    %c140_218 = arith.constant 140 : index
    %c8_219 = arith.constant 8 : index
    %216 = vector.load %arg12[%c140_218, %c8_219] : memref<168x36xf32, #tpu.memory_space<vmem>>, vector<14x4xf32>
    tpu.vector_store %arg12[%c140_218, %c8_219], %215 {strides = array<i32>} : memref<168x36xf32, #tpu.memory_space<vmem>>, vector<14x4xf32>,
    %c208_220 = arith.constant 208 : index
    %c0_221 = arith.constant 0 : index
    %217 = vector.load %arg0[%c208_220, %c0_221] : memref<256x4xf32, #tpu.memory_space<vmem>>, vector<16x4xf32>
    %218 = vector.extract_strided_slice %217 {offsets = [0, 0], sizes = [14, 4], strides = [1, 1]} : vector<16x4xf32> to vector<14x4xf32>
    %c140_222 = arith.constant 140 : index
    %c12_223 = arith.constant 12 : index
    %219 = vector.load %arg12[%c140_222, %c12_223] : memref<168x36xf32, #tpu.memory_space<vmem>>, vector<14x4xf32>
    tpu.vector_store %arg12[%c140_222, %c12_223], %218 {strides = array<i32>} : memref<168x36xf32, #tpu.memory_space<vmem>>, vector<14x4xf32>,
    %220 = vector.extract_strided_slice %217 {offsets = [1, 0], sizes = [14, 4], strides = [1, 1]} : vector<16x4xf32> to vector<14x4xf32>
    %c140_224 = arith.constant 140 : index
    %c16_225 = arith.constant 16 : index
    %221 = vector.load %arg12[%c140_224, %c16_225] : memref<168x36xf32, #tpu.memory_space<vmem>>, vector<14x4xf32>
    tpu.vector_store %arg12[%c140_224, %c16_225], %220 {strides = array<i32>} : memref<168x36xf32, #tpu.memory_space<vmem>>, vector<14x4xf32>,
    %222 = vector.extract_strided_slice %217 {offsets = [2, 0], sizes = [14, 4], strides = [1, 1]} : vector<16x4xf32> to vector<14x4xf32>
    %c140_226 = arith.constant 140 : index
    %c20_227 = arith.constant 20 : index
    %223 = vector.load %arg12[%c140_226, %c20_227] : memref<168x36xf32, #tpu.memory_space<vmem>>, vector<14x4xf32>
    tpu.vector_store %arg12[%c140_226, %c20_227], %222 {strides = array<i32>} : memref<168x36xf32, #tpu.memory_space<vmem>>, vector<14x4xf32>,
    %c224 = arith.constant 224 : index
    %c0_228 = arith.constant 0 : index
    %224 = vector.load %arg0[%c224, %c0_228] : memref<256x4xf32, #tpu.memory_space<vmem>>, vector<16x4xf32>
    %225 = vector.extract_strided_slice %224 {offsets = [0, 0], sizes = [14, 4], strides = [1, 1]} : vector<16x4xf32> to vector<14x4xf32>
    %c140_229 = arith.constant 140 : index
    %c24_230 = arith.constant 24 : index
    %226 = vector.load %arg12[%c140_229, %c24_230] : memref<168x36xf32, #tpu.memory_space<vmem>>, vector<14x4xf32>
    tpu.vector_store %arg12[%c140_229, %c24_230], %225 {strides = array<i32>} : memref<168x36xf32, #tpu.memory_space<vmem>>, vector<14x4xf32>,
    %227 = vector.extract_strided_slice %224 {offsets = [1, 0], sizes = [14, 4], strides = [1, 1]} : vector<16x4xf32> to vector<14x4xf32>
    %c140_231 = arith.constant 140 : index
    %c28_232 = arith.constant 28 : index
    %228 = vector.load %arg12[%c140_231, %c28_232] : memref<168x36xf32, #tpu.memory_space<vmem>>, vector<14x4xf32>
    tpu.vector_store %arg12[%c140_231, %c28_232], %227 {strides = array<i32>} : memref<168x36xf32, #tpu.memory_space<vmem>>, vector<14x4xf32>,
    %229 = vector.extract_strided_slice %224 {offsets = [2, 0], sizes = [14, 4], strides = [1, 1]} : vector<16x4xf32> to vector<14x4xf32>
    %c140_233 = arith.constant 140 : index
    %c32_234 = arith.constant 32 : index
    %230 = vector.load %arg12[%c140_233, %c32_234] : memref<168x36xf32, #tpu.memory_space<vmem>>, vector<14x4xf32>
    tpu.vector_store %arg12[%c140_233, %c32_234], %229 {strides = array<i32>} : memref<168x36xf32, #tpu.memory_space<vmem>>, vector<14x4xf32>,
    %c208_235 = arith.constant 208 : index
    %c0_236 = arith.constant 0 : index
    %231 = vector.load %arg0[%c208_235, %c0_236] : memref<256x4xf32, #tpu.memory_space<vmem>>, vector<16x4xf32>
    %232 = vector.extract_strided_slice %231 {offsets = [0, 0], sizes = [14, 4], strides = [1, 1]} : vector<16x4xf32> to vector<14x4xf32>
    %c154 = arith.constant 154 : index
    %c0_237 = arith.constant 0 : index
    %233 = vector.load %arg12[%c154, %c0_237] : memref<168x36xf32, #tpu.memory_space<vmem>>, vector<14x4xf32>
    tpu.vector_store %arg12[%c154, %c0_237], %232 {strides = array<i32>} : memref<168x36xf32, #tpu.memory_space<vmem>>, vector<14x4xf32>,
    %234 = vector.extract_strided_slice %231 {offsets = [1, 0], sizes = [14, 4], strides = [1, 1]} : vector<16x4xf32> to vector<14x4xf32>
    %c154_238 = arith.constant 154 : index
    %c4_239 = arith.constant 4 : index
    %235 = vector.load %arg12[%c154_238, %c4_239] : memref<168x36xf32, #tpu.memory_space<vmem>>, vector<14x4xf32>
    tpu.vector_store %arg12[%c154_238, %c4_239], %234 {strides = array<i32>} : memref<168x36xf32, #tpu.memory_space<vmem>>, vector<14x4xf32>,
    %236 = vector.extract_strided_slice %231 {offsets = [2, 0], sizes = [14, 4], strides = [1, 1]} : vector<16x4xf32> to vector<14x4xf32>
    %c154_240 = arith.constant 154 : index
    %c8_241 = arith.constant 8 : index
    %237 = vector.load %arg12[%c154_240, %c8_241] : memref<168x36xf32, #tpu.memory_space<vmem>>, vector<14x4xf32>
    tpu.vector_store %arg12[%c154_240, %c8_241], %236 {strides = array<i32>} : memref<168x36xf32, #tpu.memory_space<vmem>>, vector<14x4xf32>,
    %c224_242 = arith.constant 224 : index
    %c0_243 = arith.constant 0 : index
    %238 = vector.load %arg0[%c224_242, %c0_243] : memref<256x4xf32, #tpu.memory_space<vmem>>, vector<16x4xf32>
    %239 = vector.extract_strided_slice %238 {offsets = [0, 0], sizes = [14, 4], strides = [1, 1]} : vector<16x4xf32> to vector<14x4xf32>
    %c154_244 = arith.constant 154 : index
    %c12_245 = arith.constant 12 : index
    %240 = vector.load %arg12[%c154_244, %c12_245] : memref<168x36xf32, #tpu.memory_space<vmem>>, vector<14x4xf32>
    tpu.vector_store %arg12[%c154_244, %c12_245], %239 {strides = array<i32>} : memref<168x36xf32, #tpu.memory_space<vmem>>, vector<14x4xf32>,
    %241 = vector.extract_strided_slice %238 {offsets = [1, 0], sizes = [14, 4], strides = [1, 1]} : vector<16x4xf32> to vector<14x4xf32>
    %c154_246 = arith.constant 154 : index
    %c16_247 = arith.constant 16 : index
    %242 = vector.load %arg12[%c154_246, %c16_247] : memref<168x36xf32, #tpu.memory_space<vmem>>, vector<14x4xf32>
    tpu.vector_store %arg12[%c154_246, %c16_247], %241 {strides = array<i32>} : memref<168x36xf32, #tpu.memory_space<vmem>>, vector<14x4xf32>,
    %243 = vector.extract_strided_slice %238 {offsets = [2, 0], sizes = [14, 4], strides = [1, 1]} : vector<16x4xf32> to vector<14x4xf32>
    %c154_248 = arith.constant 154 : index
    %c20_249 = arith.constant 20 : index
    %244 = vector.load %arg12[%c154_248, %c20_249] : memref<168x36xf32, #tpu.memory_space<vmem>>, vector<14x4xf32>
    tpu.vector_store %arg12[%c154_248, %c20_249], %243 {strides = array<i32>} : memref<168x36xf32, #tpu.memory_space<vmem>>, vector<14x4xf32>,
    %c240 = arith.constant 240 : index
    %c0_250 = arith.constant 0 : index
    %245 = vector.load %arg0[%c240, %c0_250] : memref<256x4xf32, #tpu.memory_space<vmem>>, vector<16x4xf32>
    %246 = vector.extract_strided_slice %245 {offsets = [0, 0], sizes = [14, 4], strides = [1, 1]} : vector<16x4xf32> to vector<14x4xf32>
    %c154_251 = arith.constant 154 : index
    %c24_252 = arith.constant 24 : index
    %247 = vector.load %arg12[%c154_251, %c24_252] : memref<168x36xf32, #tpu.memory_space<vmem>>, vector<14x4xf32>
    tpu.vector_store %arg12[%c154_251, %c24_252], %246 {strides = array<i32>} : memref<168x36xf32, #tpu.memory_space<vmem>>, vector<14x4xf32>,
    %248 = vector.extract_strided_slice %245 {offsets = [1, 0], sizes = [14, 4], strides = [1, 1]} : vector<16x4xf32> to vector<14x4xf32>
    %c154_253 = arith.constant 154 : index
    %c28_254 = arith.constant 28 : index
    %249 = vector.load %arg12[%c154_253, %c28_254] : memref<168x36xf32, #tpu.memory_space<vmem>>, vector<14x4xf32>
    tpu.vector_store %arg12[%c154_253, %c28_254], %248 {strides = array<i32>} : memref<168x36xf32, #tpu.memory_space<vmem>>, vector<14x4xf32>,
    %250 = vector.extract_strided_slice %245 {offsets = [2, 0], sizes = [14, 4], strides = [1, 1]} : vector<16x4xf32> to vector<14x4xf32>
    %c154_255 = arith.constant 154 : index
    %c32_256 = arith.constant 32 : index
    %251 = vector.load %arg12[%c154_255, %c32_256] : memref<168x36xf32, #tpu.memory_space<vmem>>, vector<14x4xf32>
    tpu.vector_store %arg12[%c154_255, %c32_256], %250 {strides = array<i32>} : memref<168x36xf32, #tpu.memory_space<vmem>>, vector<14x4xf32>,
    %c0_257 = arith.constant 0 : index
    %c0_258 = arith.constant 0 : index
    %252 = vector.load %arg12[%c0_257, %c0_258] : memref<168x36xf32, #tpu.memory_space<vmem>>, vector<168x36xf32>
    %253 = arith.truncf %252 : vector<168x36xf32> to vector<168x36xbf16>
    %c0_259 = arith.constant 0 : index
    %c0_260 = arith.constant 0 : index
    %254 = vector.load %arg1[%c0_259, %c0_260] : memref<36x8xbf16, #tpu.memory_space<vmem>>, vector<36x8xbf16>
    %cst = arith.constant dense<0.000000e+00> : vector<168x8xf32>
    %255 = tpu.matmul %253, %254, %cst {dimension_numbers = #tpu.dot_dimension_numbers<[1], [0], [0], [1], [0, 0, 1, 1], [], []>} : vector<168x36xbf16>, vector<36x8xbf16>, vector<168x8xf32> -> vector<168x8xf32>
    %c0_261 = arith.constant 0 : index
    %c0_262 = arith.constant 0 : index
    %256 = vector.load %arg2[%c0_261, %c0_262] : memref<1x8xf32, #tpu.memory_space<vmem>>, vector<1x8xf32>
    %257 = vector.broadcast %256 : vector<1x8xf32> to vector<168x8xf32>
    %258 = arith.addf %255, %257 : vector<168x8xf32>
    %cst_263 = arith.constant 0.000000e+00 : f32
    %259 = vector.broadcast %cst_263 : f32 to vector<168x8xf32>
    %260 = arith.maximumf %258, %259 : vector<168x8xf32>
    %c0_264 = arith.constant 0 : index
    %c0_265 = arith.constant 0 : index
    %261 = vector.load %arg13[%c0_264, %c0_265] : memref<168x8xf32, #tpu.memory_space<vmem>>, vector<168x8xf32>
    tpu.vector_store %arg13[%c0_264, %c0_265], %260 {strides = array<i32>} : memref<168x8xf32, #tpu.memory_space<vmem>>, vector<168x8xf32>,
    %c0_266 = arith.constant 0 : index
    %c0_267 = arith.constant 0 : index
    %262 = vector.load %arg13[%c0_266, %c0_267] : memref<168x8xf32, #tpu.memory_space<vmem>>, vector<14x8xf32>
    %263 = vector.extract_strided_slice %262 {offsets = [0, 0], sizes = [12, 8], strides = [1, 1]} : vector<14x8xf32> to vector<12x8xf32>
    %c0_268 = arith.constant 0 : index
    %c0_269 = arith.constant 0 : index
    %264 = vector.load %arg14[%c0_268, %c0_269] : memref<96x72xf32, #tpu.memory_space<vmem>>, vector<12x8xf32>
    tpu.vector_store %arg14[%c0_268, %c0_269], %263 {strides = array<i32>} : memref<96x72xf32, #tpu.memory_space<vmem>>, vector<12x8xf32>,
    %265 = vector.extract_strided_slice %262 {offsets = [1, 0], sizes = [12, 8], strides = [1, 1]} : vector<14x8xf32> to vector<12x8xf32>
    %c0_270 = arith.constant 0 : index
    %c8_271 = arith.constant 8 : index
    %266 = vector.load %arg14[%c0_270, %c8_271] : memref<96x72xf32, #tpu.memory_space<vmem>>, vector<12x8xf32>
    tpu.vector_store %arg14[%c0_270, %c8_271], %265 {strides = array<i32>} : memref<96x72xf32, #tpu.memory_space<vmem>>, vector<12x8xf32>,
    %267 = vector.extract_strided_slice %262 {offsets = [2, 0], sizes = [12, 8], strides = [1, 1]} : vector<14x8xf32> to vector<12x8xf32>
    %c0_272 = arith.constant 0 : index
    %c16_273 = arith.constant 16 : index
    %268 = vector.load %arg14[%c0_272, %c16_273] : memref<96x72xf32, #tpu.memory_space<vmem>>, vector<12x8xf32>
    tpu.vector_store %arg14[%c0_272, %c16_273], %267 {strides = array<i32>} : memref<96x72xf32, #tpu.memory_space<vmem>>, vector<12x8xf32>,
    %c14_274 = arith.constant 14 : index
    %c0_275 = arith.constant 0 : index
    %269 = vector.load %arg13[%c14_274, %c0_275] : memref<168x8xf32, #tpu.memory_space<vmem>>, vector<14x8xf32>
    %270 = vector.extract_strided_slice %269 {offsets = [0, 0], sizes = [12, 8], strides = [1, 1]} : vector<14x8xf32> to vector<12x8xf32>
    %c0_276 = arith.constant 0 : index
    %c24_277 = arith.constant 24 : index
    %271 = vector.load %arg14[%c0_276, %c24_277] : memref<96x72xf32, #tpu.memory_space<vmem>>, vector<12x8xf32>
    tpu.vector_store %arg14[%c0_276, %c24_277], %270 {strides = array<i32>} : memref<96x72xf32, #tpu.memory_space<vmem>>, vector<12x8xf32>,
    %272 = vector.extract_strided_slice %269 {offsets = [1, 0], sizes = [12, 8], strides = [1, 1]} : vector<14x8xf32> to vector<12x8xf32>
    %c0_278 = arith.constant 0 : index
    %c32_279 = arith.constant 32 : index
    %273 = vector.load %arg14[%c0_278, %c32_279] : memref<96x72xf32, #tpu.memory_space<vmem>>, vector<12x8xf32>
    tpu.vector_store %arg14[%c0_278, %c32_279], %272 {strides = array<i32>} : memref<96x72xf32, #tpu.memory_space<vmem>>, vector<12x8xf32>,
    %274 = vector.extract_strided_slice %269 {offsets = [2, 0], sizes = [12, 8], strides = [1, 1]} : vector<14x8xf32> to vector<12x8xf32>
    %c0_280 = arith.constant 0 : index
    %c40 = arith.constant 40 : index
    %275 = vector.load %arg14[%c0_280, %c40] : memref<96x72xf32, #tpu.memory_space<vmem>>, vector<12x8xf32>
    tpu.vector_store %arg14[%c0_280, %c40], %274 {strides = array<i32>} : memref<96x72xf32, #tpu.memory_space<vmem>>, vector<12x8xf32>,
    %c28_281 = arith.constant 28 : index
    %c0_282 = arith.constant 0 : index
    %276 = vector.load %arg13[%c28_281, %c0_282] : memref<168x8xf32, #tpu.memory_space<vmem>>, vector<14x8xf32>
    %277 = vector.extract_strided_slice %276 {offsets = [0, 0], sizes = [12, 8], strides = [1, 1]} : vector<14x8xf32> to vector<12x8xf32>
    %c0_283 = arith.constant 0 : index
    %c48_284 = arith.constant 48 : index
    %278 = vector.load %arg14[%c0_283, %c48_284] : memref<96x72xf32, #tpu.memory_space<vmem>>, vector<12x8xf32>
    tpu.vector_store %arg14[%c0_283, %c48_284], %277 {strides = array<i32>} : memref<96x72xf32, #tpu.memory_space<vmem>>, vector<12x8xf32>,
    %279 = vector.extract_strided_slice %276 {offsets = [1, 0], sizes = [12, 8], strides = [1, 1]} : vector<14x8xf32> to vector<12x8xf32>
    %c0_285 = arith.constant 0 : index
    %c56_286 = arith.constant 56 : index
    %280 = vector.load %arg14[%c0_285, %c56_286] : memref<96x72xf32, #tpu.memory_space<vmem>>, vector<12x8xf32>
    tpu.vector_store %arg14[%c0_285, %c56_286], %279 {strides = array<i32>} : memref<96x72xf32, #tpu.memory_space<vmem>>, vector<12x8xf32>,
    %281 = vector.extract_strided_slice %276 {offsets = [2, 0], sizes = [12, 8], strides = [1, 1]} : vector<14x8xf32> to vector<12x8xf32>
    %c0_287 = arith.constant 0 : index
    %c64_288 = arith.constant 64 : index
    %282 = vector.load %arg14[%c0_287, %c64_288] : memref<96x72xf32, #tpu.memory_space<vmem>>, vector<12x8xf32>
    tpu.vector_store %arg14[%c0_287, %c64_288], %281 {strides = array<i32>} : memref<96x72xf32, #tpu.memory_space<vmem>>, vector<12x8xf32>,
    %c14_289 = arith.constant 14 : index
    %c0_290 = arith.constant 0 : index
    %283 = vector.load %arg13[%c14_289, %c0_290] : memref<168x8xf32, #tpu.memory_space<vmem>>, vector<14x8xf32>
    %284 = vector.extract_strided_slice %283 {offsets = [0, 0], sizes = [12, 8], strides = [1, 1]} : vector<14x8xf32> to vector<12x8xf32>
    %c12_291 = arith.constant 12 : index
    %c0_292 = arith.constant 0 : index
    %285 = vector.load %arg14[%c12_291, %c0_292] : memref<96x72xf32, #tpu.memory_space<vmem>>, vector<12x8xf32>
    tpu.vector_store %arg14[%c12_291, %c0_292], %284 {strides = array<i32>} : memref<96x72xf32, #tpu.memory_space<vmem>>, vector<12x8xf32>,
    %286 = vector.extract_strided_slice %283 {offsets = [1, 0], sizes = [12, 8], strides = [1, 1]} : vector<14x8xf32> to vector<12x8xf32>
    %c12_293 = arith.constant 12 : index
    %c8_294 = arith.constant 8 : index
    %287 = vector.load %arg14[%c12_293, %c8_294] : memref<96x72xf32, #tpu.memory_space<vmem>>, vector<12x8xf32>
    tpu.vector_store %arg14[%c12_293, %c8_294], %286 {strides = array<i32>} : memref<96x72xf32, #tpu.memory_space<vmem>>, vector<12x8xf32>,
    %288 = vector.extract_strided_slice %283 {offsets = [2, 0], sizes = [12, 8], strides = [1, 1]} : vector<14x8xf32> to vector<12x8xf32>
    %c12_295 = arith.constant 12 : index
    %c16_296 = arith.constant 16 : index
    %289 = vector.load %arg14[%c12_295, %c16_296] : memref<96x72xf32, #tpu.memory_space<vmem>>, vector<12x8xf32>
    tpu.vector_store %arg14[%c12_295, %c16_296], %288 {strides = array<i32>} : memref<96x72xf32, #tpu.memory_space<vmem>>, vector<12x8xf32>,
    %c28_297 = arith.constant 28 : index
    %c0_298 = arith.constant 0 : index
    %290 = vector.load %arg13[%c28_297, %c0_298] : memref<168x8xf32, #tpu.memory_space<vmem>>, vector<14x8xf32>
    %291 = vector.extract_strided_slice %290 {offsets = [0, 0], sizes = [12, 8], strides = [1, 1]} : vector<14x8xf32> to vector<12x8xf32>
    %c12_299 = arith.constant 12 : index
    %c24_300 = arith.constant 24 : index
    %292 = vector.load %arg14[%c12_299, %c24_300] : memref<96x72xf32, #tpu.memory_space<vmem>>, vector<12x8xf32>
    tpu.vector_store %arg14[%c12_299, %c24_300], %291 {strides = array<i32>} : memref<96x72xf32, #tpu.memory_space<vmem>>, vector<12x8xf32>,
    %293 = vector.extract_strided_slice %290 {offsets = [1, 0], sizes = [12, 8], strides = [1, 1]} : vector<14x8xf32> to vector<12x8xf32>
    %c12_301 = arith.constant 12 : index
    %c32_302 = arith.constant 32 : index
    %294 = vector.load %arg14[%c12_301, %c32_302] : memref<96x72xf32, #tpu.memory_space<vmem>>, vector<12x8xf32>
    tpu.vector_store %arg14[%c12_301, %c32_302], %293 {strides = array<i32>} : memref<96x72xf32, #tpu.memory_space<vmem>>, vector<12x8xf32>,
    %295 = vector.extract_strided_slice %290 {offsets = [2, 0], sizes = [12, 8], strides = [1, 1]} : vector<14x8xf32> to vector<12x8xf32>
    %c12_303 = arith.constant 12 : index
    %c40_304 = arith.constant 40 : index
    %296 = vector.load %arg14[%c12_303, %c40_304] : memref<96x72xf32, #tpu.memory_space<vmem>>, vector<12x8xf32>
    tpu.vector_store %arg14[%c12_303, %c40_304], %295 {strides = array<i32>} : memref<96x72xf32, #tpu.memory_space<vmem>>, vector<12x8xf32>,
    %c42_305 = arith.constant 42 : index
    %c0_306 = arith.constant 0 : index
    %297 = vector.load %arg13[%c42_305, %c0_306] : memref<168x8xf32, #tpu.memory_space<vmem>>, vector<14x8xf32>
    %298 = vector.extract_strided_slice %297 {offsets = [0, 0], sizes = [12, 8], strides = [1, 1]} : vector<14x8xf32> to vector<12x8xf32>
    %c12_307 = arith.constant 12 : index
    %c48_308 = arith.constant 48 : index
    %299 = vector.load %arg14[%c12_307, %c48_308] : memref<96x72xf32, #tpu.memory_space<vmem>>, vector<12x8xf32>
    tpu.vector_store %arg14[%c12_307, %c48_308], %298 {strides = array<i32>} : memref<96x72xf32, #tpu.memory_space<vmem>>, vector<12x8xf32>,
    %300 = vector.extract_strided_slice %297 {offsets = [1, 0], sizes = [12, 8], strides = [1, 1]} : vector<14x8xf32> to vector<12x8xf32>
    %c12_309 = arith.constant 12 : index
    %c56_310 = arith.constant 56 : index
    %301 = vector.load %arg14[%c12_309, %c56_310] : memref<96x72xf32, #tpu.memory_space<vmem>>, vector<12x8xf32>
    tpu.vector_store %arg14[%c12_309, %c56_310], %300 {strides = array<i32>} : memref<96x72xf32, #tpu.memory_space<vmem>>, vector<12x8xf32>,
    %302 = vector.extract_strided_slice %297 {offsets = [2, 0], sizes = [12, 8], strides = [1, 1]} : vector<14x8xf32> to vector<12x8xf32>
    %c12_311 = arith.constant 12 : index
    %c64_312 = arith.constant 64 : index
    %303 = vector.load %arg14[%c12_311, %c64_312] : memref<96x72xf32, #tpu.memory_space<vmem>>, vector<12x8xf32>
    tpu.vector_store %arg14[%c12_311, %c64_312], %302 {strides = array<i32>} : memref<96x72xf32, #tpu.memory_space<vmem>>, vector<12x8xf32>,
    %c28_313 = arith.constant 28 : index
    %c0_314 = arith.constant 0 : index
    %304 = vector.load %arg13[%c28_313, %c0_314] : memref<168x8xf32, #tpu.memory_space<vmem>>, vector<14x8xf32>
    %305 = vector.extract_strided_slice %304 {offsets = [0, 0], sizes = [12, 8], strides = [1, 1]} : vector<14x8xf32> to vector<12x8xf32>
    %c24_315 = arith.constant 24 : index
    %c0_316 = arith.constant 0 : index
    %306 = vector.load %arg14[%c24_315, %c0_316] : memref<96x72xf32, #tpu.memory_space<vmem>>, vector<12x8xf32>
    tpu.vector_store %arg14[%c24_315, %c0_316], %305 {strides = array<i32>} : memref<96x72xf32, #tpu.memory_space<vmem>>, vector<12x8xf32>,
    %307 = vector.extract_strided_slice %304 {offsets = [1, 0], sizes = [12, 8], strides = [1, 1]} : vector<14x8xf32> to vector<12x8xf32>
    %c24_317 = arith.constant 24 : index
    %c8_318 = arith.constant 8 : index
    %308 = vector.load %arg14[%c24_317, %c8_318] : memref<96x72xf32, #tpu.memory_space<vmem>>, vector<12x8xf32>
    tpu.vector_store %arg14[%c24_317, %c8_318], %307 {strides = array<i32>} : memref<96x72xf32, #tpu.memory_space<vmem>>, vector<12x8xf32>,
    %309 = vector.extract_strided_slice %304 {offsets = [2, 0], sizes = [12, 8], strides = [1, 1]} : vector<14x8xf32> to vector<12x8xf32>
    %c24_319 = arith.constant 24 : index
    %c16_320 = arith.constant 16 : index
    %310 = vector.load %arg14[%c24_319, %c16_320] : memref<96x72xf32, #tpu.memory_space<vmem>>, vector<12x8xf32>
    tpu.vector_store %arg14[%c24_319, %c16_320], %309 {strides = array<i32>} : memref<96x72xf32, #tpu.memory_space<vmem>>, vector<12x8xf32>,
    %c42_321 = arith.constant 42 : index
    %c0_322 = arith.constant 0 : index
    %311 = vector.load %arg13[%c42_321, %c0_322] : memref<168x8xf32, #tpu.memory_space<vmem>>, vector<14x8xf32>
    %312 = vector.extract_strided_slice %311 {offsets = [0, 0], sizes = [12, 8], strides = [1, 1]} : vector<14x8xf32> to vector<12x8xf32>
    %c24_323 = arith.constant 24 : index
    %c24_324 = arith.constant 24 : index
    %313 = vector.load %arg14[%c24_323, %c24_324] : memref<96x72xf32, #tpu.memory_space<vmem>>, vector<12x8xf32>
    tpu.vector_store %arg14[%c24_323, %c24_324], %312 {strides = array<i32>} : memref<96x72xf32, #tpu.memory_space<vmem>>, vector<12x8xf32>,
    %314 = vector.extract_strided_slice %311 {offsets = [1, 0], sizes = [12, 8], strides = [1, 1]} : vector<14x8xf32> to vector<12x8xf32>
    %c24_325 = arith.constant 24 : index
    %c32_326 = arith.constant 32 : index
    %315 = vector.load %arg14[%c24_325, %c32_326] : memref<96x72xf32, #tpu.memory_space<vmem>>, vector<12x8xf32>
    tpu.vector_store %arg14[%c24_325, %c32_326], %314 {strides = array<i32>} : memref<96x72xf32, #tpu.memory_space<vmem>>, vector<12x8xf32>,
    %316 = vector.extract_strided_slice %311 {offsets = [2, 0], sizes = [12, 8], strides = [1, 1]} : vector<14x8xf32> to vector<12x8xf32>
    %c24_327 = arith.constant 24 : index
    %c40_328 = arith.constant 40 : index
    %317 = vector.load %arg14[%c24_327, %c40_328] : memref<96x72xf32, #tpu.memory_space<vmem>>, vector<12x8xf32>
    tpu.vector_store %arg14[%c24_327, %c40_328], %316 {strides = array<i32>} : memref<96x72xf32, #tpu.memory_space<vmem>>, vector<12x8xf32>,
    %c56_329 = arith.constant 56 : index
    %c0_330 = arith.constant 0 : index
    %318 = vector.load %arg13[%c56_329, %c0_330] : memref<168x8xf32, #tpu.memory_space<vmem>>, vector<14x8xf32>
    %319 = vector.extract_strided_slice %318 {offsets = [0, 0], sizes = [12, 8], strides = [1, 1]} : vector<14x8xf32> to vector<12x8xf32>
    %c24_331 = arith.constant 24 : index
    %c48_332 = arith.constant 48 : index
    %320 = vector.load %arg14[%c24_331, %c48_332] : memref<96x72xf32, #tpu.memory_space<vmem>>, vector<12x8xf32>
    tpu.vector_store %arg14[%c24_331, %c48_332], %319 {strides = array<i32>} : memref<96x72xf32, #tpu.memory_space<vmem>>, vector<12x8xf32>,
    %321 = vector.extract_strided_slice %318 {offsets = [1, 0], sizes = [12, 8], strides = [1, 1]} : vector<14x8xf32> to vector<12x8xf32>
    %c24_333 = arith.constant 24 : index
    %c56_334 = arith.constant 56 : index
    %322 = vector.load %arg14[%c24_333, %c56_334] : memref<96x72xf32, #tpu.memory_space<vmem>>, vector<12x8xf32>
    tpu.vector_store %arg14[%c24_333, %c56_334], %321 {strides = array<i32>} : memref<96x72xf32, #tpu.memory_space<vmem>>, vector<12x8xf32>,
    %323 = vector.extract_strided_slice %318 {offsets = [2, 0], sizes = [12, 8], strides = [1, 1]} : vector<14x8xf32> to vector<12x8xf32>
    %c24_335 = arith.constant 24 : index
    %c64_336 = arith.constant 64 : index
    %324 = vector.load %arg14[%c24_335, %c64_336] : memref<96x72xf32, #tpu.memory_space<vmem>>, vector<12x8xf32>
    tpu.vector_store %arg14[%c24_335, %c64_336], %323 {strides = array<i32>} : memref<96x72xf32, #tpu.memory_space<vmem>>, vector<12x8xf32>,
    %c42_337 = arith.constant 42 : index
    %c0_338 = arith.constant 0 : index
    %325 = vector.load %arg13[%c42_337, %c0_338] : memref<168x8xf32, #tpu.memory_space<vmem>>, vector<14x8xf32>
    %326 = vector.extract_strided_slice %325 {offsets = [0, 0], sizes = [12, 8], strides = [1, 1]} : vector<14x8xf32> to vector<12x8xf32>
    %c36 = arith.constant 36 : index
    %c0_339 = arith.constant 0 : index
    %327 = vector.load %arg14[%c36, %c0_339] : memref<96x72xf32, #tpu.memory_space<vmem>>, vector<12x8xf32>
    tpu.vector_store %arg14[%c36, %c0_339], %326 {strides = array<i32>} : memref<96x72xf32, #tpu.memory_space<vmem>>, vector<12x8xf32>,
    %328 = vector.extract_strided_slice %325 {offsets = [1, 0], sizes = [12, 8], strides = [1, 1]} : vector<14x8xf32> to vector<12x8xf32>
    %c36_340 = arith.constant 36 : index
    %c8_341 = arith.constant 8 : index
    %329 = vector.load %arg14[%c36_340, %c8_341] : memref<96x72xf32, #tpu.memory_space<vmem>>, vector<12x8xf32>
    tpu.vector_store %arg14[%c36_340, %c8_341], %328 {strides = array<i32>} : memref<96x72xf32, #tpu.memory_space<vmem>>, vector<12x8xf32>,
    %330 = vector.extract_strided_slice %325 {offsets = [2, 0], sizes = [12, 8], strides = [1, 1]} : vector<14x8xf32> to vector<12x8xf32>
    %c36_342 = arith.constant 36 : index
    %c16_343 = arith.constant 16 : index
    %331 = vector.load %arg14[%c36_342, %c16_343] : memref<96x72xf32, #tpu.memory_space<vmem>>, vector<12x8xf32>
    tpu.vector_store %arg14[%c36_342, %c16_343], %330 {strides = array<i32>} : memref<96x72xf32, #tpu.memory_space<vmem>>, vector<12x8xf32>,
    %c56_344 = arith.constant 56 : index
    %c0_345 = arith.constant 0 : index
    %332 = vector.load %arg13[%c56_344, %c0_345] : memref<168x8xf32, #tpu.memory_space<vmem>>, vector<14x8xf32>
    %333 = vector.extract_strided_slice %332 {offsets = [0, 0], sizes = [12, 8], strides = [1, 1]} : vector<14x8xf32> to vector<12x8xf32>
    %c36_346 = arith.constant 36 : index
    %c24_347 = arith.constant 24 : index
    %334 = vector.load %arg14[%c36_346, %c24_347] : memref<96x72xf32, #tpu.memory_space<vmem>>, vector<12x8xf32>
    tpu.vector_store %arg14[%c36_346, %c24_347], %333 {strides = array<i32>} : memref<96x72xf32, #tpu.memory_space<vmem>>, vector<12x8xf32>,
    %335 = vector.extract_strided_slice %332 {offsets = [1, 0], sizes = [12, 8], strides = [1, 1]} : vector<14x8xf32> to vector<12x8xf32>
    %c36_348 = arith.constant 36 : index
    %c32_349 = arith.constant 32 : index
    %336 = vector.load %arg14[%c36_348, %c32_349] : memref<96x72xf32, #tpu.memory_space<vmem>>, vector<12x8xf32>
    tpu.vector_store %arg14[%c36_348, %c32_349], %335 {strides = array<i32>} : memref<96x72xf32, #tpu.memory_space<vmem>>, vector<12x8xf32>,
    %337 = vector.extract_strided_slice %332 {offsets = [2, 0], sizes = [12, 8], strides = [1, 1]} : vector<14x8xf32> to vector<12x8xf32>
    %c36_350 = arith.constant 36 : index
    %c40_351 = arith.constant 40 : index
    %338 = vector.load %arg14[%c36_350, %c40_351] : memref<96x72xf32, #tpu.memory_space<vmem>>, vector<12x8xf32>
    tpu.vector_store %arg14[%c36_350, %c40_351], %337 {strides = array<i32>} : memref<96x72xf32, #tpu.memory_space<vmem>>, vector<12x8xf32>,
    %c70_352 = arith.constant 70 : index
    %c0_353 = arith.constant 0 : index
    %339 = vector.load %arg13[%c70_352, %c0_353] : memref<168x8xf32, #tpu.memory_space<vmem>>, vector<14x8xf32>
    %340 = vector.extract_strided_slice %339 {offsets = [0, 0], sizes = [12, 8], strides = [1, 1]} : vector<14x8xf32> to vector<12x8xf32>
    %c36_354 = arith.constant 36 : index
    %c48_355 = arith.constant 48 : index
    %341 = vector.load %arg14[%c36_354, %c48_355] : memref<96x72xf32, #tpu.memory_space<vmem>>, vector<12x8xf32>
    tpu.vector_store %arg14[%c36_354, %c48_355], %340 {strides = array<i32>} : memref<96x72xf32, #tpu.memory_space<vmem>>, vector<12x8xf32>,
    %342 = vector.extract_strided_slice %339 {offsets = [1, 0], sizes = [12, 8], strides = [1, 1]} : vector<14x8xf32> to vector<12x8xf32>
    %c36_356 = arith.constant 36 : index
    %c56_357 = arith.constant 56 : index
    %343 = vector.load %arg14[%c36_356, %c56_357] : memref<96x72xf32, #tpu.memory_space<vmem>>, vector<12x8xf32>
    tpu.vector_store %arg14[%c36_356, %c56_357], %342 {strides = array<i32>} : memref<96x72xf32, #tpu.memory_space<vmem>>, vector<12x8xf32>,
    %344 = vector.extract_strided_slice %339 {offsets = [2, 0], sizes = [12, 8], strides = [1, 1]} : vector<14x8xf32> to vector<12x8xf32>
    %c36_358 = arith.constant 36 : index
    %c64_359 = arith.constant 64 : index
    %345 = vector.load %arg14[%c36_358, %c64_359] : memref<96x72xf32, #tpu.memory_space<vmem>>, vector<12x8xf32>
    tpu.vector_store %arg14[%c36_358, %c64_359], %344 {strides = array<i32>} : memref<96x72xf32, #tpu.memory_space<vmem>>, vector<12x8xf32>,
    %c84_360 = arith.constant 84 : index
    %c0_361 = arith.constant 0 : index
    %346 = vector.load %arg13[%c84_360, %c0_361] : memref<168x8xf32, #tpu.memory_space<vmem>>, vector<14x8xf32>
    %347 = vector.extract_strided_slice %346 {offsets = [0, 0], sizes = [12, 8], strides = [1, 1]} : vector<14x8xf32> to vector<12x8xf32>
    %c48_362 = arith.constant 48 : index
    %c0_363 = arith.constant 0 : index
    %348 = vector.load %arg14[%c48_362, %c0_363] : memref<96x72xf32, #tpu.memory_space<vmem>>, vector<12x8xf32>
    tpu.vector_store %arg14[%c48_362, %c0_363], %347 {strides = array<i32>} : memref<96x72xf32, #tpu.memory_space<vmem>>, vector<12x8xf32>,
    %349 = vector.extract_strided_slice %346 {offsets = [1, 0], sizes = [12, 8], strides = [1, 1]} : vector<14x8xf32> to vector<12x8xf32>
    %c48_364 = arith.constant 48 : index
    %c8_365 = arith.constant 8 : index
    %350 = vector.load %arg14[%c48_364, %c8_365] : memref<96x72xf32, #tpu.memory_space<vmem>>, vector<12x8xf32>
    tpu.vector_store %arg14[%c48_364, %c8_365], %349 {strides = array<i32>} : memref<96x72xf32, #tpu.memory_space<vmem>>, vector<12x8xf32>,
    %351 = vector.extract_strided_slice %346 {offsets = [2, 0], sizes = [12, 8], strides = [1, 1]} : vector<14x8xf32> to vector<12x8xf32>
    %c48_366 = arith.constant 48 : index
    %c16_367 = arith.constant 16 : index
    %352 = vector.load %arg14[%c48_366, %c16_367] : memref<96x72xf32, #tpu.memory_space<vmem>>, vector<12x8xf32>
    tpu.vector_store %arg14[%c48_366, %c16_367], %351 {strides = array<i32>} : memref<96x72xf32, #tpu.memory_space<vmem>>, vector<12x8xf32>,
    %c98_368 = arith.constant 98 : index
    %c0_369 = arith.constant 0 : index
    %353 = vector.load %arg13[%c98_368, %c0_369] : memref<168x8xf32, #tpu.memory_space<vmem>>, vector<14x8xf32>
    %354 = vector.extract_strided_slice %353 {offsets = [0, 0], sizes = [12, 8], strides = [1, 1]} : vector<14x8xf32> to vector<12x8xf32>
    %c48_370 = arith.constant 48 : index
    %c24_371 = arith.constant 24 : index
    %355 = vector.load %arg14[%c48_370, %c24_371] : memref<96x72xf32, #tpu.memory_space<vmem>>, vector<12x8xf32>
    tpu.vector_store %arg14[%c48_370, %c24_371], %354 {strides = array<i32>} : memref<96x72xf32, #tpu.memory_space<vmem>>, vector<12x8xf32>,
    %356 = vector.extract_strided_slice %353 {offsets = [1, 0], sizes = [12, 8], strides = [1, 1]} : vector<14x8xf32> to vector<12x8xf32>
    %c48_372 = arith.constant 48 : index
    %c32_373 = arith.constant 32 : index
    %357 = vector.load %arg14[%c48_372, %c32_373] : memref<96x72xf32, #tpu.memory_space<vmem>>, vector<12x8xf32>
    tpu.vector_store %arg14[%c48_372, %c32_373], %356 {strides = array<i32>} : memref<96x72xf32, #tpu.memory_space<vmem>>, vector<12x8xf32>,
    %358 = vector.extract_strided_slice %353 {offsets = [2, 0], sizes = [12, 8], strides = [1, 1]} : vector<14x8xf32> to vector<12x8xf32>
    %c48_374 = arith.constant 48 : index
    %c40_375 = arith.constant 40 : index
    %359 = vector.load %arg14[%c48_374, %c40_375] : memref<96x72xf32, #tpu.memory_space<vmem>>, vector<12x8xf32>
    tpu.vector_store %arg14[%c48_374, %c40_375], %358 {strides = array<i32>} : memref<96x72xf32, #tpu.memory_space<vmem>>, vector<12x8xf32>,
    %c112_376 = arith.constant 112 : index
    %c0_377 = arith.constant 0 : index
    %360 = vector.load %arg13[%c112_376, %c0_377] : memref<168x8xf32, #tpu.memory_space<vmem>>, vector<14x8xf32>
    %361 = vector.extract_strided_slice %360 {offsets = [0, 0], sizes = [12, 8], strides = [1, 1]} : vector<14x8xf32> to vector<12x8xf32>
    %c48_378 = arith.constant 48 : index
    %c48_379 = arith.constant 48 : index
    %362 = vector.load %arg14[%c48_378, %c48_379] : memref<96x72xf32, #tpu.memory_space<vmem>>, vector<12x8xf32>
    tpu.vector_store %arg14[%c48_378, %c48_379], %361 {strides = array<i32>} : memref<96x72xf32, #tpu.memory_space<vmem>>, vector<12x8xf32>,
    %363 = vector.extract_strided_slice %360 {offsets = [1, 0], sizes = [12, 8], strides = [1, 1]} : vector<14x8xf32> to vector<12x8xf32>
    %c48_380 = arith.constant 48 : index
    %c56_381 = arith.constant 56 : index
    %364 = vector.load %arg14[%c48_380, %c56_381] : memref<96x72xf32, #tpu.memory_space<vmem>>, vector<12x8xf32>
    tpu.vector_store %arg14[%c48_380, %c56_381], %363 {strides = array<i32>} : memref<96x72xf32, #tpu.memory_space<vmem>>, vector<12x8xf32>,
    %365 = vector.extract_strided_slice %360 {offsets = [2, 0], sizes = [12, 8], strides = [1, 1]} : vector<14x8xf32> to vector<12x8xf32>
    %c48_382 = arith.constant 48 : index
    %c64_383 = arith.constant 64 : index
    %366 = vector.load %arg14[%c48_382, %c64_383] : memref<96x72xf32, #tpu.memory_space<vmem>>, vector<12x8xf32>
    tpu.vector_store %arg14[%c48_382, %c64_383], %365 {strides = array<i32>} : memref<96x72xf32, #tpu.memory_space<vmem>>, vector<12x8xf32>,
    %c98_384 = arith.constant 98 : index
    %c0_385 = arith.constant 0 : index
    %367 = vector.load %arg13[%c98_384, %c0_385] : memref<168x8xf32, #tpu.memory_space<vmem>>, vector<14x8xf32>
    %368 = vector.extract_strided_slice %367 {offsets = [0, 0], sizes = [12, 8], strides = [1, 1]} : vector<14x8xf32> to vector<12x8xf32>
    %c60 = arith.constant 60 : index
    %c0_386 = arith.constant 0 : index
    %369 = vector.load %arg14[%c60, %c0_386] : memref<96x72xf32, #tpu.memory_space<vmem>>, vector<12x8xf32>
    tpu.vector_store %arg14[%c60, %c0_386], %368 {strides = array<i32>} : memref<96x72xf32, #tpu.memory_space<vmem>>, vector<12x8xf32>,
    %370 = vector.extract_strided_slice %367 {offsets = [1, 0], sizes = [12, 8], strides = [1, 1]} : vector<14x8xf32> to vector<12x8xf32>
    %c60_387 = arith.constant 60 : index
    %c8_388 = arith.constant 8 : index
    %371 = vector.load %arg14[%c60_387, %c8_388] : memref<96x72xf32, #tpu.memory_space<vmem>>, vector<12x8xf32>
    tpu.vector_store %arg14[%c60_387, %c8_388], %370 {strides = array<i32>} : memref<96x72xf32, #tpu.memory_space<vmem>>, vector<12x8xf32>,
    %372 = vector.extract_strided_slice %367 {offsets = [2, 0], sizes = [12, 8], strides = [1, 1]} : vector<14x8xf32> to vector<12x8xf32>
    %c60_389 = arith.constant 60 : index
    %c16_390 = arith.constant 16 : index
    %373 = vector.load %arg14[%c60_389, %c16_390] : memref<96x72xf32, #tpu.memory_space<vmem>>, vector<12x8xf32>
    tpu.vector_store %arg14[%c60_389, %c16_390], %372 {strides = array<i32>} : memref<96x72xf32, #tpu.memory_space<vmem>>, vector<12x8xf32>,
    %c112_391 = arith.constant 112 : index
    %c0_392 = arith.constant 0 : index
    %374 = vector.load %arg13[%c112_391, %c0_392] : memref<168x8xf32, #tpu.memory_space<vmem>>, vector<14x8xf32>
    %375 = vector.extract_strided_slice %374 {offsets = [0, 0], sizes = [12, 8], strides = [1, 1]} : vector<14x8xf32> to vector<12x8xf32>
    %c60_393 = arith.constant 60 : index
    %c24_394 = arith.constant 24 : index
    %376 = vector.load %arg14[%c60_393, %c24_394] : memref<96x72xf32, #tpu.memory_space<vmem>>, vector<12x8xf32>
    tpu.vector_store %arg14[%c60_393, %c24_394], %375 {strides = array<i32>} : memref<96x72xf32, #tpu.memory_space<vmem>>, vector<12x8xf32>,
    %377 = vector.extract_strided_slice %374 {offsets = [1, 0], sizes = [12, 8], strides = [1, 1]} : vector<14x8xf32> to vector<12x8xf32>
    %c60_395 = arith.constant 60 : index
    %c32_396 = arith.constant 32 : index
    %378 = vector.load %arg14[%c60_395, %c32_396] : memref<96x72xf32, #tpu.memory_space<vmem>>, vector<12x8xf32>
    tpu.vector_store %arg14[%c60_395, %c32_396], %377 {strides = array<i32>} : memref<96x72xf32, #tpu.memory_space<vmem>>, vector<12x8xf32>,
    %379 = vector.extract_strided_slice %374 {offsets = [2, 0], sizes = [12, 8], strides = [1, 1]} : vector<14x8xf32> to vector<12x8xf32>
    %c60_397 = arith.constant 60 : index
    %c40_398 = arith.constant 40 : index
    %380 = vector.load %arg14[%c60_397, %c40_398] : memref<96x72xf32, #tpu.memory_space<vmem>>, vector<12x8xf32>
    tpu.vector_store %arg14[%c60_397, %c40_398], %379 {strides = array<i32>} : memref<96x72xf32, #tpu.memory_space<vmem>>, vector<12x8xf32>,
    %c126_399 = arith.constant 126 : index
    %c0_400 = arith.constant 0 : index
    %381 = vector.load %arg13[%c126_399, %c0_400] : memref<168x8xf32, #tpu.memory_space<vmem>>, vector<14x8xf32>
    %382 = vector.extract_strided_slice %381 {offsets = [0, 0], sizes = [12, 8], strides = [1, 1]} : vector<14x8xf32> to vector<12x8xf32>
    %c60_401 = arith.constant 60 : index
    %c48_402 = arith.constant 48 : index
    %383 = vector.load %arg14[%c60_401, %c48_402] : memref<96x72xf32, #tpu.memory_space<vmem>>, vector<12x8xf32>
    tpu.vector_store %arg14[%c60_401, %c48_402], %382 {strides = array<i32>} : memref<96x72xf32, #tpu.memory_space<vmem>>, vector<12x8xf32>,
    %384 = vector.extract_strided_slice %381 {offsets = [1, 0], sizes = [12, 8], strides = [1, 1]} : vector<14x8xf32> to vector<12x8xf32>
    %c60_403 = arith.constant 60 : index
    %c56_404 = arith.constant 56 : index
    %385 = vector.load %arg14[%c60_403, %c56_404] : memref<96x72xf32, #tpu.memory_space<vmem>>, vector<12x8xf32>
    tpu.vector_store %arg14[%c60_403, %c56_404], %384 {strides = array<i32>} : memref<96x72xf32, #tpu.memory_space<vmem>>, vector<12x8xf32>,
    %386 = vector.extract_strided_slice %381 {offsets = [2, 0], sizes = [12, 8], strides = [1, 1]} : vector<14x8xf32> to vector<12x8xf32>
    %c60_405 = arith.constant 60 : index
    %c64_406 = arith.constant 64 : index
    %387 = vector.load %arg14[%c60_405, %c64_406] : memref<96x72xf32, #tpu.memory_space<vmem>>, vector<12x8xf32>
    tpu.vector_store %arg14[%c60_405, %c64_406], %386 {strides = array<i32>} : memref<96x72xf32, #tpu.memory_space<vmem>>, vector<12x8xf32>,
    %c112_407 = arith.constant 112 : index
    %c0_408 = arith.constant 0 : index
    %388 = vector.load %arg13[%c112_407, %c0_408] : memref<168x8xf32, #tpu.memory_space<vmem>>, vector<14x8xf32>
    %389 = vector.extract_strided_slice %388 {offsets = [0, 0], sizes = [12, 8], strides = [1, 1]} : vector<14x8xf32> to vector<12x8xf32>
    %c72 = arith.constant 72 : index
    %c0_409 = arith.constant 0 : index
    %390 = vector.load %arg14[%c72, %c0_409] : memref<96x72xf32, #tpu.memory_space<vmem>>, vector<12x8xf32>
    tpu.vector_store %arg14[%c72, %c0_409], %389 {strides = array<i32>} : memref<96x72xf32, #tpu.memory_space<vmem>>, vector<12x8xf32>,
    %391 = vector.extract_strided_slice %388 {offsets = [1, 0], sizes = [12, 8], strides = [1, 1]} : vector<14x8xf32> to vector<12x8xf32>
    %c72_410 = arith.constant 72 : index
    %c8_411 = arith.constant 8 : index
    %392 = vector.load %arg14[%c72_410, %c8_411] : memref<96x72xf32, #tpu.memory_space<vmem>>, vector<12x8xf32>
    tpu.vector_store %arg14[%c72_410, %c8_411], %391 {strides = array<i32>} : memref<96x72xf32, #tpu.memory_space<vmem>>, vector<12x8xf32>,
    %393 = vector.extract_strided_slice %388 {offsets = [2, 0], sizes = [12, 8], strides = [1, 1]} : vector<14x8xf32> to vector<12x8xf32>
    %c72_412 = arith.constant 72 : index
    %c16_413 = arith.constant 16 : index
    %394 = vector.load %arg14[%c72_412, %c16_413] : memref<96x72xf32, #tpu.memory_space<vmem>>, vector<12x8xf32>
    tpu.vector_store %arg14[%c72_412, %c16_413], %393 {strides = array<i32>} : memref<96x72xf32, #tpu.memory_space<vmem>>, vector<12x8xf32>,
    %c126_414 = arith.constant 126 : index
    %c0_415 = arith.constant 0 : index
    %395 = vector.load %arg13[%c126_414, %c0_415] : memref<168x8xf32, #tpu.memory_space<vmem>>, vector<14x8xf32>
    %396 = vector.extract_strided_slice %395 {offsets = [0, 0], sizes = [12, 8], strides = [1, 1]} : vector<14x8xf32> to vector<12x8xf32>
    %c72_416 = arith.constant 72 : index
    %c24_417 = arith.constant 24 : index
    %397 = vector.load %arg14[%c72_416, %c24_417] : memref<96x72xf32, #tpu.memory_space<vmem>>, vector<12x8xf32>
    tpu.vector_store %arg14[%c72_416, %c24_417], %396 {strides = array<i32>} : memref<96x72xf32, #tpu.memory_space<vmem>>, vector<12x8xf32>,
    %398 = vector.extract_strided_slice %395 {offsets = [1, 0], sizes = [12, 8], strides = [1, 1]} : vector<14x8xf32> to vector<12x8xf32>
    %c72_418 = arith.constant 72 : index
    %c32_419 = arith.constant 32 : index
    %399 = vector.load %arg14[%c72_418, %c32_419] : memref<96x72xf32, #tpu.memory_space<vmem>>, vector<12x8xf32>
    tpu.vector_store %arg14[%c72_418, %c32_419], %398 {strides = array<i32>} : memref<96x72xf32, #tpu.memory_space<vmem>>, vector<12x8xf32>,
    %400 = vector.extract_strided_slice %395 {offsets = [2, 0], sizes = [12, 8], strides = [1, 1]} : vector<14x8xf32> to vector<12x8xf32>
    %c72_420 = arith.constant 72 : index
    %c40_421 = arith.constant 40 : index
    %401 = vector.load %arg14[%c72_420, %c40_421] : memref<96x72xf32, #tpu.memory_space<vmem>>, vector<12x8xf32>
    tpu.vector_store %arg14[%c72_420, %c40_421], %400 {strides = array<i32>} : memref<96x72xf32, #tpu.memory_space<vmem>>, vector<12x8xf32>,
    %c140_422 = arith.constant 140 : index
    %c0_423 = arith.constant 0 : index
    %402 = vector.load %arg13[%c140_422, %c0_423] : memref<168x8xf32, #tpu.memory_space<vmem>>, vector<14x8xf32>
    %403 = vector.extract_strided_slice %402 {offsets = [0, 0], sizes = [12, 8], strides = [1, 1]} : vector<14x8xf32> to vector<12x8xf32>
    %c72_424 = arith.constant 72 : index
    %c48_425 = arith.constant 48 : index
    %404 = vector.load %arg14[%c72_424, %c48_425] : memref<96x72xf32, #tpu.memory_space<vmem>>, vector<12x8xf32>
    tpu.vector_store %arg14[%c72_424, %c48_425], %403 {strides = array<i32>} : memref<96x72xf32, #tpu.memory_space<vmem>>, vector<12x8xf32>,
    %405 = vector.extract_strided_slice %402 {offsets = [1, 0], sizes = [12, 8], strides = [1, 1]} : vector<14x8xf32> to vector<12x8xf32>
    %c72_426 = arith.constant 72 : index
    %c56_427 = arith.constant 56 : index
    %406 = vector.load %arg14[%c72_426, %c56_427] : memref<96x72xf32, #tpu.memory_space<vmem>>, vector<12x8xf32>
    tpu.vector_store %arg14[%c72_426, %c56_427], %405 {strides = array<i32>} : memref<96x72xf32, #tpu.memory_space<vmem>>, vector<12x8xf32>,
    %407 = vector.extract_strided_slice %402 {offsets = [2, 0], sizes = [12, 8], strides = [1, 1]} : vector<14x8xf32> to vector<12x8xf32>
    %c72_428 = arith.constant 72 : index
    %c64_429 = arith.constant 64 : index
    %408 = vector.load %arg14[%c72_428, %c64_429] : memref<96x72xf32, #tpu.memory_space<vmem>>, vector<12x8xf32>
    tpu.vector_store %arg14[%c72_428, %c64_429], %407 {strides = array<i32>} : memref<96x72xf32, #tpu.memory_space<vmem>>, vector<12x8xf32>,
    %c126_430 = arith.constant 126 : index
    %c0_431 = arith.constant 0 : index
    %409 = vector.load %arg13[%c126_430, %c0_431] : memref<168x8xf32, #tpu.memory_space<vmem>>, vector<14x8xf32>
    %410 = vector.extract_strided_slice %409 {offsets = [0, 0], sizes = [12, 8], strides = [1, 1]} : vector<14x8xf32> to vector<12x8xf32>
    %c84_432 = arith.constant 84 : index
    %c0_433 = arith.constant 0 : index
    %411 = vector.load %arg14[%c84_432, %c0_433] : memref<96x72xf32, #tpu.memory_space<vmem>>, vector<12x8xf32>
    tpu.vector_store %arg14[%c84_432, %c0_433], %410 {strides = array<i32>} : memref<96x72xf32, #tpu.memory_space<vmem>>, vector<12x8xf32>,
    %412 = vector.extract_strided_slice %409 {offsets = [1, 0], sizes = [12, 8], strides = [1, 1]} : vector<14x8xf32> to vector<12x8xf32>
    %c84_434 = arith.constant 84 : index
    %c8_435 = arith.constant 8 : index
    %413 = vector.load %arg14[%c84_434, %c8_435] : memref<96x72xf32, #tpu.memory_space<vmem>>, vector<12x8xf32>
    tpu.vector_store %arg14[%c84_434, %c8_435], %412 {strides = array<i32>} : memref<96x72xf32, #tpu.memory_space<vmem>>, vector<12x8xf32>,
    %414 = vector.extract_strided_slice %409 {offsets = [2, 0], sizes = [12, 8], strides = [1, 1]} : vector<14x8xf32> to vector<12x8xf32>
    %c84_436 = arith.constant 84 : index
    %c16_437 = arith.constant 16 : index
    %415 = vector.load %arg14[%c84_436, %c16_437] : memref<96x72xf32, #tpu.memory_space<vmem>>, vector<12x8xf32>
    tpu.vector_store %arg14[%c84_436, %c16_437], %414 {strides = array<i32>} : memref<96x72xf32, #tpu.memory_space<vmem>>, vector<12x8xf32>,
    %c140_438 = arith.constant 140 : index
    %c0_439 = arith.constant 0 : index
    %416 = vector.load %arg13[%c140_438, %c0_439] : memref<168x8xf32, #tpu.memory_space<vmem>>, vector<14x8xf32>
    %417 = vector.extract_strided_slice %416 {offsets = [0, 0], sizes = [12, 8], strides = [1, 1]} : vector<14x8xf32> to vector<12x8xf32>
    %c84_440 = arith.constant 84 : index
    %c24_441 = arith.constant 24 : index
    %418 = vector.load %arg14[%c84_440, %c24_441] : memref<96x72xf32, #tpu.memory_space<vmem>>, vector<12x8xf32>
    tpu.vector_store %arg14[%c84_440, %c24_441], %417 {strides = array<i32>} : memref<96x72xf32, #tpu.memory_space<vmem>>, vector<12x8xf32>,
    %419 = vector.extract_strided_slice %416 {offsets = [1, 0], sizes = [12, 8], strides = [1, 1]} : vector<14x8xf32> to vector<12x8xf32>
    %c84_442 = arith.constant 84 : index
    %c32_443 = arith.constant 32 : index
    %420 = vector.load %arg14[%c84_442, %c32_443] : memref<96x72xf32, #tpu.memory_space<vmem>>, vector<12x8xf32>
    tpu.vector_store %arg14[%c84_442, %c32_443], %419 {strides = array<i32>} : memref<96x72xf32, #tpu.memory_space<vmem>>, vector<12x8xf32>,
    %421 = vector.extract_strided_slice %416 {offsets = [2, 0], sizes = [12, 8], strides = [1, 1]} : vector<14x8xf32> to vector<12x8xf32>
    %c84_444 = arith.constant 84 : index
    %c40_445 = arith.constant 40 : index
    %422 = vector.load %arg14[%c84_444, %c40_445] : memref<96x72xf32, #tpu.memory_space<vmem>>, vector<12x8xf32>
    tpu.vector_store %arg14[%c84_444, %c40_445], %421 {strides = array<i32>} : memref<96x72xf32, #tpu.memory_space<vmem>>, vector<12x8xf32>,
    %c154_446 = arith.constant 154 : index
    %c0_447 = arith.constant 0 : index
    %423 = vector.load %arg13[%c154_446, %c0_447] : memref<168x8xf32, #tpu.memory_space<vmem>>, vector<14x8xf32>
    %424 = vector.extract_strided_slice %423 {offsets = [0, 0], sizes = [12, 8], strides = [1, 1]} : vector<14x8xf32> to vector<12x8xf32>
    %c84_448 = arith.constant 84 : index
    %c48_449 = arith.constant 48 : index
    %425 = vector.load %arg14[%c84_448, %c48_449] : memref<96x72xf32, #tpu.memory_space<vmem>>, vector<12x8xf32>
    tpu.vector_store %arg14[%c84_448, %c48_449], %424 {strides = array<i32>} : memref<96x72xf32, #tpu.memory_space<vmem>>, vector<12x8xf32>,
    %426 = vector.extract_strided_slice %423 {offsets = [1, 0], sizes = [12, 8], strides = [1, 1]} : vector<14x8xf32> to vector<12x8xf32>
    %c84_450 = arith.constant 84 : index
    %c56_451 = arith.constant 56 : index
    %427 = vector.load %arg14[%c84_450, %c56_451] : memref<96x72xf32, #tpu.memory_space<vmem>>, vector<12x8xf32>
    tpu.vector_store %arg14[%c84_450, %c56_451], %426 {strides = array<i32>} : memref<96x72xf32, #tpu.memory_space<vmem>>, vector<12x8xf32>,
    %428 = vector.extract_strided_slice %423 {offsets = [2, 0], sizes = [12, 8], strides = [1, 1]} : vector<14x8xf32> to vector<12x8xf32>
    %c84_452 = arith.constant 84 : index
    %c64_453 = arith.constant 64 : index
    %429 = vector.load %arg14[%c84_452, %c64_453] : memref<96x72xf32, #tpu.memory_space<vmem>>, vector<12x8xf32>
    tpu.vector_store %arg14[%c84_452, %c64_453], %428 {strides = array<i32>} : memref<96x72xf32, #tpu.memory_space<vmem>>, vector<12x8xf32>,
    %c0_454 = arith.constant 0 : index
    %c0_455 = arith.constant 0 : index
    %430 = vector.load %arg14[%c0_454, %c0_455] : memref<96x72xf32, #tpu.memory_space<vmem>>, vector<96x72xf32>
    %431 = arith.truncf %430 : vector<96x72xf32> to vector<96x72xbf16>
    %c0_456 = arith.constant 0 : index
    %c0_457 = arith.constant 0 : index
    %432 = vector.load %arg3[%c0_456, %c0_457] : memref<72x16xbf16, #tpu.memory_space<vmem>>, vector<72x16xbf16>
    %cst_458 = arith.constant dense<0.000000e+00> : vector<96x16xf32>
    %433 = tpu.matmul %431, %432, %cst_458 {dimension_numbers = #tpu.dot_dimension_numbers<[1], [0], [0], [1], [0, 0, 1, 1], [], []>} : vector<96x72xbf16>, vector<72x16xbf16>, vector<96x16xf32> -> vector<96x16xf32>
    %c0_459 = arith.constant 0 : index
    %c0_460 = arith.constant 0 : index
    %434 = vector.load %arg4[%c0_459, %c0_460] : memref<1x16xf32, #tpu.memory_space<vmem>>, vector<1x16xf32>
    %435 = vector.broadcast %434 : vector<1x16xf32> to vector<96x16xf32>
    %436 = arith.addf %433, %435 : vector<96x16xf32>
    %cst_461 = arith.constant 0.000000e+00 : f32
    %437 = vector.broadcast %cst_461 : f32 to vector<96x16xf32>
    %438 = arith.maximumf %436, %437 : vector<96x16xf32>
    %439 = vector.extract_strided_slice %438 {offsets = [0, 0], sizes = [12, 16], strides = [1, 1]} : vector<96x16xf32> to vector<12x16xf32>
    %440 = vector.extract_strided_slice %438 {offsets = [12, 0], sizes = [12, 16], strides = [1, 1]} : vector<96x16xf32> to vector<12x16xf32>
    %441 = vector.extract_strided_slice %438 {offsets = [24, 0], sizes = [12, 16], strides = [1, 1]} : vector<96x16xf32> to vector<12x16xf32>
    %442 = vector.extract_strided_slice %438 {offsets = [36, 0], sizes = [12, 16], strides = [1, 1]} : vector<96x16xf32> to vector<12x16xf32>
    %443 = arith.maximumf %439, %440 : vector<12x16xf32>
    %444 = arith.maximumf %443, %441 : vector<12x16xf32>
    %445 = arith.maximumf %444, %442 : vector<12x16xf32>
    %cst_462 = arith.constant 0.000000e+00 : f32
    %446 = vector.broadcast %cst_462 : f32 to vector<1x256xf32>
    %447 = vector.extract_strided_slice %445 {offsets = [0, 0], sizes = [1, 16], strides = [1, 1]} : vector<12x16xf32> to vector<1x16xf32>
    %448 = arith.truncf %447 : vector<1x16xf32> to vector<1x16xbf16>
    %c0_463 = arith.constant 0 : index
    %c0_464 = arith.constant 0 : index
    %c0_465 = arith.constant 0 : index
    %449 = vector.load %arg5[%c0_463, %c0_464, %c0_465] : memref<12x16x256xbf16, #tpu.memory_space<vmem>>, vector<1x16x256xbf16>
    %450 = vector.shape_cast %449 : vector<1x16x256xbf16> to vector<16x256xbf16>
    %cst_466 = arith.constant dense<0.000000e+00> : vector<1x256xf32>
    %451 = tpu.matmul %448, %450, %cst_466 {dimension_numbers = #tpu.dot_dimension_numbers<[1], [0], [0], [1], [0, 0, 1, 1], [], []>} : vector<1x16xbf16>, vector<16x256xbf16>, vector<1x256xf32> -> vector<1x256xf32>
    %452 = arith.addf %446, %451 : vector<1x256xf32>
    %453 = vector.extract_strided_slice %445 {offsets = [1, 0], sizes = [1, 16], strides = [1, 1]} : vector<12x16xf32> to vector<1x16xf32>
    %454 = arith.truncf %453 : vector<1x16xf32> to vector<1x16xbf16>
    %c1 = arith.constant 1 : index
    %c0_467 = arith.constant 0 : index
    %c0_468 = arith.constant 0 : index
    %455 = vector.load %arg5[%c1, %c0_467, %c0_468] : memref<12x16x256xbf16, #tpu.memory_space<vmem>>, vector<1x16x256xbf16>
    %456 = vector.shape_cast %455 : vector<1x16x256xbf16> to vector<16x256xbf16>
    %cst_469 = arith.constant dense<0.000000e+00> : vector<1x256xf32>
    %457 = tpu.matmul %454, %456, %cst_469 {dimension_numbers = #tpu.dot_dimension_numbers<[1], [0], [0], [1], [0, 0, 1, 1], [], []>} : vector<1x16xbf16>, vector<16x256xbf16>, vector<1x256xf32> -> vector<1x256xf32>
    %458 = arith.addf %452, %457 : vector<1x256xf32>
    %459 = vector.extract_strided_slice %445 {offsets = [2, 0], sizes = [1, 16], strides = [1, 1]} : vector<12x16xf32> to vector<1x16xf32>
    %460 = arith.truncf %459 : vector<1x16xf32> to vector<1x16xbf16>
    %c2 = arith.constant 2 : index
    %c0_470 = arith.constant 0 : index
    %c0_471 = arith.constant 0 : index
    %461 = vector.load %arg5[%c2, %c0_470, %c0_471] : memref<12x16x256xbf16, #tpu.memory_space<vmem>>, vector<1x16x256xbf16>
    %462 = vector.shape_cast %461 : vector<1x16x256xbf16> to vector<16x256xbf16>
    %cst_472 = arith.constant dense<0.000000e+00> : vector<1x256xf32>
    %463 = tpu.matmul %460, %462, %cst_472 {dimension_numbers = #tpu.dot_dimension_numbers<[1], [0], [0], [1], [0, 0, 1, 1], [], []>} : vector<1x16xbf16>, vector<16x256xbf16>, vector<1x256xf32> -> vector<1x256xf32>
    %464 = arith.addf %458, %463 : vector<1x256xf32>
    %465 = vector.extract_strided_slice %445 {offsets = [3, 0], sizes = [1, 16], strides = [1, 1]} : vector<12x16xf32> to vector<1x16xf32>
    %466 = arith.truncf %465 : vector<1x16xf32> to vector<1x16xbf16>
    %c3 = arith.constant 3 : index
    %c0_473 = arith.constant 0 : index
    %c0_474 = arith.constant 0 : index
    %467 = vector.load %arg5[%c3, %c0_473, %c0_474] : memref<12x16x256xbf16, #tpu.memory_space<vmem>>, vector<1x16x256xbf16>
    %468 = vector.shape_cast %467 : vector<1x16x256xbf16> to vector<16x256xbf16>
    %cst_475 = arith.constant dense<0.000000e+00> : vector<1x256xf32>
    %469 = tpu.matmul %466, %468, %cst_475 {dimension_numbers = #tpu.dot_dimension_numbers<[1], [0], [0], [1], [0, 0, 1, 1], [], []>} : vector<1x16xbf16>, vector<16x256xbf16>, vector<1x256xf32> -> vector<1x256xf32>
    %470 = arith.addf %464, %469 : vector<1x256xf32>
    %471 = vector.extract_strided_slice %445 {offsets = [4, 0], sizes = [1, 16], strides = [1, 1]} : vector<12x16xf32> to vector<1x16xf32>
    %472 = arith.truncf %471 : vector<1x16xf32> to vector<1x16xbf16>
    %c4_476 = arith.constant 4 : index
    %c0_477 = arith.constant 0 : index
    %c0_478 = arith.constant 0 : index
    %473 = vector.load %arg5[%c4_476, %c0_477, %c0_478] : memref<12x16x256xbf16, #tpu.memory_space<vmem>>, vector<1x16x256xbf16>
    %474 = vector.shape_cast %473 : vector<1x16x256xbf16> to vector<16x256xbf16>
    %cst_479 = arith.constant dense<0.000000e+00> : vector<1x256xf32>
    %475 = tpu.matmul %472, %474, %cst_479 {dimension_numbers = #tpu.dot_dimension_numbers<[1], [0], [0], [1], [0, 0, 1, 1], [], []>} : vector<1x16xbf16>, vector<16x256xbf16>, vector<1x256xf32> -> vector<1x256xf32>
    %476 = arith.addf %470, %475 : vector<1x256xf32>
    %477 = vector.extract_strided_slice %445 {offsets = [5, 0], sizes = [1, 16], strides = [1, 1]} : vector<12x16xf32> to vector<1x16xf32>
    %478 = arith.truncf %477 : vector<1x16xf32> to vector<1x16xbf16>
    %c5 = arith.constant 5 : index
    %c0_480 = arith.constant 0 : index
    %c0_481 = arith.constant 0 : index
    %479 = vector.load %arg5[%c5, %c0_480, %c0_481] : memref<12x16x256xbf16, #tpu.memory_space<vmem>>, vector<1x16x256xbf16>
    %480 = vector.shape_cast %479 : vector<1x16x256xbf16> to vector<16x256xbf16>
    %cst_482 = arith.constant dense<0.000000e+00> : vector<1x256xf32>
    %481 = tpu.matmul %478, %480, %cst_482 {dimension_numbers = #tpu.dot_dimension_numbers<[1], [0], [0], [1], [0, 0, 1, 1], [], []>} : vector<1x16xbf16>, vector<16x256xbf16>, vector<1x256xf32> -> vector<1x256xf32>
    %482 = arith.addf %476, %481 : vector<1x256xf32>
    %483 = vector.extract_strided_slice %445 {offsets = [6, 0], sizes = [1, 16], strides = [1, 1]} : vector<12x16xf32> to vector<1x16xf32>
    %484 = arith.truncf %483 : vector<1x16xf32> to vector<1x16xbf16>
    %c6 = arith.constant 6 : index
    %c0_483 = arith.constant 0 : index
    %c0_484 = arith.constant 0 : index
    %485 = vector.load %arg5[%c6, %c0_483, %c0_484] : memref<12x16x256xbf16, #tpu.memory_space<vmem>>, vector<1x16x256xbf16>
    %486 = vector.shape_cast %485 : vector<1x16x256xbf16> to vector<16x256xbf16>
    %cst_485 = arith.constant dense<0.000000e+00> : vector<1x256xf32>
    %487 = tpu.matmul %484, %486, %cst_485 {dimension_numbers = #tpu.dot_dimension_numbers<[1], [0], [0], [1], [0, 0, 1, 1], [], []>} : vector<1x16xbf16>, vector<16x256xbf16>, vector<1x256xf32> -> vector<1x256xf32>
    %488 = arith.addf %482, %487 : vector<1x256xf32>
    %489 = vector.extract_strided_slice %445 {offsets = [7, 0], sizes = [1, 16], strides = [1, 1]} : vector<12x16xf32> to vector<1x16xf32>
    %490 = arith.truncf %489 : vector<1x16xf32> to vector<1x16xbf16>
    %c7 = arith.constant 7 : index
    %c0_486 = arith.constant 0 : index
    %c0_487 = arith.constant 0 : index
    %491 = vector.load %arg5[%c7, %c0_486, %c0_487] : memref<12x16x256xbf16, #tpu.memory_space<vmem>>, vector<1x16x256xbf16>
    %492 = vector.shape_cast %491 : vector<1x16x256xbf16> to vector<16x256xbf16>
    %cst_488 = arith.constant dense<0.000000e+00> : vector<1x256xf32>
    %493 = tpu.matmul %490, %492, %cst_488 {dimension_numbers = #tpu.dot_dimension_numbers<[1], [0], [0], [1], [0, 0, 1, 1], [], []>} : vector<1x16xbf16>, vector<16x256xbf16>, vector<1x256xf32> -> vector<1x256xf32>
    %494 = arith.addf %488, %493 : vector<1x256xf32>
    %495 = vector.extract_strided_slice %445 {offsets = [8, 0], sizes = [1, 16], strides = [1, 1]} : vector<12x16xf32> to vector<1x16xf32>
    %496 = arith.truncf %495 : vector<1x16xf32> to vector<1x16xbf16>
    %c8_489 = arith.constant 8 : index
    %c0_490 = arith.constant 0 : index
    %c0_491 = arith.constant 0 : index
    %497 = vector.load %arg5[%c8_489, %c0_490, %c0_491] : memref<12x16x256xbf16, #tpu.memory_space<vmem>>, vector<1x16x256xbf16>
    %498 = vector.shape_cast %497 : vector<1x16x256xbf16> to vector<16x256xbf16>
    %cst_492 = arith.constant dense<0.000000e+00> : vector<1x256xf32>
    %499 = tpu.matmul %496, %498, %cst_492 {dimension_numbers = #tpu.dot_dimension_numbers<[1], [0], [0], [1], [0, 0, 1, 1], [], []>} : vector<1x16xbf16>, vector<16x256xbf16>, vector<1x256xf32> -> vector<1x256xf32>
    %500 = arith.addf %494, %499 : vector<1x256xf32>
    %501 = vector.extract_strided_slice %445 {offsets = [9, 0], sizes = [1, 16], strides = [1, 1]} : vector<12x16xf32> to vector<1x16xf32>
    %502 = arith.truncf %501 : vector<1x16xf32> to vector<1x16xbf16>
    %c9 = arith.constant 9 : index
    %c0_493 = arith.constant 0 : index
    %c0_494 = arith.constant 0 : index
    %503 = vector.load %arg5[%c9, %c0_493, %c0_494] : memref<12x16x256xbf16, #tpu.memory_space<vmem>>, vector<1x16x256xbf16>
    %504 = vector.shape_cast %503 : vector<1x16x256xbf16> to vector<16x256xbf16>
    %cst_495 = arith.constant dense<0.000000e+00> : vector<1x256xf32>
    %505 = tpu.matmul %502, %504, %cst_495 {dimension_numbers = #tpu.dot_dimension_numbers<[1], [0], [0], [1], [0, 0, 1, 1], [], []>} : vector<1x16xbf16>, vector<16x256xbf16>, vector<1x256xf32> -> vector<1x256xf32>
    %506 = arith.addf %500, %505 : vector<1x256xf32>
    %507 = vector.extract_strided_slice %445 {offsets = [10, 0], sizes = [1, 16], strides = [1, 1]} : vector<12x16xf32> to vector<1x16xf32>
    %508 = arith.truncf %507 : vector<1x16xf32> to vector<1x16xbf16>
    %c10 = arith.constant 10 : index
    %c0_496 = arith.constant 0 : index
    %c0_497 = arith.constant 0 : index
    %509 = vector.load %arg5[%c10, %c0_496, %c0_497] : memref<12x16x256xbf16, #tpu.memory_space<vmem>>, vector<1x16x256xbf16>
    %510 = vector.shape_cast %509 : vector<1x16x256xbf16> to vector<16x256xbf16>
    %cst_498 = arith.constant dense<0.000000e+00> : vector<1x256xf32>
    %511 = tpu.matmul %508, %510, %cst_498 {dimension_numbers = #tpu.dot_dimension_numbers<[1], [0], [0], [1], [0, 0, 1, 1], [], []>} : vector<1x16xbf16>, vector<16x256xbf16>, vector<1x256xf32> -> vector<1x256xf32>
    %512 = arith.addf %506, %511 : vector<1x256xf32>
    %513 = vector.extract_strided_slice %445 {offsets = [11, 0], sizes = [1, 16], strides = [1, 1]} : vector<12x16xf32> to vector<1x16xf32>
    %514 = arith.truncf %513 : vector<1x16xf32> to vector<1x16xbf16>
    %c11 = arith.constant 11 : index
    %c0_499 = arith.constant 0 : index
    %c0_500 = arith.constant 0 : index
    %515 = vector.load %arg5[%c11, %c0_499, %c0_500] : memref<12x16x256xbf16, #tpu.memory_space<vmem>>, vector<1x16x256xbf16>
    %516 = vector.shape_cast %515 : vector<1x16x256xbf16> to vector<16x256xbf16>
    %cst_501 = arith.constant dense<0.000000e+00> : vector<1x256xf32>
    %517 = tpu.matmul %514, %516, %cst_501 {dimension_numbers = #tpu.dot_dimension_numbers<[1], [0], [0], [1], [0, 0, 1, 1], [], []>} : vector<1x16xbf16>, vector<16x256xbf16>, vector<1x256xf32> -> vector<1x256xf32>
    %518 = arith.addf %512, %517 : vector<1x256xf32>
    %c0_502 = arith.constant 0 : index
    %c0_503 = arith.constant 0 : index
    %519 = vector.load %arg6[%c0_502, %c0_503] : memref<1x256xf32, #tpu.memory_space<vmem>>, vector<1x256xf32>
    %520 = arith.addf %518, %519 : vector<1x256xf32>
    %cst_504 = arith.constant 0.000000e+00 : f32
    %521 = vector.broadcast %cst_504 : f32 to vector<1x256xf32>
    %522 = arith.maximumf %520, %521 : vector<1x256xf32>
    %523 = vector.extract_strided_slice %438 {offsets = [48, 0], sizes = [12, 16], strides = [1, 1]} : vector<96x16xf32> to vector<12x16xf32>
    %524 = vector.extract_strided_slice %438 {offsets = [60, 0], sizes = [12, 16], strides = [1, 1]} : vector<96x16xf32> to vector<12x16xf32>
    %525 = vector.extract_strided_slice %438 {offsets = [72, 0], sizes = [12, 16], strides = [1, 1]} : vector<96x16xf32> to vector<12x16xf32>
    %526 = vector.extract_strided_slice %438 {offsets = [84, 0], sizes = [12, 16], strides = [1, 1]} : vector<96x16xf32> to vector<12x16xf32>
    %527 = arith.maximumf %523, %524 : vector<12x16xf32>
    %528 = arith.maximumf %527, %525 : vector<12x16xf32>
    %529 = arith.maximumf %528, %526 : vector<12x16xf32>
    %cst_505 = arith.constant 0.000000e+00 : f32
    %530 = vector.broadcast %cst_505 : f32 to vector<1x256xf32>
    %531 = vector.extract_strided_slice %529 {offsets = [0, 0], sizes = [1, 16], strides = [1, 1]} : vector<12x16xf32> to vector<1x16xf32>
    %532 = arith.truncf %531 : vector<1x16xf32> to vector<1x16xbf16>
    %c0_506 = arith.constant 0 : index
    %c0_507 = arith.constant 0 : index
    %c0_508 = arith.constant 0 : index
    %533 = vector.load %arg5[%c0_506, %c0_507, %c0_508] : memref<12x16x256xbf16, #tpu.memory_space<vmem>>, vector<1x16x256xbf16>
    %534 = vector.shape_cast %533 : vector<1x16x256xbf16> to vector<16x256xbf16>
    %cst_509 = arith.constant dense<0.000000e+00> : vector<1x256xf32>
    %535 = tpu.matmul %532, %534, %cst_509 {dimension_numbers = #tpu.dot_dimension_numbers<[1], [0], [0], [1], [0, 0, 1, 1], [], []>} : vector<1x16xbf16>, vector<16x256xbf16>, vector<1x256xf32> -> vector<1x256xf32>
    %536 = arith.addf %530, %535 : vector<1x256xf32>
    %537 = vector.extract_strided_slice %529 {offsets = [1, 0], sizes = [1, 16], strides = [1, 1]} : vector<12x16xf32> to vector<1x16xf32>
    %538 = arith.truncf %537 : vector<1x16xf32> to vector<1x16xbf16>
    %c1_510 = arith.constant 1 : index
    %c0_511 = arith.constant 0 : index
    %c0_512 = arith.constant 0 : index
    %539 = vector.load %arg5[%c1_510, %c0_511, %c0_512] : memref<12x16x256xbf16, #tpu.memory_space<vmem>>, vector<1x16x256xbf16>
    %540 = vector.shape_cast %539 : vector<1x16x256xbf16> to vector<16x256xbf16>
    %cst_513 = arith.constant dense<0.000000e+00> : vector<1x256xf32>
    %541 = tpu.matmul %538, %540, %cst_513 {dimension_numbers = #tpu.dot_dimension_numbers<[1], [0], [0], [1], [0, 0, 1, 1], [], []>} : vector<1x16xbf16>, vector<16x256xbf16>, vector<1x256xf32> -> vector<1x256xf32>
    %542 = arith.addf %536, %541 : vector<1x256xf32>
    %543 = vector.extract_strided_slice %529 {offsets = [2, 0], sizes = [1, 16], strides = [1, 1]} : vector<12x16xf32> to vector<1x16xf32>
    %544 = arith.truncf %543 : vector<1x16xf32> to vector<1x16xbf16>
    %c2_514 = arith.constant 2 : index
    %c0_515 = arith.constant 0 : index
    %c0_516 = arith.constant 0 : index
    %545 = vector.load %arg5[%c2_514, %c0_515, %c0_516] : memref<12x16x256xbf16, #tpu.memory_space<vmem>>, vector<1x16x256xbf16>
    %546 = vector.shape_cast %545 : vector<1x16x256xbf16> to vector<16x256xbf16>
    %cst_517 = arith.constant dense<0.000000e+00> : vector<1x256xf32>
    %547 = tpu.matmul %544, %546, %cst_517 {dimension_numbers = #tpu.dot_dimension_numbers<[1], [0], [0], [1], [0, 0, 1, 1], [], []>} : vector<1x16xbf16>, vector<16x256xbf16>, vector<1x256xf32> -> vector<1x256xf32>
    %548 = arith.addf %542, %547 : vector<1x256xf32>
    %549 = vector.extract_strided_slice %529 {offsets = [3, 0], sizes = [1, 16], strides = [1, 1]} : vector<12x16xf32> to vector<1x16xf32>
    %550 = arith.truncf %549 : vector<1x16xf32> to vector<1x16xbf16>
    %c3_518 = arith.constant 3 : index
    %c0_519 = arith.constant 0 : index
    %c0_520 = arith.constant 0 : index
    %551 = vector.load %arg5[%c3_518, %c0_519, %c0_520] : memref<12x16x256xbf16, #tpu.memory_space<vmem>>, vector<1x16x256xbf16>
    %552 = vector.shape_cast %551 : vector<1x16x256xbf16> to vector<16x256xbf16>
    %cst_521 = arith.constant dense<0.000000e+00> : vector<1x256xf32>
    %553 = tpu.matmul %550, %552, %cst_521 {dimension_numbers = #tpu.dot_dimension_numbers<[1], [0], [0], [1], [0, 0, 1, 1], [], []>} : vector<1x16xbf16>, vector<16x256xbf16>, vector<1x256xf32> -> vector<1x256xf32>
    %554 = arith.addf %548, %553 : vector<1x256xf32>
    %555 = vector.extract_strided_slice %529 {offsets = [4, 0], sizes = [1, 16], strides = [1, 1]} : vector<12x16xf32> to vector<1x16xf32>
    %556 = arith.truncf %555 : vector<1x16xf32> to vector<1x16xbf16>
    %c4_522 = arith.constant 4 : index
    %c0_523 = arith.constant 0 : index
    %c0_524 = arith.constant 0 : index
    %557 = vector.load %arg5[%c4_522, %c0_523, %c0_524] : memref<12x16x256xbf16, #tpu.memory_space<vmem>>, vector<1x16x256xbf16>
    %558 = vector.shape_cast %557 : vector<1x16x256xbf16> to vector<16x256xbf16>
    %cst_525 = arith.constant dense<0.000000e+00> : vector<1x256xf32>
    %559 = tpu.matmul %556, %558, %cst_525 {dimension_numbers = #tpu.dot_dimension_numbers<[1], [0], [0], [1], [0, 0, 1, 1], [], []>} : vector<1x16xbf16>, vector<16x256xbf16>, vector<1x256xf32> -> vector<1x256xf32>
    %560 = arith.addf %554, %559 : vector<1x256xf32>
    %561 = vector.extract_strided_slice %529 {offsets = [5, 0], sizes = [1, 16], strides = [1, 1]} : vector<12x16xf32> to vector<1x16xf32>
    %562 = arith.truncf %561 : vector<1x16xf32> to vector<1x16xbf16>
    %c5_526 = arith.constant 5 : index
    %c0_527 = arith.constant 0 : index
    %c0_528 = arith.constant 0 : index
    %563 = vector.load %arg5[%c5_526, %c0_527, %c0_528] : memref<12x16x256xbf16, #tpu.memory_space<vmem>>, vector<1x16x256xbf16>
    %564 = vector.shape_cast %563 : vector<1x16x256xbf16> to vector<16x256xbf16>
    %cst_529 = arith.constant dense<0.000000e+00> : vector<1x256xf32>
    %565 = tpu.matmul %562, %564, %cst_529 {dimension_numbers = #tpu.dot_dimension_numbers<[1], [0], [0], [1], [0, 0, 1, 1], [], []>} : vector<1x16xbf16>, vector<16x256xbf16>, vector<1x256xf32> -> vector<1x256xf32>
    %566 = arith.addf %560, %565 : vector<1x256xf32>
    %567 = vector.extract_strided_slice %529 {offsets = [6, 0], sizes = [1, 16], strides = [1, 1]} : vector<12x16xf32> to vector<1x16xf32>
    %568 = arith.truncf %567 : vector<1x16xf32> to vector<1x16xbf16>
    %c6_530 = arith.constant 6 : index
    %c0_531 = arith.constant 0 : index
    %c0_532 = arith.constant 0 : index
    %569 = vector.load %arg5[%c6_530, %c0_531, %c0_532] : memref<12x16x256xbf16, #tpu.memory_space<vmem>>, vector<1x16x256xbf16>
    %570 = vector.shape_cast %569 : vector<1x16x256xbf16> to vector<16x256xbf16>
    %cst_533 = arith.constant dense<0.000000e+00> : vector<1x256xf32>
    %571 = tpu.matmul %568, %570, %cst_533 {dimension_numbers = #tpu.dot_dimension_numbers<[1], [0], [0], [1], [0, 0, 1, 1], [], []>} : vector<1x16xbf16>, vector<16x256xbf16>, vector<1x256xf32> -> vector<1x256xf32>
    %572 = arith.addf %566, %571 : vector<1x256xf32>
    %573 = vector.extract_strided_slice %529 {offsets = [7, 0], sizes = [1, 16], strides = [1, 1]} : vector<12x16xf32> to vector<1x16xf32>
    %574 = arith.truncf %573 : vector<1x16xf32> to vector<1x16xbf16>
    %c7_534 = arith.constant 7 : index
    %c0_535 = arith.constant 0 : index
    %c0_536 = arith.constant 0 : index
    %575 = vector.load %arg5[%c7_534, %c0_535, %c0_536] : memref<12x16x256xbf16, #tpu.memory_space<vmem>>, vector<1x16x256xbf16>
    %576 = vector.shape_cast %575 : vector<1x16x256xbf16> to vector<16x256xbf16>
    %cst_537 = arith.constant dense<0.000000e+00> : vector<1x256xf32>
    %577 = tpu.matmul %574, %576, %cst_537 {dimension_numbers = #tpu.dot_dimension_numbers<[1], [0], [0], [1], [0, 0, 1, 1], [], []>} : vector<1x16xbf16>, vector<16x256xbf16>, vector<1x256xf32> -> vector<1x256xf32>
    %578 = arith.addf %572, %577 : vector<1x256xf32>
    %579 = vector.extract_strided_slice %529 {offsets = [8, 0], sizes = [1, 16], strides = [1, 1]} : vector<12x16xf32> to vector<1x16xf32>
    %580 = arith.truncf %579 : vector<1x16xf32> to vector<1x16xbf16>
    %c8_538 = arith.constant 8 : index
    %c0_539 = arith.constant 0 : index
    %c0_540 = arith.constant 0 : index
    %581 = vector.load %arg5[%c8_538, %c0_539, %c0_540] : memref<12x16x256xbf16, #tpu.memory_space<vmem>>, vector<1x16x256xbf16>
    %582 = vector.shape_cast %581 : vector<1x16x256xbf16> to vector<16x256xbf16>
    %cst_541 = arith.constant dense<0.000000e+00> : vector<1x256xf32>
    %583 = tpu.matmul %580, %582, %cst_541 {dimension_numbers = #tpu.dot_dimension_numbers<[1], [0], [0], [1], [0, 0, 1, 1], [], []>} : vector<1x16xbf16>, vector<16x256xbf16>, vector<1x256xf32> -> vector<1x256xf32>
    %584 = arith.addf %578, %583 : vector<1x256xf32>
    %585 = vector.extract_strided_slice %529 {offsets = [9, 0], sizes = [1, 16], strides = [1, 1]} : vector<12x16xf32> to vector<1x16xf32>
    %586 = arith.truncf %585 : vector<1x16xf32> to vector<1x16xbf16>
    %c9_542 = arith.constant 9 : index
    %c0_543 = arith.constant 0 : index
    %c0_544 = arith.constant 0 : index
    %587 = vector.load %arg5[%c9_542, %c0_543, %c0_544] : memref<12x16x256xbf16, #tpu.memory_space<vmem>>, vector<1x16x256xbf16>
    %588 = vector.shape_cast %587 : vector<1x16x256xbf16> to vector<16x256xbf16>
    %cst_545 = arith.constant dense<0.000000e+00> : vector<1x256xf32>
    %589 = tpu.matmul %586, %588, %cst_545 {dimension_numbers = #tpu.dot_dimension_numbers<[1], [0], [0], [1], [0, 0, 1, 1], [], []>} : vector<1x16xbf16>, vector<16x256xbf16>, vector<1x256xf32> -> vector<1x256xf32>
    %590 = arith.addf %584, %589 : vector<1x256xf32>
    %591 = vector.extract_strided_slice %529 {offsets = [10, 0], sizes = [1, 16], strides = [1, 1]} : vector<12x16xf32> to vector<1x16xf32>
    %592 = arith.truncf %591 : vector<1x16xf32> to vector<1x16xbf16>
    %c10_546 = arith.constant 10 : index
    %c0_547 = arith.constant 0 : index
    %c0_548 = arith.constant 0 : index
    %593 = vector.load %arg5[%c10_546, %c0_547, %c0_548] : memref<12x16x256xbf16, #tpu.memory_space<vmem>>, vector<1x16x256xbf16>
    %594 = vector.shape_cast %593 : vector<1x16x256xbf16> to vector<16x256xbf16>
    %cst_549 = arith.constant dense<0.000000e+00> : vector<1x256xf32>
    %595 = tpu.matmul %592, %594, %cst_549 {dimension_numbers = #tpu.dot_dimension_numbers<[1], [0], [0], [1], [0, 0, 1, 1], [], []>} : vector<1x16xbf16>, vector<16x256xbf16>, vector<1x256xf32> -> vector<1x256xf32>
    %596 = arith.addf %590, %595 : vector<1x256xf32>
    %597 = vector.extract_strided_slice %529 {offsets = [11, 0], sizes = [1, 16], strides = [1, 1]} : vector<12x16xf32> to vector<1x16xf32>
    %598 = arith.truncf %597 : vector<1x16xf32> to vector<1x16xbf16>
    %c11_550 = arith.constant 11 : index
    %c0_551 = arith.constant 0 : index
    %c0_552 = arith.constant 0 : index
    %599 = vector.load %arg5[%c11_550, %c0_551, %c0_552] : memref<12x16x256xbf16, #tpu.memory_space<vmem>>, vector<1x16x256xbf16>
    %600 = vector.shape_cast %599 : vector<1x16x256xbf16> to vector<16x256xbf16>
    %cst_553 = arith.constant dense<0.000000e+00> : vector<1x256xf32>
    %601 = tpu.matmul %598, %600, %cst_553 {dimension_numbers = #tpu.dot_dimension_numbers<[1], [0], [0], [1], [0, 0, 1, 1], [], []>} : vector<1x16xbf16>, vector<16x256xbf16>, vector<1x256xf32> -> vector<1x256xf32>
    %602 = arith.addf %596, %601 : vector<1x256xf32>
    %c0_554 = arith.constant 0 : index
    %c0_555 = arith.constant 0 : index
    %603 = vector.load %arg6[%c0_554, %c0_555] : memref<1x256xf32, #tpu.memory_space<vmem>>, vector<1x256xf32>
    %604 = arith.addf %602, %603 : vector<1x256xf32>
    %cst_556 = arith.constant 0.000000e+00 : f32
    %605 = vector.broadcast %cst_556 : f32 to vector<1x256xf32>
    %606 = arith.maximumf %604, %605 : vector<1x256xf32>
    %607 = tpu.concatenate %522, %606 in 0 : vector<1x256xf32>, vector<1x256xf32> -> vector<2x256xf32>
    %608 = arith.truncf %607 : vector<2x256xf32> to vector<2x256xbf16>
    %c0_557 = arith.constant 0 : index
    %c0_558 = arith.constant 0 : index
    %609 = vector.load %arg7[%c0_557, %c0_558] : memref<256x256xbf16, #tpu.memory_space<vmem>>, vector<256x256xbf16>
    %cst_559 = arith.constant dense<0.000000e+00> : vector<2x256xf32>
    %610 = tpu.matmul %608, %609, %cst_559 {dimension_numbers = #tpu.dot_dimension_numbers<[1], [0], [0], [1], [0, 0, 1, 1], [], []>} : vector<2x256xbf16>, vector<256x256xbf16>, vector<2x256xf32> -> vector<2x256xf32>
    %c0_560 = arith.constant 0 : index
    %c0_561 = arith.constant 0 : index
    %611 = vector.load %arg8[%c0_560, %c0_561] : memref<1x256xf32, #tpu.memory_space<vmem>>, vector<1x256xf32>
    %612 = vector.broadcast %611 : vector<1x256xf32> to vector<2x256xf32>
    %613 = arith.addf %610, %612 : vector<2x256xf32>
    %cst_562 = arith.constant 0.000000e+00 : f32
    %614 = vector.broadcast %cst_562 : f32 to vector<2x256xf32>
    %615 = arith.maximumf %613, %614 : vector<2x256xf32>
    %616 = arith.truncf %615 : vector<2x256xf32> to vector<2x256xbf16>
    %c0_563 = arith.constant 0 : index
    %c0_564 = arith.constant 0 : index
    %617 = vector.load %arg9[%c0_563, %c0_564] : memref<256x32xbf16, #tpu.memory_space<vmem>>, vector<256x32xbf16>
    %cst_565 = arith.constant dense<0.000000e+00> : vector<2x32xf32>
    %618 = tpu.matmul %616, %617, %cst_565 {dimension_numbers = #tpu.dot_dimension_numbers<[1], [0], [0], [1], [0, 0, 1, 1], [], []>} : vector<2x256xbf16>, vector<256x32xbf16>, vector<2x32xf32> -> vector<2x32xf32>
    %c0_566 = arith.constant 0 : index
    %c0_567 = arith.constant 0 : index
    %619 = vector.load %arg10[%c0_566, %c0_567] : memref<1x32xf32, #tpu.memory_space<vmem>>, vector<1x32xf32>
    %620 = vector.broadcast %619 : vector<1x32xf32> to vector<2x32xf32>
    %621 = arith.addf %618, %620 : vector<2x32xf32>
    %c0_568 = arith.constant 0 : index
    %c0_569 = arith.constant 0 : index
    %622 = vector.load %arg11[%c0_568, %c0_569] : memref<2x32xf32, #tpu.memory_space<vmem>>, vector<2x32xf32>
    tpu.vector_store %arg11[%c0_568, %c0_569], %621 {strides = array<i32>} : memref<2x32xf32, #tpu.memory_space<vmem>>, vector<2x32xf32>,
    return
  }
}

</mosaic_0001>

<bundles_post_ra>
// kernel: basic_predictor_forward.1
= control target key start
LH: loop header
LB: loop body
LE: loop exit
PB: predicated region body
PF: predicated region fallthrough
CT: control target
= control target key end

     0   :  { %vm6004_vm0 = vcmask 29696   ;;  %s4293_s23 = smov 4   ;;  %vm42_vm1 = vcmask 31744   ;;  %s4294_s24 = smov 8   ;;  %v4299_v13 = vmov 0.0   ;;  %s5992_s0 = inlined_call_operand.vmem [shape: f32[256,4], index: 0, kind: input, shape index: {}]   ;;  %s5993_s1 = inlined_call_operand.vmem [shape: bf16[36,8], index: 1, kind: input, shape index: {}]   ;;  %s5994_s2 = inlined_call_operand.vmem [shape: f32[1,8], index: 2, kind: input, shape index: {}]   ;;  %s5995_s3 = inlined_call_operand.vmem [shape: bf16[72,16], index: 3, kind: input, shape index: {}]   ;;  %s5996_s4 = inlined_call_operand.vmem [shape: f32[1,16], index: 4, kind: input, shape index: {}]   ;;  %s5997_s5 = inlined_call_operand.vmem [shape: bf16[12,16,256], index: 5, kind: input, shape index: {}]   ;;  %s5998_s6 = inlined_call_operand.vmem [shape: f32[1,256], index: 6, kind: input, shape index: {}]   ;;  %s5999_s7 = inlined_call_operand.vmem [shape: bf16[256,256], index: 7, kind: input, shape index: {}]   ;;  %s6000_s8 = inlined_call_operand.vmem [shape: f32[1,256], index: 8, kind: input, shape index: {}]   ;;  %s6001_s9 = inlined_call_operand.vmem [shape: bf16[256,32], index: 9, kind: input, shape index: {}]   ;;  %s6002_s10 = inlined_call_operand.vmem [shape: f32[1,32], index: 10, kind: input, shape index: {}]   ;;  %s6003_s11 = inlined_call_operand.hbm [shape: f32[2,32], index: 11, kind: output, shape index: {}]  }
   0x1   :  { %v136_v0 = vld [vmem:[%s5992_s0 + $0x10] sm:$0xff]  ;;  %v40_v1 = vld [vmem:[%s5992_s0] sm:$0xff]  ;;  %v137_v2 = vld [vmem:[%s5992_s0 + $0x18] sm:$0xff]  ;;  %s4295_s25 = smov 12   ;;  %s4296_s26 = smov 16   ;;  %4060 = vmatprep.subr.bf16.mxu0 %v4299_v13 }
   0x2   :  { %142 = vrot.lane.b32.xlu1 %v136_v0, %s4293_s23  ;;  %48 = vrot.lane.b32.xlu0 %v40_v1, %s4293_s23  ;;  %139 = vst.msk [vmem:[#allocation2 + $0x16] sm:$0x3f] %vm6004_vm0, %v137_v2  ;;  %v41_v3 = vld [vmem:[%s5992_s0 + $0x8] sm:$0xff]  ;;  %v4393_v5 = vld [vmem:[%s5992_s0 + $0x20] sm:$0xff]  ;;  %s4297_s27 = smov 20   ;;  %s4298_s28 = smov 24  }
   0x3   :  { %v4387_v4 = vld [vmem:[%s5992_s0 + $0x28] sm:$0xff]  ;;  %45 = vst.msk [vmem:[#allocation2 + $0x8] sm:$0x3f] %vm6004_vm0, %v41_v3  ;;  %v4398_v6 = vld [vmem:[%s5992_s0 + $0x30] sm:$0xff]  ;;  %v4405_v7 = vld [vmem:[%s5992_s0 + $0x38] sm:$0xff] }
   0x4   :  { %217 = vst.msk [vmem:[#allocation2 + $0x24] sm:$0x3f] %vm6004_vm0, %v4387_v4  ;;  %v4412_v8 = vld [vmem:[%s5992_s0 + $0x40] sm:$0xff]  ;;  %295 = vst.msk [vmem:[#allocation2 + $0x32] sm:$0x3f] %vm6004_vm0, %v4405_v7  ;;  %v4419_v9 = vld [vmem:[%s5992_s0 + $0x48] sm:$0xff] }
   0x5   :  { %138 = vst.msk [vmem:[#allocation2 + $0xe] sm:$0xff] %vm42_vm1, %v136_v0  ;;  %43 = vst.msk [vmem:[#allocation2] sm:$0xff] %vm42_vm1, %v40_v1  ;;  %v4424_v10 = vld [vmem:[%s5992_s0 + $0x50] sm:$0xff]  ;;  %v4437_v11 = vld [vmem:[%s5992_s0 + $0x58] sm:$0xff] }
   0x6   :  { %216 = vst.msk [vmem:[#allocation2 + $0x1c] sm:$0xff] %vm42_vm1, %v4393_v5  ;;  %294 = vst.msk [vmem:[#allocation2 + $0x2a] sm:$0xff] %vm42_vm1, %v4398_v6  ;;  %144 = vrot.lane.b32.xlu1 %v137_v2, %s4293_s23  ;;  %50 = vrot.lane.b32.xlu0 %v41_v3, %s4293_s23  ;;  %v4160_v12 = vld [vmem:[%s5993_s1] sm:$0xff]  }
   0x7   :  { %372 = vst.msk [vmem:[#allocation2 + $0x38] sm:$0xff] %vm42_vm1, %v4412_v8  ;;  %450 = vst.msk [vmem:[#allocation2 + $0x46] sm:$0xff] %vm42_vm1, %v4424_v10  ;;  %4061 = vmatpush3.bf16.msra.mxu0 %v4160_v12 }
   0x8   :  { %373 = vst.msk [vmem:[#allocation2 + $0x40] sm:$0x3f] %vm6004_vm0, %v4419_v9  ;;  %451 = vst.msk [vmem:[#allocation2 + $0x4e] sm:$0x3f] %vm6004_vm0, %v4437_v11 }
   0xa   :  { %60 = vrot.lane.b32.xlu1 %v41_v3, %s4294_s24  ;;  %58 = vrot.lane.b32.xlu0 %v40_v1, %s4294_s24 }
   0xe   :  { %152 = vrot.lane.b32.xlu1 %v137_v2, %s4294_s24  ;;  %150 = vrot.lane.b32.xlu0 %v136_v0, %s4294_s24 }
  0x12   :  { %74 = vrot.lane.b32.xlu1 %v137_v2, %s4295_s25  ;;  %72 = vrot.lane.b32.xlu0 %v136_v0, %s4295_s25 }
  0x16   :  { %164 = vrot.lane.b32.xlu1 %v4387_v4, %s4295_s25  ;;  %162 = vrot.lane.b32.xlu0 %v4393_v5, %s4295_s25 }
  0x1a   :  { %84 = vrot.lane.b32.xlu1 %v137_v2, %s4296_s26  ;;  %82 = vrot.lane.b32.xlu0 %v136_v0, %s4296_s26 }
  0x1e   :  { %172 = vrot.lane.b32.xlu1 %v4387_v4, %s4296_s26  ;;  %170 = vrot.lane.b32.xlu0 %v4393_v5, %s4296_s26 }
  0x22   :  { %94 = vrot.lane.b32.xlu1 %v137_v2, %s4297_s27  ;;  %92 = vrot.lane.b32.xlu0 %v136_v0, %s4297_s27 }
  0x26   :  { %180 = vrot.lane.b32.xlu1 %v4387_v4, %s4297_s27  ;;  %178 = vrot.lane.b32.xlu0 %v4393_v5, %s4297_s27 }
  0x2a   :  { %108 = vrot.lane.b32.xlu1 %v4387_v4, %s4298_s28  ;;  %106 = vrot.lane.b32.xlu0 %v4393_v5, %s4298_s28 }
  0x2b   :  { %16 = vsyncpa [#allocation6], 0  ;;  %4062 = vmatprep.subr.bf16.mxu0 %v4299_v13  ;;  %s4300_s12 = smov 28   ;;  %v4161_v14 = vld [vmem:[%s5993_s1 + $0x8] sm:$0xff]   ;;  %vm1087_vm2 = vcmask 1041408   ;;  %s4301_s17 = smov 32  }
  0x2c   :  { %4063 = vmatpush3.bf16.msra.mxu0 %v4161_v14  ;;  %v4162_v15 = vld [vmem:[%s5993_s1 + $0x10] ss:$0 sps:$4 sm:$0x33]   ;;  %vm6010_vm3 = vmmov 0   ;;  %v4508_v17 = vld [vmem:[%s5992_s0 + $0x88] sm:$0xff]  ;;  %v4513_v18 = vld [vmem:[%s5992_s0 + $0x80] sm:$0xff] }
  0x2d   :  { %4064 = vmatprep.subr.bf16.mxu0 %v4299_v13  ;;  %v1089_v16 = vsel %vm1087_vm2, %v4162_v15, 0  ;;  %4066 = vmatprep.mubr.msk.bf16.mxu0 %vm6010_vm3, %v4299_v13  ;;  %529 = vst.msk [vmem:[#allocation2 + $0x5c] sm:$0x3f] %vm6004_vm0, %v4508_v17  ;;  %v4530_v19 = vld [vmem:[%s5992_s0 + $0x98] sm:$0xff]  ;;  %v4535_v20 = vld [vmem:[%s5992_s0 + $0x90] sm:$0xff]  ;;  %v4556_v21 = vld [vmem:[%s5992_s0 + $0xa8] sm:$0xff] }
  0x2e   :  { %116 = vrot.lane.b32.xlu1 %v4393_v5, %s4300_s12  ;;  %190 = vrot.lane.b32.xlu0 %v4398_v6, %s4298_s28  ;;  %528 = vst.msk [vmem:[#allocation2 + $0x54] sm:$0xff] %vm42_vm1, %v4513_v18  ;;  %606 = vst.msk [vmem:[#allocation2 + $0x62] sm:$0xff] %vm42_vm1, %v4535_v20  ;;  %v4561_v22 = vld [vmem:[%s5992_s0 + $0xa0] sm:$0xff]  ;;  %vm54_vm4 = vcmask 64545   ;;  %v4604_v25 = vld [vmem:[%s5992_s0 + $0xb8] sm:$0xff]  ;;  %vm56_vm5 = vcmask 63520  }
  0x2f   :  { %607 = vst.msk [vmem:[#allocation2 + $0x6a] sm:$0x3f] %vm6004_vm0, %v4530_v19  ;;  %685 = vst.msk [vmem:[#allocation2 + $0x78] sm:$0x3f] %vm6004_vm0, %v4556_v21  ;;  %v4609_v26 = vld [vmem:[%s5992_s0 + $0xb0] sm:$0xff]  ;;  %vm6013_vm6 = vcmask 97344  }
  0x30   :  { %4065 = vmatpush3.bf16.msra.mxu0 %v1089_v16  ;;  %684 = vst.msk [vmem:[#allocation2 + $0x70] sm:$0xff] %vm42_vm1, %v4561_v22  ;;  %762 = vst.msk [vmem:[#allocation2 + $0x7e] sm:$0xff] %vm42_vm1, %v4609_v26  ;;  %vm64_vm7 = vcmask 97346   ;;  %vm6012_vm8 = vcmask 128096   ;;  %vm6009_vm9 = vcmask 130144   ;;  %vm6008_vm10 = vcmask 161920  }
  0x31   :  { %763 = vst.msk [vmem:[#allocation2 + $0x86] sm:$0x3f] %vm6004_vm0, %v4604_v25  ;;  %vm6007_vm11 = vcmask 162945   ;;  %v4658_v39 = vld [vmem:[%s5992_s0 + $0x68] sm:$0xff]  ;;  %v4663_v40 = vld [vmem:[%s5992_s0 + $0x60] sm:$0xff]  ;;  %vm6006_vm12 = vcmask 195744  }
  0x32   :  { %198 = vrot.lane.b32.xlu1 %v4398_v6, %s4300_s12  ;;  %118 = vrot.lane.b32.xlu0 %v4387_v4, %s4300_s12  ;;  %vm98_vm13 = vcmask 195746   ;;  %v4676_v45 = vld [vmem:[%s5992_s0 + $0xc8] sm:$0xff]  ;;  %v4681_v46 = vld [vmem:[%s5992_s0 + $0xc0] sm:$0xff]  ;;  %vm114_vm14 = vcmask 226496   ;;  %vm6005_vm15 = vcmask 228544   ;;  %vm122_vm2 = vcmask 261345  }
  0x33   :  { %840 = vst.msk [vmem:[#allocation2 + $0x8c] sm:$0xff] %vm42_vm1, %v4681_v46  ;;  %v4726_v59 = vld [vmem:[%s5992_s0 + $0xd0] sm:$0xff]  ;;  %v499_v62 = vld [vmem:[%s5992_s0 + $0x78] sm:$0xff]  ;;  %s4304_s19 = smov 48   ;;  %s4305_s20 = smov 56  }
  0x34   :  { %841 = vst.msk [vmem:[#allocation2 + $0x94] sm:$0x3f] %vm6004_vm0, %v4676_v45  ;;  %vm124_vm0 = vcmask 260320   ;;  %v498_v63 = vld [vmem:[%s5992_s0 + $0x70] sm:$0xff]  ;;  %v4772_v14 = vld [vmem:[%s5992_s0 + $0xd8] sm:$0xff]  ;;  %s4306_s13 = smov 64  }
  0x35   :  { %918 = vst.msk [vmem:[#allocation2 + $0x9a] sm:$0xff] %vm42_vm1, %v4726_v59  ;;  %vm1053_vm1 = vcmask 293888  }
  0x36   :  { %128 = vrot.lane.b32.xlu1 %v4387_v4, %s4301_s17  ;;  %126 = vrot.lane.b32.xlu0 %v4393_v5, %s4301_s17 }
  0x3a   :  { %220 = vrot.lane.b32.xlu1 %v4393_v5, %s4293_s23  ;;  %206 = vrot.lane.b32.xlu0 %v4398_v6, %s4301_s17 }
  0x3e   :  { %228 = vrot.lane.b32.xlu1 %v4393_v5, %s4294_s24  ;;  %222 = vrot.lane.b32.xlu0 %v4387_v4, %s4293_s23 }
  0x42   :  { %240 = vrot.lane.b32.xlu1 %v4398_v6, %s4295_s25  ;;  %230 = vrot.lane.b32.xlu0 %v4387_v4, %s4294_s24 }
  0x46   :  { %248 = vrot.lane.b32.xlu1 %v4398_v6, %s4296_s26  ;;  %242 = vrot.lane.b32.xlu0 %v4405_v7, %s4295_s25 }
  0x4a   :  { %256 = vrot.lane.b32.xlu1 %v4398_v6, %s4297_s27  ;;  %250 = vrot.lane.b32.xlu0 %v4405_v7, %s4296_s26 }
  0x4e   :  { %192 = vrot.lane.b32.xlu1 %v4405_v7, %s4298_s28  ;;  %258 = vrot.lane.b32.xlu0 %v4405_v7, %s4297_s27 }
  0x52   :  { %200 = vrot.lane.b32.xlu1 %v4405_v7, %s4300_s12  ;;  %268 = vrot.lane.b32.xlu0 %v4412_v8, %s4298_s28 }
  0x56   :  { %208 = vrot.lane.b32.xlu1 %v4405_v7, %s4301_s17  ;;  %276 = vrot.lane.b32.xlu0 %v4412_v8, %s4300_s12 }
  0x5a   :  { %298 = vrot.lane.b32.xlu1 %v4398_v6, %s4293_s23  ;;  %284 = vrot.lane.b32.xlu0 %v4412_v8, %s4301_s17 }
  0x5e   :  { %306 = vrot.lane.b32.xlu1 %v4398_v6, %s4294_s24  ;;  %300 = vrot.lane.b32.xlu0 %v4405_v7, %s4293_s23 }
  0x62   :  { %318 = vrot.lane.b32.xlu1 %v4412_v8, %s4295_s25  ;;  %308 = vrot.lane.b32.xlu0 %v4405_v7, %s4294_s24 }
  0x66   :  { %326 = vrot.lane.b32.xlu1 %v4412_v8, %s4296_s26  ;;  %320 = vrot.lane.b32.xlu0 %v4419_v9, %s4295_s25 }
  0x6a   :  { %334 = vrot.lane.b32.xlu1 %v4412_v8, %s4297_s27  ;;  %328 = vrot.lane.b32.xlu0 %v4419_v9, %s4296_s26 }
  0x6e   :  { %270 = vrot.lane.b32.xlu1 %v4419_v9, %s4298_s28  ;;  %336 = vrot.lane.b32.xlu0 %v4419_v9, %s4297_s27 }
  0x72   :  { %278 = vrot.lane.b32.xlu1 %v4419_v9, %s4300_s12  ;;  %346 = vrot.lane.b32.xlu0 %v4424_v10, %s4298_s28 }
  0x74   :  { %v143_v23 = vpop.permute.xlu1 %142  ;;  %v49_v24 = vpop.permute.xlu0 %48 }
  0x75   :  { %148 = vst.msk [vmem:[#allocation2 + $0xd] sm:$0xfe] %vm54_vm4, %v143_v23  ;;  %55 = vst.msk [vmem:[#allocation2 - $0x1] sm:$0xfe] %vm54_vm4, %v49_v24 }
  0x76   :  { %286 = vrot.lane.b32.xlu1 %v4419_v9, %s4301_s17  ;;  %354 = vrot.lane.b32.xlu0 %v4424_v10, %s4300_s12 }
  0x78   :  { %v145_v27 = vpop.permute.xlu1 %144  ;;  %v51_v28 = vpop.permute.xlu0 %50 }
  0x79   :  { %149 = vst.msk [vmem:[#allocation2 + $0x15] sm:$0x7f] %vm56_vm5, %v145_v27  ;;  %57 = vst.msk [vmem:[#allocation2 + $0x7] sm:$0x7f] %vm56_vm5, %v51_v28 }
  0x7a   :  { %376 = vrot.lane.b32.xlu1 %v4412_v8, %s4293_s23  ;;  %362 = vrot.lane.b32.xlu0 %v4424_v10, %s4301_s17 }
  0x7c   :  { %v61_v29 = vpop.permute.xlu1 %60  ;;  %v59_v30 = vpop.permute.xlu0 %58 }
  0x7d   :  { %67 = vst.msk [vmem:[#allocation2 + $0x6] sm:$0xff] %vm6013_vm6, %v61_v29 }
  0x7e   :  { %65 = vst.msk [vmem:[#allocation2 - $0x2] sm:$0xfc] %vm64_vm7, %v59_v30  ;;  %384 = vrot.lane.b32.xlu1 %v4412_v8, %s4294_s24  ;;  %378 = vrot.lane.b32.xlu0 %v4419_v9, %s4293_s23 }
  0x80   :  { %v153_v31 = vpop.permute.xlu1 %152  ;;  %v151_v32 = vpop.permute.xlu0 %150 }
  0x81   :  { %157 = vst.msk [vmem:[#allocation2 + $0x14] sm:$0xff] %vm6013_vm6, %v153_v31 }
  0x82   :  { %156 = vst.msk [vmem:[#allocation2 + $0xc] sm:$0xfc] %vm64_vm7, %v151_v32  ;;  %396 = vrot.lane.b32.xlu1 %v4424_v10, %s4295_s25  ;;  %386 = vrot.lane.b32.xlu0 %v4419_v9, %s4294_s24 }
  0x84   :  { %v75_v33 = vpop.permute.xlu1 %74  ;;  %v73_v34 = vpop.permute.xlu0 %72 }
  0x85   :  { %81 = vst.msk [vmem:[#allocation2 + $0x8] sm:$0x3f] %vm6012_vm8, %v75_v33 }
  0x86   :  { %79 = vst.msk [vmem:[#allocation2] sm:$0xff] %vm6009_vm9, %v73_v34  ;;  %404 = vrot.lane.b32.xlu1 %v4424_v10, %s4296_s26  ;;  %398 = vrot.lane.b32.xlu0 %v4437_v11, %s4295_s25 }
  0x88   :  { %v165_v35 = vpop.permute.xlu1 %164  ;;  %v163_v36 = vpop.permute.xlu0 %162 }
  0x89   :  { %169 = vst.msk [vmem:[#allocation2 + $0x16] sm:$0x3f] %vm6012_vm8, %v165_v35 }
  0x8a   :  { %168 = vst.msk [vmem:[#allocation2 + $0xe] sm:$0xff] %vm6009_vm9, %v163_v36  ;;  %412 = vrot.lane.b32.xlu1 %v4424_v10, %s4297_s27  ;;  %406 = vrot.lane.b32.xlu0 %v4437_v11, %s4296_s26 }
  0x8c   :  { %v85_v37 = vpop.permute.xlu1 %84  ;;  %v83_v38 = vpop.permute.xlu0 %82 }
  0x8d   :  { %91 = vst.msk [vmem:[#allocation2 + $0x7] sm:$0x7f] %vm6008_vm10, %v85_v37 }
  0x8e   :  { %89 = vst.msk [vmem:[#allocation2 - $0x1] sm:$0xfe] %vm6007_vm11, %v83_v38  ;;  %348 = vrot.lane.b32.xlu1 %v4437_v11, %s4298_s28  ;;  %414 = vrot.lane.b32.xlu0 %v4437_v11, %s4297_s27 }
  0x90   :  { %v173_v41 = vpop.permute.xlu1 %172  ;;  %v171_v42 = vpop.permute.xlu0 %170 }
  0x91   :  { %177 = vst.msk [vmem:[#allocation2 + $0x15] sm:$0x7f] %vm6008_vm10, %v173_v41 }
  0x92   :  { %176 = vst.msk [vmem:[#allocation2 + $0xd] sm:$0xfe] %vm6007_vm11, %v171_v42  ;;  %426 = vrot.lane.b32.xlu1 %v4658_v39, %s4298_s28  ;;  %424 = vrot.lane.b32.xlu0 %v4663_v40, %s4298_s28 }
  0x94   :  { %v95_v43 = vpop.permute.xlu1 %94  ;;  %v93_v44 = vpop.permute.xlu0 %92 }
  0x95   :  { %101 = vst.msk [vmem:[#allocation2 + $0x6] sm:$0xff] %vm6006_vm12, %v95_v43 }
  0x96   :  { %99 = vst.msk [vmem:[#allocation2 - $0x2] sm:$0xfc] %vm98_vm13, %v93_v44  ;;  %432 = vrot.lane.b32.xlu1 %v4663_v40, %s4300_s12  ;;  %356 = vrot.lane.b32.xlu0 %v4437_v11, %s4300_s12 }
  0x98   :  { %v181_v47 = vpop.permute.xlu1 %180  ;;  %v179_v48 = vpop.permute.xlu0 %178 }
  0x99   :  { %185 = vst.msk [vmem:[#allocation2 + $0x14] sm:$0xff] %vm6006_vm12, %v181_v47  ;;  %vm132_vm12 = vcmask 294146  }
  0x9a   :  { %184 = vst.msk [vmem:[#allocation2 + $0xc] sm:$0xfc] %vm98_vm13, %v179_v48  ;;  %364 = vrot.lane.b32.xlu1 %v4437_v11, %s4301_s17  ;;  %434 = vrot.lane.b32.xlu0 %v4658_v39, %s4300_s12 }
  0x9c   :  { %v109_v49 = vpop.permute.xlu1 %108  ;;  %v107_v50 = vpop.permute.xlu0 %106 }
  0x9d   :  { %115 = vst.msk [vmem:[#allocation2 + $0x8] sm:$0x3f] %vm114_vm14, %v109_v49 }
  0x9e   :  { %113 = vst.msk [vmem:[#allocation2] sm:$0xff] %vm6005_vm15, %v107_v50  ;;  %442 = vrot.lane.b32.xlu1 %v4658_v39, %s4301_s17  ;;  %440 = vrot.lane.b32.xlu0 %v4663_v40, %s4301_s17 }
  0xa0   :  { %v117_v51 = vpop.permute.xlu1 %116  ;;  %v191_v52 = vpop.permute.xlu0 %190 }
  0xa1   :  { %123 = vst.msk [vmem:[#allocation2 - $0x1] sm:$0xfe] %vm122_vm2, %v117_v51 }
  0xa2   :  { %196 = vst.msk [vmem:[#allocation2 + $0xe] sm:$0xff] %vm6005_vm15, %v191_v52  ;;  %456 = vrot.lane.b32.xlu1 %v4437_v11, %s4293_s23  ;;  %454 = vrot.lane.b32.xlu0 %v4424_v10, %s4293_s23  ;;  %vm134_vm15 = vcmask 294144  }
  0xa4   :  { %v199_v53 = vpop.permute.xlu1 %198  ;;  %v119_v54 = vpop.permute.xlu0 %118 }
  0xa5   :  { %204 = vst.msk [vmem:[#allocation2 + $0xd] sm:$0xfe] %vm122_vm2, %v199_v53 }
  0xa6   :  { %125 = vst.msk [vmem:[#allocation2 + $0x7] sm:$0x7f] %vm124_vm0, %v119_v54  ;;  %464 = vrot.lane.b32.xlu1 %v4437_v11, %s4294_s24  ;;  %462 = vrot.lane.b32.xlu0 %v4424_v10, %s4294_s24 }
  0xa8   :  { %v129_v55 = vpop.permute.xlu1 %128  ;;  %v127_v56 = vpop.permute.xlu0 %126 }
  0xa9   :  { %135 = vst.msk [vmem:[#allocation2 + $0x6] sm:$0xff] %vm134_vm15, %v129_v55 }
  0xaa   :  { %133 = vst.msk [vmem:[#allocation2 - $0x2] sm:$0xfc] %vm132_vm12, %v127_v56  ;;  %476 = vrot.lane.b32.xlu1 %v4658_v39, %s4295_s25  ;;  %474 = vrot.lane.b32.xlu0 %v4663_v40, %s4295_s25 }
  0xac   :  { %v221_v57 = vpop.permute.xlu1 %220  ;;  %v207_v58 = vpop.permute.xlu0 %206 }
  0xad   :  { %226 = vst.msk [vmem:[#allocation2 + $0x1b] sm:$0xfe] %vm54_vm4, %v221_v57 }
  0xae   :  { %212 = vst.msk [vmem:[#allocation2 + $0xc] sm:$0xfc] %vm132_vm12, %v207_v58  ;;  %484 = vrot.lane.b32.xlu1 %v4658_v39, %s4296_s26  ;;  %482 = vrot.lane.b32.xlu0 %v4663_v40, %s4296_s26 }
  0xb0   :  { %v229_v60 = vpop.permute.xlu1 %228  ;;  %v223_v61 = vpop.permute.xlu0 %222 }
  0xb1   :  { %234 = vst.msk [vmem:[#allocation2 + $0x1a] sm:$0xfc] %vm64_vm7, %v229_v60  ;;  %v994_v2 = vld [vmem:[#allocation2] sm:$0xff] }
  0xb2   :  { %227 = vst.msk [vmem:[#allocation2 + $0x23] sm:$0x7f] %vm56_vm5, %v223_v61  ;;  %492 = vrot.lane.b32.xlu1 %v4658_v39, %s4297_s27  ;;  %490 = vrot.lane.b32.xlu0 %v4663_v40, %s4297_s27 }
  0xb4   :  { %v241_v0 = vpop.permute.xlu1 %240  ;;  %v231_v1 = vpop.permute.xlu0 %230 }
  0xb5   :  { %v995_v3 = vld [vmem:[#allocation2 + $0x8] sm:$0xff]  ;;  %235 = vst.msk [vmem:[#allocation2 + $0x22] sm:$0xff] %vm6013_vm6, %v231_v1 }
  0xb6   :  { %v1015_v4 = vpack.c.bf16 %v995_v3, %v994_v2  ;;  %246 = vst.msk [vmem:[#allocation2 + $0x1c] sm:$0xff] %vm6009_vm9, %v241_v0  ;;  %504 = vrot.lane.b32.xlu1 %v499_v62, %s4298_s28  ;;  %502 = vrot.lane.b32.xlu0 %v498_v63, %s4298_s28 }
  0xb8   :  { %4067 = vmatmul.mubr.msk.bf16.vlgmr.msra.gmra.mrb[0].mxu0 %vm1053_vm1, %v1015_v4  ;;  %v249_v5 = vpop.permute.xlu1 %248  ;;  %v243_v6 = vpop.permute.xlu0 %242 }
  0xb9   :  { %4070 = vmatprep.mubr.msk.bf16.mxu0 %vm6010_vm3, %v4299_v13  ;;  %254 = vst.msk [vmem:[#allocation2 + $0x1b] sm:$0xfe] %vm6007_vm11, %v249_v5  ;;  %vm6021_vm11 = vcmask 195744  }
  0xba   :  { %247 = vst.msk [vmem:[#allocation2 + $0x24] sm:$0x3f] %vm6012_vm8, %v243_v6  ;;  %512 = vrot.lane.b32.xlu1 %v499_v62, %s4300_s12  ;;  %510 = vrot.lane.b32.xlu0 %v498_v63, %s4300_s12 }
  0xbc   :  { %v257_v7 = vpop.permute.xlu1 %256  ;;  %v251_v8 = vpop.permute.xlu0 %250 }
  0xbd   :  { %262 = vst.msk [vmem:[#allocation2 + $0x1a] sm:$0xfc] %vm98_vm13, %v257_v7 }
  0xbe   :  { %255 = vst.msk [vmem:[#allocation2 + $0x23] sm:$0x7f] %vm6008_vm10, %v251_v8  ;;  %520 = vrot.lane.b32.xlu1 %v499_v62, %s4301_s17  ;;  %518 = vrot.lane.b32.xlu0 %v498_v63, %s4301_s17  ;;  %vm6022_vm10 = vcmask 228544  }
  0xc0   :  { %v193_v9 = vpop.permute.xlu1 %192  ;;  %v259_v10 = vpop.permute.xlu0 %258 }
  0xc1   :  { %197 = vst.msk [vmem:[#allocation2 + $0x16] sm:$0x3f] %vm114_vm14, %v193_v9 }
  0xc2   :  { %263 = vst.msk [vmem:[#allocation2 + $0x22] sm:$0xff] %vm6021_vm11, %v259_v10  ;;  %534 = vrot.lane.b32.xlu1 %v4508_v17, %s4293_s23  ;;  %532 = vrot.lane.b32.xlu0 %v4513_v18, %s4293_s23  ;;  %vm6023_vm11 = vcmask 29696  }
  0xc3   :  { %919 = vst.msk [vmem:[#allocation2 + $0xa2] sm:$0x3f] %vm6023_vm11, %v4772_v14  ;;  %vm6025_vm11 = vcmask 161920  }
  0xc4   :  { %v201_v11 = vpop.permute.xlu1 %200  ;;  %v269_v12 = vpop.permute.xlu0 %268 }
  0xc5   :  { %205 = vst.msk [vmem:[#allocation2 + $0x15] sm:$0x7f] %vm124_vm0, %v201_v11 }
  0xc6   :  { %274 = vst.msk [vmem:[#allocation2 + $0x1c] sm:$0xff] %vm6022_vm10, %v269_v12  ;;  %542 = vrot.lane.b32.xlu1 %v4508_v17, %s4294_s24  ;;  %540 = vrot.lane.b32.xlu0 %v4513_v18, %s4294_s24  ;;  %vm6024_vm10 = vcmask 162945  }
  0xc8   :  { %v209_v15 = vpop.permute.xlu1 %208  ;;  %v277_v16 = vpop.permute.xlu0 %276 }
  0xc9   :  { %213 = vst.msk [vmem:[#allocation2 + $0x14] sm:$0xff] %vm134_vm15, %v209_v15 }
  0xca   :  { %282 = vst.msk [vmem:[#allocation2 + $0x1b] sm:$0xfe] %vm122_vm2, %v277_v16  ;;  %554 = vrot.lane.b32.xlu1 %v4530_v19, %s4295_s25  ;;  %552 = vrot.lane.b32.xlu0 %v4535_v20, %s4295_s25 }
  0xcc   :  { %v299_v23 = vpop.permute.xlu1 %298  ;;  %v285_v17 = vpop.permute.xlu0 %284 }
  0xcd   :  { %304 = vst.msk [vmem:[#allocation2 + $0x29] sm:$0xfe] %vm54_vm4, %v299_v23 }
  0xce   :  { %290 = vst.msk [vmem:[#allocation2 + $0x1a] sm:$0xfc] %vm132_vm12, %v285_v17  ;;  %562 = vrot.lane.b32.xlu1 %v4530_v19, %s4296_s26  ;;  %560 = vrot.lane.b32.xlu0 %v4535_v20, %s4296_s26 }
  0xd0   :  { %v307_v18 = vpop.permute.xlu1 %306  ;;  %v301_v24 = vpop.permute.xlu0 %300  ;;  %v996_v29 = vld [vmem:[#allocation2 + $0x10] sm:$0xff] }
  0xd1   :  { %312 = vst.msk [vmem:[#allocation2 + $0x28] sm:$0xfc] %vm64_vm7, %v307_v18 }
  0xd2   :  { %305 = vst.msk [vmem:[#allocation2 + $0x31] sm:$0x7f] %vm56_vm5, %v301_v24  ;;  %570 = vrot.lane.b32.xlu1 %v4530_v19, %s4297_s27  ;;  %568 = vrot.lane.b32.xlu0 %v4535_v20, %s4297_s27 }
  0xd4   :  { %v319_v27 = vpop.permute.xlu1 %318  ;;  %v309_v28 = vpop.permute.xlu0 %308 }
  0xd5   :  { %v997_v30 = vld [vmem:[#allocation2 + $0x18] sm:$0xff]  ;;  %313 = vst.msk [vmem:[#allocation2 + $0x30] sm:$0xff] %vm6013_vm6, %v309_v28 }
  0xd6   :  { %v1016_v31 = vpack.c.bf16 %v997_v30, %v996_v29  ;;  %324 = vst.msk [vmem:[#allocation2 + $0x2a] sm:$0xff] %vm6009_vm9, %v319_v27  ;;  %582 = vrot.lane.b32.xlu1 %v4556_v21, %s4298_s28  ;;  %580 = vrot.lane.b32.xlu0 %v4561_v22, %s4298_s28 }
  0xd8   :  { %4071 = vmatmul.mubr.msk.bf16.gmra.mrb[4].mxu0 %vm1053_vm1, %v1016_v31  ;;  %v327_v32 = vpop.permute.xlu1 %326  ;;  %v321_v33 = vpop.permute.xlu0 %320 }
  0xd9   :  { %4074 = vmatprep.mubr.msk.bf16.mxu0 %vm6010_vm3, %v4299_v13  ;;  %332 = vst.msk [vmem:[#allocation2 + $0x29] sm:$0xfe] %vm6024_vm10, %v327_v32  ;;  %vm6026_vm10 = vcmask 195744  }
  0xda   :  { %325 = vst.msk [vmem:[#allocation2 + $0x32] sm:$0x3f] %vm6012_vm8, %v321_v33  ;;  %590 = vrot.lane.b32.xlu1 %v4556_v21, %s4300_s12  ;;  %588 = vrot.lane.b32.xlu0 %v4561_v22, %s4300_s12 }
  0xdc   :  { %v335_v34 = vpop.permute.xlu1 %334  ;;  %v329_v35 = vpop.permute.xlu0 %328 }
  0xdd   :  { %340 = vst.msk [vmem:[#allocation2 + $0x28] sm:$0xfc] %vm98_vm13, %v335_v34 }
  0xde   :  { %333 = vst.msk [vmem:[#allocation2 + $0x31] sm:$0x7f] %vm6025_vm11, %v329_v35  ;;  %598 = vrot.lane.b32.xlu1 %v4556_v21, %s4301_s17  ;;  %596 = vrot.lane.b32.xlu0 %v4561_v22, %s4301_s17  ;;  %vm6027_vm11 = vcmask 228544  }
  0xe0   :  { %v271_v36 = vpop.permute.xlu1 %270  ;;  %v337_v37 = vpop.permute.xlu0 %336 }
  0xe1   :  { %275 = vst.msk [vmem:[#allocation2 + $0x24] sm:$0x3f] %vm114_vm14, %v271_v36 }
  0xe2   :  { %341 = vst.msk [vmem:[#allocation2 + $0x30] sm:$0xff] %vm6026_vm10, %v337_v37  ;;  %612 = vrot.lane.b32.xlu1 %v4530_v19, %s4293_s23  ;;  %610 = vrot.lane.b32.xlu0 %v4535_v20, %s4293_s23  ;;  %vm6028_vm10 = vcmask 162945  }
  0xe4   :  { %v279_v38 = vpop.permute.xlu1 %278  ;;  %v347_v39 = vpop.permute.xlu0 %346 }
  0xe5   :  { %283 = vst.msk [vmem:[#allocation2 + $0x23] sm:$0x7f] %vm124_vm0, %v279_v38 }
  0xe6   :  { %352 = vst.msk [vmem:[#allocation2 + $0x2a] sm:$0xff] %vm6027_vm11, %v347_v39  ;;  %620 = vrot.lane.b32.xlu1 %v4530_v19, %s4294_s24  ;;  %618 = vrot.lane.b32.xlu0 %v4535_v20, %s4294_s24  ;;  %vm6029_vm11 = vcmask 161920  }
  0xe8   :  { %v287_v40 = vpop.permute.xlu1 %286  ;;  %v355_v41 = vpop.permute.xlu0 %354 }
  0xe9   :  { %291 = vst.msk [vmem:[#allocation2 + $0x22] sm:$0xff] %vm134_vm15, %v287_v40  ;;  %v888_v40 = vld [vmem:[%s5992_s0 + $0xe0] sm:$0xff] }
  0xea   :  { %360 = vst.msk [vmem:[#allocation2 + $0x29] sm:$0xfe] %vm122_vm2, %v355_v41  ;;  %632 = vrot.lane.b32.xlu1 %v4556_v21, %s4295_s25  ;;  %630 = vrot.lane.b32.xlu0 %v4561_v22, %s4295_s25 }
  0xec   :  { %v377_v42 = vpop.permute.xlu1 %376  ;;  %v363_v43 = vpop.permute.xlu0 %362 }
  0xed   :  { %382 = vst.msk [vmem:[#allocation2 + $0x37] sm:$0xfe] %vm54_vm4, %v377_v42 }
  0xee   :  { %368 = vst.msk [vmem:[#allocation2 + $0x28] sm:$0xfc] %vm132_vm12, %v363_v43  ;;  %640 = vrot.lane.b32.xlu1 %v4556_v21, %s4296_s26  ;;  %638 = vrot.lane.b32.xlu0 %v4561_v22, %s4296_s26 }
  0xf0   :  { %v385_v19 = vpop.permute.xlu1 %384  ;;  %v379_v20 = vpop.permute.xlu0 %378  ;;  %v998_v48 = vld [vmem:[#allocation2 + $0x20] sm:$0xff] }
  0xf1   :  { %390 = vst.msk [vmem:[#allocation2 + $0x36] sm:$0xfc] %vm64_vm7, %v385_v19 }
  0xf2   :  { %383 = vst.msk [vmem:[#allocation2 + $0x3f] sm:$0x7f] %vm56_vm5, %v379_v20  ;;  %648 = vrot.lane.b32.xlu1 %v4556_v21, %s4297_s27  ;;  %646 = vrot.lane.b32.xlu0 %v4561_v22, %s4297_s27 }
  0xf4   :  { %v397_v44 = vpop.permute.xlu1 %396  ;;  %v387_v47 = vpop.permute.xlu0 %386 }
  0xf5   :  { %v999_v49 = vld [vmem:[#allocation2 + $0x28] sm:$0xff]  ;;  %391 = vst.msk [vmem:[#allocation2 + $0x3e] sm:$0xff] %vm6013_vm6, %v387_v47 }
  0xf6   :  { %v1017_v50 = vpack.c.bf16 %v999_v49, %v998_v48  ;;  %402 = vst.msk [vmem:[#allocation2 + $0x38] sm:$0xff] %vm6009_vm9, %v397_v44  ;;  %660 = vrot.lane.b32.xlu1 %v4604_v25, %s4298_s28  ;;  %658 = vrot.lane.b32.xlu0 %v4609_v26, %s4298_s28 }
  0xf8   :  { %4075 = vmatmul.mubr.msk.bf16.gmra.mrb[8].mxu0 %vm1053_vm1, %v1017_v50  ;;  %v405_v51 = vpop.permute.xlu1 %404  ;;  %v399_v52 = vpop.permute.xlu0 %398 }
  0xf9   :  { %4078 = vmatprep.mubr.msk.bf16.mxu0 %vm6010_vm3, %v4299_v13  ;;  %410 = vst.msk [vmem:[#allocation2 + $0x37] sm:$0xfe] %vm6028_vm10, %v405_v51  ;;  %vm6030_vm10 = vcmask 195744  }
  0xfa   :  { %403 = vst.msk [vmem:[#allocation2 + $0x40] sm:$0x3f] %vm6012_vm8, %v399_v52  ;;  %668 = vrot.lane.b32.xlu1 %v4604_v25, %s4300_s12  ;;  %666 = vrot.lane.b32.xlu0 %v4609_v26, %s4300_s12 }
  0xfc   :  { %v413_v53 = vpop.permute.xlu1 %412  ;;  %v407_v54 = vpop.permute.xlu0 %406 }
  0xfd   :  { %418 = vst.msk [vmem:[#allocation2 + $0x36] sm:$0xfc] %vm98_vm13, %v413_v53 }
  0xfe   :  { %411 = vst.msk [vmem:[#allocation2 + $0x3f] sm:$0x7f] %vm6029_vm11, %v407_v54  ;;  %676 = vrot.lane.b32.xlu1 %v4604_v25, %s4301_s17  ;;  %674 = vrot.lane.b32.xlu0 %v4609_v26, %s4301_s17  ;;  %vm6031_vm11 = vcmask 228544   ;;  %v939_v54 = vld [vmem:[%s5992_s0 + $0xe8] sm:$0xff] }
 0x100   :  { %v349_v55 = vpop.permute.xlu1 %348  ;;  %v415_v56 = vpop.permute.xlu0 %414 }
 0x101   :  { %353 = vst.msk [vmem:[#allocation2 + $0x32] sm:$0x3f] %vm114_vm14, %v349_v55 }
 0x102   :  { %419 = vst.msk [vmem:[#allocation2 + $0x3e] sm:$0xff] %vm6030_vm10, %v415_v56  ;;  %690 = vrot.lane.b32.xlu1 %v4556_v21, %s4293_s23  ;;  %688 = vrot.lane.b32.xlu0 %v4561_v22, %s4293_s23  ;;  %vm6032_vm10 = vcmask 161920  }
 0x104   :  { %v427_v57 = vpop.permute.xlu1 %426  ;;  %v425_v58 = vpop.permute.xlu0 %424 }
 0x105   :  { %431 = vst.msk [vmem:[#allocation2 + $0x40] sm:$0x3f] %vm114_vm14, %v427_v57 }
 0x106   :  { %430 = vst.msk [vmem:[#allocation2 + $0x38] sm:$0xff] %vm6031_vm11, %v425_v58  ;;  %768 = vrot.lane.b32.xlu1 %v4604_v25, %s4293_s23  ;;  %766 = vrot.lane.b32.xlu0 %v4609_v26, %s4293_s23  ;;  %vm6033_vm11 = vcmask 162945  }
 0x108   :  { %v433_v60 = vpop.permute.xlu1 %432  ;;  %v357_v61 = vpop.permute.xlu0 %356 }
 0x109   :  { %438 = vst.msk [vmem:[#allocation2 + $0x37] sm:$0xfe] %vm122_vm2, %v433_v60  ;;  %v966_v60 = vld [vmem:[%s5992_s0 + $0xf0] sm:$0xff] }
 0x10a   :  { %361 = vst.msk [vmem:[#allocation2 + $0x31] sm:$0x7f] %vm124_vm0, %v357_v61  ;;  %698 = vrot.lane.b32.xlu1 %v4556_v21, %s4294_s24  ;;  %696 = vrot.lane.b32.xlu0 %v4561_v22, %s4294_s24 }
 0x10c   :  { %v365_v62 = vpop.permute.xlu1 %364  ;;  %v435_v63 = vpop.permute.xlu0 %434 }
 0x10d   :  { %369 = vst.msk [vmem:[#allocation2 + $0x30] sm:$0xff] %vm134_vm15, %v365_v62 }
 0x10e   :  { %439 = vst.msk [vmem:[#allocation2 + $0x3f] sm:$0x7f] %vm124_vm0, %v435_v63  ;;  %776 = vrot.lane.b32.xlu1 %v4604_v25, %s4294_s24  ;;  %774 = vrot.lane.b32.xlu0 %v4609_v26, %s4294_s24 }
 0x110   :  { %v443_v0 = vpop.permute.xlu1 %442  ;;  %v441_v1 = vpop.permute.xlu0 %440 }
 0x111   :  { %447 = vst.msk [vmem:[#allocation2 + $0x3e] sm:$0xff] %vm134_vm15, %v443_v0 }
 0x112   :  { %446 = vst.msk [vmem:[#allocation2 + $0x36] sm:$0xfc] %vm132_vm12, %v441_v1  ;;  %710 = vrot.lane.b32.xlu1 %v4604_v25, %s4295_s25  ;;  %708 = vrot.lane.b32.xlu0 %v4609_v26, %s4295_s25  ;;  %v967_v1 = vld [vmem:[%s5992_s0 + $0xf8] sm:$0xff] }
 0x114   :  { %v457_v21 = vpop.permute.xlu1 %456  ;;  %v455_v22 = vpop.permute.xlu0 %454  ;;  %v1000_v2 = vld [vmem:[#allocation2 + $0x30] sm:$0xff] }
 0x115   :  { %461 = vst.msk [vmem:[#allocation2 + $0x4d] sm:$0x7f] %vm56_vm5, %v457_v21 }
 0x116   :  { %460 = vst.msk [vmem:[#allocation2 + $0x45] sm:$0xfe] %vm54_vm4, %v455_v22  ;;  %788 = vrot.lane.b32.xlu1 %v4676_v45, %s4295_s25  ;;  %786 = vrot.lane.b32.xlu0 %v4681_v46, %s4295_s25 }
 0x118   :  { %v465_v3 = vpop.permute.xlu1 %464  ;;  %v463_v4 = vpop.permute.xlu0 %462 }
 0x119   :  { %v1001_v5 = vld [vmem:[#allocation2 + $0x38] sm:$0xff]  ;;  %469 = vst.msk [vmem:[#allocation2 + $0x4c] sm:$0xff] %vm6013_vm6, %v465_v3 }
 0x11a   :  { %468 = vst.msk [vmem:[#allocation2 + $0x44] sm:$0xfc] %vm64_vm7, %v463_v4  ;;  %v1018_v6 = vpack.c.bf16 %v1001_v5, %v1000_v2  ;;  %718 = vrot.lane.b32.xlu1 %v4604_v25, %s4296_s26  ;;  %716 = vrot.lane.b32.xlu0 %v4609_v26, %s4296_s26 }
 0x11c   :  { %4079 = vmatmul.mubr.msk.bf16.gmra.mrb[12].mxu0 %vm1053_vm1, %v1018_v6  ;;  %v477_v7 = vpop.permute.xlu1 %476  ;;  %v475_v8 = vpop.permute.xlu0 %474 }
 0x11d   :  { %4082 = vmatprep.mubr.msk.bf16.mxu0 %vm6010_vm3, %v4299_v13  ;;  %481 = vst.msk [vmem:[#allocation2 + $0x4e] sm:$0x3f] %vm6012_vm8, %v477_v7 }
 0x11e   :  { %480 = vst.msk [vmem:[#allocation2 + $0x46] sm:$0xff] %vm6009_vm9, %v475_v8  ;;  %796 = vrot.lane.b32.xlu1 %v4676_v45, %s4296_s26  ;;  %794 = vrot.lane.b32.xlu0 %v4681_v46, %s4296_s26  ;;  %vm6034_vm9 = vcmask 195744  }
 0x120   :  { %v485_v9 = vpop.permute.xlu1 %484  ;;  %v483_v10 = vpop.permute.xlu0 %482 }
 0x121   :  { %489 = vst.msk [vmem:[#allocation2 + $0x4d] sm:$0x7f] %vm6032_vm10, %v485_v9  ;;  %vm6035_vm10 = vcmask 228544  }
 0x122   :  { %488 = vst.msk [vmem:[#allocation2 + $0x45] sm:$0xfe] %vm6033_vm11, %v483_v10  ;;  %726 = vrot.lane.b32.xlu1 %v4604_v25, %s4297_s27  ;;  %724 = vrot.lane.b32.xlu0 %v4609_v26, %s4297_s27  ;;  %vm6037_vm11 = vcmask 161920  }
 0x124   :  { %v493_v11 = vpop.permute.xlu1 %492  ;;  %v491_v12 = vpop.permute.xlu0 %490 }
 0x125   :  { %497 = vst.msk [vmem:[#allocation2 + $0x4c] sm:$0xff] %vm6034_vm9, %v493_v11  ;;  %vm6036_vm9 = vcmask 130144  }
 0x126   :  { %496 = vst.msk [vmem:[#allocation2 + $0x44] sm:$0xfc] %vm98_vm13, %v491_v12  ;;  %804 = vrot.lane.b32.xlu1 %v4676_v45, %s4297_s27  ;;  %802 = vrot.lane.b32.xlu0 %v4681_v46, %s4297_s27 }
 0x128   :  { %v505_v15 = vpop.permute.xlu1 %504  ;;  %v503_v16 = vpop.permute.xlu0 %502 }
 0x129   :  { %509 = vst.msk [vmem:[#allocation2 + $0x4e] sm:$0x3f] %vm114_vm14, %v505_v15  ;;  %v5075_v15 = vld [vmem:[%s5994_s2] ss:$0 sm:$0xff] }
 0x12a   :  { %508 = vst.msk [vmem:[#allocation2 + $0x46] sm:$0xff] %vm6035_vm10, %v503_v16  ;;  %738 = vrot.lane.b32.xlu1 %v4676_v45, %s4298_s28  ;;  %736 = vrot.lane.b32.xlu0 %v4681_v46, %s4298_s28  ;;  %vm6038_vm10 = vcmask 162945  }
 0x12c   :  { %v513_v25 = vpop.permute.xlu1 %512  ;;  %v511_v26 = vpop.permute.xlu0 %510 }
 0x12d   :  { %517 = vst.msk [vmem:[#allocation2 + $0x4d] sm:$0x7f] %vm124_vm0, %v513_v25 }
 0x12e   :  { %516 = vst.msk [vmem:[#allocation2 + $0x45] sm:$0xfe] %vm122_vm2, %v511_v26  ;;  %744 = vrot.lane.b32.xlu1 %v4681_v46, %s4300_s12  ;;  %814 = vrot.lane.b32.xlu0 %v4726_v59, %s4298_s28 }
 0x130   :  { %v521_v23 = vpop.permute.xlu1 %520  ;;  %v519_v17 = vpop.permute.xlu0 %518 }
 0x131   :  { %525 = vst.msk [vmem:[#allocation2 + $0x4c] sm:$0xff] %vm134_vm15, %v521_v23 }
 0x132   :  { %524 = vst.msk [vmem:[#allocation2 + $0x44] sm:$0xfc] %vm132_vm12, %v519_v17  ;;  %822 = vrot.lane.b32.xlu1 %v4726_v59, %s4300_s12  ;;  %746 = vrot.lane.b32.xlu0 %v4676_v45, %s4300_s12 }
 0x134   :  { %v535_v18 = vpop.permute.xlu1 %534  ;;  %v533_v24 = vpop.permute.xlu0 %532 }
 0x135   :  { %539 = vst.msk [vmem:[#allocation2 + $0x5b] sm:$0x7f] %vm56_vm5, %v535_v18 }
 0x136   :  { %538 = vst.msk [vmem:[#allocation2 + $0x53] sm:$0xfe] %vm54_vm4, %v533_v24  ;;  %754 = vrot.lane.b32.xlu1 %v4676_v45, %s4301_s17  ;;  %752 = vrot.lane.b32.xlu0 %v4681_v46, %s4301_s17 }
 0x138   :  { %v543_v27 = vpop.permute.xlu1 %542  ;;  %v541_v28 = vpop.permute.xlu0 %540 }
 0x139   :  { %v1002_v29 = vld [vmem:[#allocation2 + $0x40] sm:$0xff]  ;;  %v1003_v30 = vld [vmem:[#allocation2 + $0x48] sm:$0xff]  ;;  %547 = vst.msk [vmem:[#allocation2 + $0x5a] sm:$0xff] %vm6013_vm6, %v543_v27 }
 0x13a   :  { %546 = vst.msk [vmem:[#allocation2 + $0x52] sm:$0xfc] %vm64_vm7, %v541_v28  ;;  %v1019_v31 = vpack.c.bf16 %v1003_v30, %v1002_v29  ;;  %844 = vrot.lane.b32.xlu1 %v4681_v46, %s4293_s23  ;;  %830 = vrot.lane.b32.xlu0 %v4726_v59, %s4301_s17 }
 0x13c   :  { %4083 = vmatmul.mubr.msk.bf16.gmra.mrb[16].mxu0 %vm1053_vm1, %v1019_v31  ;;  %v555_v32 = vpop.permute.xlu1 %554  ;;  %v553_v33 = vpop.permute.xlu0 %552 }
 0x13d   :  { %4086 = vmatprep.mubr.msk.bf16.mxu0 %vm6010_vm3, %v4299_v13  ;;  %559 = vst.msk [vmem:[#allocation2 + $0x5c] sm:$0x3f] %vm6012_vm8, %v555_v32 }
 0x13e   :  { %558 = vst.msk [vmem:[#allocation2 + $0x54] sm:$0xff] %vm6036_vm9, %v553_v33  ;;  %852 = vrot.lane.b32.xlu1 %v4681_v46, %s4294_s24  ;;  %846 = vrot.lane.b32.xlu0 %v4676_v45, %s4293_s23  ;;  %vm6039_vm9 = vcmask 195744  }
 0x140   :  { %v563_v34 = vpop.permute.xlu1 %562  ;;  %v561_v35 = vpop.permute.xlu0 %560 }
 0x141   :  { %567 = vst.msk [vmem:[#allocation2 + $0x5b] sm:$0x7f] %vm6037_vm11, %v563_v34  ;;  %vm6040_vm11 = vcmask 228544  }
 0x142   :  { %566 = vst.msk [vmem:[#allocation2 + $0x53] sm:$0xfe] %vm6038_vm10, %v561_v35  ;;  %864 = vrot.lane.b32.xlu1 %v4726_v59, %s4295_s25  ;;  %854 = vrot.lane.b32.xlu0 %v4676_v45, %s4294_s24  ;;  %vm6041_vm10 = vcmask 130144  }
 0x144   :  { %v571_v36 = vpop.permute.xlu1 %570  ;;  %v569_v37 = vpop.permute.xlu0 %568 }
 0x145   :  { %575 = vst.msk [vmem:[#allocation2 + $0x5a] sm:$0xff] %vm6039_vm9, %v571_v36  ;;  %vm6042_vm9 = vcmask 161920  }
 0x146   :  { %574 = vst.msk [vmem:[#allocation2 + $0x52] sm:$0xfc] %vm98_vm13, %v569_v37  ;;  %872 = vrot.lane.b32.xlu1 %v4726_v59, %s4296_s26  ;;  %866 = vrot.lane.b32.xlu0 %v4772_v14, %s4295_s25 }
 0x148   :  { %v583_v46 = vpop.permute.xlu1 %582  ;;  %v581_v38 = vpop.permute.xlu0 %580 }
 0x149   :  { %587 = vst.msk [vmem:[#allocation2 + $0x5c] sm:$0x3f] %vm114_vm14, %v583_v46 }
 0x14a   :  { %586 = vst.msk [vmem:[#allocation2 + $0x54] sm:$0xff] %vm6040_vm11, %v581_v38  ;;  %880 = vrot.lane.b32.xlu1 %v4726_v59, %s4297_s27  ;;  %874 = vrot.lane.b32.xlu0 %v4772_v14, %s4296_s26  ;;  %vm6043_vm11 = vcmask 162945  }
 0x14c   :  { %v591_v45 = vpop.permute.xlu1 %590  ;;  %v589_v39 = vpop.permute.xlu0 %588 }
 0x14d   :  { %595 = vst.msk [vmem:[#allocation2 + $0x5b] sm:$0x7f] %vm124_vm0, %v591_v45 }
 0x14e   :  { %594 = vst.msk [vmem:[#allocation2 + $0x53] sm:$0xfe] %vm122_vm2, %v589_v39  ;;  %816 = vrot.lane.b32.xlu1 %v4772_v14, %s4298_s28  ;;  %882 = vrot.lane.b32.xlu0 %v4772_v14, %s4297_s27 }
 0x150   :  { %v599_v41 = vpop.permute.xlu1 %598  ;;  %v597_v42 = vpop.permute.xlu0 %596 }
 0x151   :  { %603 = vst.msk [vmem:[#allocation2 + $0x5a] sm:$0xff] %vm134_vm15, %v599_v41 }
 0x152   :  { %602 = vst.msk [vmem:[#allocation2 + $0x52] sm:$0xfc] %vm132_vm12, %v597_v42  ;;  %824 = vrot.lane.b32.xlu1 %v4772_v14, %s4300_s12  ;;  %892 = vrot.lane.b32.xlu0 %v888_v40, %s4298_s28 }
 0x154   :  { %v613_v43 = vpop.permute.xlu1 %612  ;;  %v611_v19 = vpop.permute.xlu0 %610 }
 0x155   :  { %617 = vst.msk [vmem:[#allocation2 + $0x69] sm:$0x7f] %vm56_vm5, %v613_v43 }
 0x156   :  { %616 = vst.msk [vmem:[#allocation2 + $0x61] sm:$0xfe] %vm54_vm4, %v611_v19  ;;  %832 = vrot.lane.b32.xlu1 %v4772_v14, %s4301_s17  ;;  %900 = vrot.lane.b32.xlu0 %v888_v40, %s4300_s12 }
 0x158   :  { %v621_v20 = vpop.permute.xlu1 %620  ;;  %v619_v44 = vpop.permute.xlu0 %618 }
 0x159   :  { %v1004_v47 = vld [vmem:[#allocation2 + $0x50] sm:$0xff]  ;;  %v1005_v48 = vld [vmem:[#allocation2 + $0x58] sm:$0xff]  ;;  %625 = vst.msk [vmem:[#allocation2 + $0x68] sm:$0xff] %vm6013_vm6, %v621_v20 }
 0x15a   :  { %624 = vst.msk [vmem:[#allocation2 + $0x60] sm:$0xfc] %vm64_vm7, %v619_v44  ;;  %v1020_v49 = vpack.c.bf16 %v1005_v48, %v1004_v47  ;;  %922 = vrot.lane.b32.xlu1 %v4726_v59, %s4293_s23  ;;  %908 = vrot.lane.b32.xlu0 %v888_v40, %s4301_s17 }
 0x15c   :  { %4087 = vmatmul.mubr.msk.bf16.gmra.mrb[20].mxu0 %vm1053_vm1, %v1020_v49  ;;  %v633_v50 = vpop.permute.xlu1 %632  ;;  %v631_v51 = vpop.permute.xlu0 %630 }
 0x15d   :  { %4090 = vmatprep.mubr.msk.bf16.mxu0 %vm6010_vm3, %v4299_v13  ;;  %637 = vst.msk [vmem:[#allocation2 + $0x6a] sm:$0x3f] %vm6012_vm8, %v633_v50 }
 0x15e   :  { %636 = vst.msk [vmem:[#allocation2 + $0x62] sm:$0xff] %vm6041_vm10, %v631_v51  ;;  %930 = vrot.lane.b32.xlu1 %v4726_v59, %s4294_s24  ;;  %924 = vrot.lane.b32.xlu0 %v4772_v14, %s4293_s23  ;;  %vm6044_vm10 = vcmask 195744  }
 0x160   :  { %v641_v52 = vpop.permute.xlu1 %640  ;;  %v639_v53 = vpop.permute.xlu0 %638 }
 0x161   :  { %645 = vst.msk [vmem:[#allocation2 + $0x69] sm:$0x7f] %vm6042_vm9, %v641_v52  ;;  %vm6045_vm9 = vcmask 228544  }
 0x162   :  { %644 = vst.msk [vmem:[#allocation2 + $0x61] sm:$0xfe] %vm6043_vm11, %v639_v53  ;;  %942 = vrot.lane.b32.xlu1 %v888_v40, %s4295_s25  ;;  %932 = vrot.lane.b32.xlu0 %v4772_v14, %s4294_s24  ;;  %vm6046_vm11 = vcmask 130144  }
 0x164   :  { %v649_v55 = vpop.permute.xlu1 %648  ;;  %v647_v59 = vpop.permute.xlu0 %646 }
 0x165   :  { %653 = vst.msk [vmem:[#allocation2 + $0x68] sm:$0xff] %vm6044_vm10, %v649_v55  ;;  %vm6047_vm10 = vmmov %vm6046_vm11 }
 0x166   :  { %652 = vst.msk [vmem:[#allocation2 + $0x60] sm:$0xfc] %vm98_vm13, %v647_v59  ;;  %950 = vrot.lane.b32.xlu1 %v888_v40, %s4296_s26  ;;  %944 = vrot.lane.b32.xlu0 %v939_v54, %s4295_s25 }
 0x168   :  { %v661_v56 = vpop.permute.xlu1 %660  ;;  %v659_v57 = vpop.permute.xlu0 %658 }
 0x169   :  { %665 = vst.msk [vmem:[#allocation2 + $0x6a] sm:$0x3f] %vm114_vm14, %v661_v56 }
 0x16a   :  { %664 = vst.msk [vmem:[#allocation2 + $0x62] sm:$0xff] %vm6045_vm9, %v659_v57  ;;  %958 = vrot.lane.b32.xlu1 %v888_v40, %s4297_s27  ;;  %952 = vrot.lane.b32.xlu0 %v939_v54, %s4296_s26  ;;  %vm1232_vm9 = vcmask 64512  }
 0x16c   :  { %v669_v14 = vpop.permute.xlu1 %668  ;;  %v667_v58 = vpop.permute.xlu0 %666 }
 0x16d   :  { %673 = vst.msk [vmem:[#allocation2 + $0x69] sm:$0x7f] %vm124_vm0, %v669_v14 }
 0x16e   :  { %672 = vst.msk [vmem:[#allocation2 + $0x61] sm:$0xfe] %vm122_vm2, %v667_v58  ;;  %894 = vrot.lane.b32.xlu1 %v939_v54, %s4298_s28  ;;  %960 = vrot.lane.b32.xlu0 %v939_v54, %s4297_s27 }
 0x170   :  { %v677_v61 = vpop.permute.xlu1 %676  ;;  %v675_v62 = vpop.permute.xlu0 %674 }
 0x171   :  { %681 = vst.msk [vmem:[#allocation2 + $0x68] sm:$0xff] %vm134_vm15, %v677_v61 }
 0x172   :  { %680 = vst.msk [vmem:[#allocation2 + $0x60] sm:$0xfc] %vm132_vm12, %v675_v62  ;;  %902 = vrot.lane.b32.xlu1 %v939_v54, %s4300_s12  ;;  %970 = vrot.lane.b32.xlu0 %v966_v60, %s4298_s28 }
 0x174   :  { %v691_v63 = vpop.permute.xlu1 %690  ;;  %v689_v0 = vpop.permute.xlu0 %688 }
 0x175   :  { %695 = vst.msk [vmem:[#allocation2 + $0x77] sm:$0x7f] %vm56_vm5, %v691_v63 }
 0x176   :  { %694 = vst.msk [vmem:[#allocation2 + $0x6f] sm:$0xfe] %vm54_vm4, %v689_v0  ;;  %910 = vrot.lane.b32.xlu1 %v939_v54, %s4301_s17  ;;  %978 = vrot.lane.b32.xlu0 %v966_v60, %s4300_s12 }
 0x178   :  { %v769_v21 = vpop.permute.xlu1 %768  ;;  %v767_v22 = vpop.permute.xlu0 %766  ;;  %v1007_v3 = vld [vmem:[#allocation2 + $0x68] sm:$0xff] }
 0x179   :  { %v1006_v2 = vld [vmem:[#allocation2 + $0x60] sm:$0xff]  ;;  %773 = vst.msk [vmem:[#allocation2 + $0x85] sm:$0x7f] %vm56_vm5, %v769_v21 }
 0x17a   :  { %772 = vst.msk [vmem:[#allocation2 + $0x7d] sm:$0xfe] %vm54_vm4, %v767_v22  ;;  %v1021_v4 = vpack.c.bf16 %v1007_v3, %v1006_v2  ;;  %986 = vrot.lane.b32.xlu0 %v966_v60, %s4301_s17  ;;  %972 = vrot.lane.b32.xlu1 %v967_v1, %s4298_s28 }
 0x17c   :  { %4091 = vmatmul.mubr.msk.bf16.gmra.mrb[24].mxu0 %vm1053_vm1, %v1021_v4  ;;  %v699_v5 = vpop.permute.xlu1 %698  ;;  %v697_v6 = vpop.permute.xlu0 %696 }
 0x17d   :  { %4094 = vmatprep.mubr.msk.bf16.mxu0 %vm6010_vm3, %v4299_v13  ;;  %703 = vst.msk [vmem:[#allocation2 + $0x76] sm:$0xff] %vm6013_vm6, %v699_v5  ;;  %vm6049_vm3 = vcmask 162945  }
 0x17e   :  { %702 = vst.msk [vmem:[#allocation2 + $0x6e] sm:$0xfc] %vm64_vm7, %v697_v6  ;;  %980 = vrot.lane.b32.xlu0 %v967_v1, %s4300_s12  ;;  %988 = vrot.lane.b32.xlu1 %v967_v1, %s4301_s17  ;;  %s4303_s12 = smov 40  }
 0x180   :  { %v777_v7 = vpop.permute.xlu1 %776  ;;  %v775_v8 = vpop.permute.xlu0 %774 }
 0x181   :  { %781 = vst.msk [vmem:[#allocation2 + $0x84] sm:$0xff] %vm6013_vm6, %v777_v7 }
 0x182   :  { %780 = vst.msk [vmem:[#allocation2 + $0x7c] sm:$0xfc] %vm64_vm7, %v775_v8 }
 0x184   :  { %v711_v9 = vpop.permute.xlu1 %710  ;;  %v709_v10 = vpop.permute.xlu0 %708 }
 0x185   :  { %715 = vst.msk [vmem:[#allocation2 + $0x78] sm:$0x3f] %vm6012_vm8, %v711_v9 }
 0x186   :  { %714 = vst.msk [vmem:[#allocation2 + $0x70] sm:$0xff] %vm6046_vm11, %v709_v10  ;;  %vm6048_vm11 = vcmask 161920  }
 0x188   :  { %v789_v11 = vpop.permute.xlu1 %788  ;;  %v787_v12 = vpop.permute.xlu0 %786 }
 0x189   :  { %793 = vst.msk [vmem:[#allocation2 + $0x86] sm:$0x3f] %vm6012_vm8, %v789_v11  ;;  %vm6051_vm8 = vmmov %vm6049_vm3 }
 0x18a   :  { %792 = vst.msk [vmem:[#allocation2 + $0x7e] sm:$0xff] %vm6047_vm10, %v787_v12  ;;  %vm6050_vm10 = vmmov %vm6048_vm11 }
 0x18b   :  { %v1125_v16 = vpop.f32.mrb[0].mxu0 }
 0x18c   :  { %v1126_v25 = vadd.f32 %v5075_v15, %v1125_v16  ;;  %v4068_v26 = vpop.f32.mrb[1].mxu0  ;;  %v719_v23 = vpop.permute.xlu1 %718 }
 0x18d   :  { %v717_v17 = vpop.permute.xlu0 %716  ;;  %723 = vst.msk [vmem:[#allocation2 + $0x77] sm:$0x7f] %vm6048_vm11, %v719_v23  ;;  %v1128_v24 = vpop.f32.mrb[2].mxu0  ;;  %vm6052_vm11 = vcmask 195744  }
 0x18e   :  { %v1211_v18 = vmax.f32 %v1126_v25, 0.0  ;;  %722 = vst.msk [vmem:[#allocation2 + $0x6f] sm:$0xfe] %vm6049_vm3, %v717_v17  ;;  %v1129_v27 = vadd.f32 %v5075_v15, %v1128_v24  ;;  %v4069_v28 = vpop.f32.mrb[3].mxu0  ;;  %vm1257_vm3 = vcmask 60416  }
 0x190   :  { %1233 = vst.msk [vmem:[#allocation3] sm:$0xff] %vm1232_vm9, %v1211_v18  ;;  %v1212_v29 = vmax.f32 %v1129_v27, 0.0  ;;  %v797_v30 = vpop.permute.xlu1 %796 }
 0x191   :  { %v795_v31 = vpop.permute.xlu0 %794  ;;  %801 = vst.msk [vmem:[#allocation2 + $0x85] sm:$0x7f] %vm6050_vm10, %v797_v30  ;;  %vm6054_vm10 = vcmask 228544  }
 0x192   :  { %800 = vst.msk [vmem:[#allocation2 + $0x7d] sm:$0xfe] %vm6051_vm8, %v795_v31  ;;  %vm6053_vm8 = vmmov %vm6052_vm11 }
 0x193   :  { %1234 = vst.msk [vmem:[#allocation3 + $0x8] sm:$0xff] %vm1232_vm9, %v1212_v29 }
 0x194   :  { %v727_v32 = vpop.permute.xlu1 %726 }
 0x195   :  { %v725_v33 = vpop.permute.xlu0 %724  ;;  %731 = vst.msk [vmem:[#allocation2 + $0x76] sm:$0xff] %vm6052_vm11, %v727_v32  ;;  %vm6055_vm11 = vmmov %vm6054_vm10 }
 0x196   :  { %730 = vst.msk [vmem:[#allocation2 + $0x6e] sm:$0xfc] %vm98_vm13, %v725_v33 }
 0x197   :  { %v5089_v34 = vld [vmem:[#allocation3] sm:$0xff] }
 0x198   :  { %1261 = vrot.lane.b32.xlu0 %v5089_v34, %s4294_s24  ;;  %1256 = vst.msk [vmem:[#allocation4] sm:$0xff] %vm1232_vm9, %v5089_v34  ;;  %v805_v35 = vpop.permute.xlu1 %804 }
 0x199   :  { %v803_v36 = vpop.permute.xlu0 %802  ;;  %809 = vst.msk [vmem:[#allocation2 + $0x84] sm:$0xff] %vm6053_vm8, %v805_v35  ;;  %vm6056_vm8 = vcmask 130144  }
 0x19a   :  { %808 = vst.msk [vmem:[#allocation2 + $0x7c] sm:$0xfc] %vm98_vm13, %v803_v36  ;;  %v1255_v37 = vld [vmem:[#allocation3 + $0x8] sm:$0x3f] }
 0x19b   :  { %1263 = vrot.lane.b32.xlu1 %v1255_v37, %s4294_s24  ;;  %1258 = vst.msk [vmem:[#allocation4 + $0x8] sm:$0xf] %vm1257_vm3, %v1255_v37 }
 0x19c   :  { %v739_v46 = vpop.permute.xlu1 %738 }
 0x19d   :  { %v737_v38 = vpop.permute.xlu0 %736  ;;  %743 = vst.msk [vmem:[#allocation2 + $0x78] sm:$0x3f] %vm114_vm14, %v739_v46 }
 0x19e   :  { %742 = vst.msk [vmem:[#allocation2 + $0x70] sm:$0xff] %vm6054_vm10, %v737_v38  ;;  %vm6057_vm10 = vmmov 0  }
 0x1a0   :  { %v745_v45 = vpop.permute.xlu1 %744 }
 0x1a1   :  { %v815_v39 = vpop.permute.xlu0 %814  ;;  %750 = vst.msk [vmem:[#allocation2 + $0x6f] sm:$0xfe] %vm122_vm2, %v745_v45 }
 0x1a2   :  { %820 = vst.msk [vmem:[#allocation2 + $0x7e] sm:$0xff] %vm6055_vm11, %v815_v39  ;;  %vm6058_vm11 = vcmask 162945  }
 0x1a4   :  { %v823_v40 = vpop.permute.xlu1 %822 }
 0x1a5   :  { %v747_v41 = vpop.permute.xlu0 %746  ;;  %828 = vst.msk [vmem:[#allocation2 + $0x7d] sm:$0xfe] %vm122_vm2, %v823_v40 }
 0x1a6   :  { %751 = vst.msk [vmem:[#allocation2 + $0x77] sm:$0x7f] %vm124_vm0, %v747_v41 }
 0x1a8   :  { %v755_v42 = vpop.permute.xlu1 %754 }
 0x1a9   :  { %v753_v43 = vpop.permute.xlu0 %752  ;;  %759 = vst.msk [vmem:[#allocation2 + $0x76] sm:$0xff] %vm134_vm15, %v755_v42 }
 0x1aa   :  { %758 = vst.msk [vmem:[#allocation2 + $0x6e] sm:$0xfc] %vm132_vm12, %v753_v43 }
 0x1ab   :  { %v1133_v19 = vpop.f32.mrb[4].mxu0 }
 0x1ac   :  { %v1134_v20 = vadd.f32 %v5075_v15, %v1133_v19  ;;  %v4072_v44 = vpop.f32.mrb[5].mxu0  ;;  %v845_v47 = vpop.permute.xlu1 %844 }
 0x1ad   :  { %v831_v48 = vpop.permute.xlu0 %830  ;;  %850 = vst.msk [vmem:[#allocation2 + $0x8b] sm:$0xfe] %vm54_vm4, %v845_v47  ;;  %v1136_v50 = vpop.f32.mrb[6].mxu0 }
 0x1ae   :  { %v1213_v49 = vmax.f32 %v1134_v20, 0.0  ;;  %836 = vst.msk [vmem:[#allocation2 + $0x7c] sm:$0xfc] %vm132_vm12, %v831_v48  ;;  %v1137_v51 = vadd.f32 %v5075_v15, %v1136_v50  ;;  %v4073_v52 = vpop.f32.mrb[7].mxu0 }
 0x1b0   :  { %1235 = vst.msk [vmem:[#allocation3 + $0x10] sm:$0xff] %vm1232_vm9, %v1213_v49  ;;  %v1214_v53 = vmax.f32 %v1137_v51, 0.0  ;;  %v853_v54 = vpop.permute.xlu1 %852 }
 0x1b1   :  { %v847_v55 = vpop.permute.xlu0 %846  ;;  %858 = vst.msk [vmem:[#allocation2 + $0x8a] sm:$0xfc] %vm64_vm7, %v853_v54  ;;  %v1008_v57 = vld [vmem:[#allocation2 + $0x70] sm:$0xff] }
 0x1b2   :  { %851 = vst.msk [vmem:[#allocation2 + $0x93] sm:$0x7f] %vm56_vm5, %v847_v55 }
 0x1b3   :  { %1236 = vst.msk [vmem:[#allocation3 + $0x18] sm:$0xff] %vm1232_vm9, %v1214_v53 }
 0x1b4   :  { %v865_v59 = vpop.permute.xlu1 %864 }
 0x1b5   :  { %v855_v56 = vpop.permute.xlu0 %854  ;;  %v1009_v14 = vld [vmem:[#allocation2 + $0x78] sm:$0xff] }
 0x1b6   :  { %859 = vst.msk [vmem:[#allocation2 + $0x92] sm:$0xff] %vm6013_vm6, %v855_v56  ;;  %v1022_v58 = vpack.c.bf16 %v1009_v14, %v1008_v57  ;;  %vm6059_vm6 = vcmask 128096  }
 0x1b7   :  { %870 = vst.msk [vmem:[#allocation2 + $0x8c] sm:$0xff] %vm6056_vm8, %v865_v59  ;;  %v5117_v60 = vld [vmem:[#allocation3 + $0xe] sm:$0xff]  ;;  %vm6060_vm8 = vcmask 161920  }
 0x1b8   :  { %4095 = vmatmul.mubr.msk.bf16.gmra.mrb[28].mxu0 %vm1053_vm1, %v1022_v58  ;;  %1355 = vrot.lane.b32.xlu0 %v5117_v60, %s4294_s24  ;;  %1351 = vst.msk [vmem:[#allocation4 + $0xc] sm:$0xff] %vm1232_vm9, %v5117_v60  ;;  %v873_v61 = vpop.permute.xlu1 %872 }
 0x1b9   :  { %v867_v62 = vpop.permute.xlu0 %866  ;;  %4098 = vmatprep.mubr.msk.bf16.mxu0 %vm6057_vm10, %v4299_v13  ;;  %878 = vst.msk [vmem:[#allocation2 + $0x8b] sm:$0xfe] %vm6058_vm11, %v873_v61  ;;  %vm6062_vm11 = vcmask 228544  }
 0x1ba   :  { %871 = vst.msk [vmem:[#allocation2 + $0x94] sm:$0x3f] %vm6059_vm6, %v867_v62  ;;  %v1350_v63 = vld [vmem:[#allocation3 + $0x16] sm:$0x3f]  ;;  %vm6061_vm6 = vcmask 195744  }
 0x1bb   :  { %1357 = vrot.lane.b32.xlu1 %v1350_v63, %s4294_s24  ;;  %1352 = vst.msk [vmem:[#allocation4 + $0x14] sm:$0xf] %vm1257_vm3, %v1350_v63  ;;  %v1282_v36 = vld [vmem:[#allocation3 + $0x16] sm:$0x3f] }
 0x1bc   :  { %1271 = vrot.lane.b32.xlu0 %v5089_v34, %s4296_s26  ;;  %v881_v0 = vpop.permute.xlu1 %880 }
 0x1bd   :  { %v875_v1 = vpop.permute.xlu0 %874  ;;  %886 = vst.msk [vmem:[#allocation2 + $0x8a] sm:$0xfc] %vm98_vm13, %v881_v0 }
 0x1be   :  { %879 = vst.msk [vmem:[#allocation2 + $0x93] sm:$0x7f] %vm6060_vm8, %v875_v1  ;;  %vm6064_vm8 = vcmask 130144  }
 0x1bf   :  { %1273 = vrot.lane.b32.xlu1 %v1255_v37, %s4296_s26 }
 0x1c0   :  { %1363 = vrot.lane.b32.xlu0 %v5117_v60, %s4296_s26  ;;  %v817_v21 = vpop.permute.xlu1 %816 }
 0x1c1   :  { %v883_v22 = vpop.permute.xlu0 %882  ;;  %821 = vst.msk [vmem:[#allocation2 + $0x86] sm:$0x3f] %vm114_vm14, %v817_v21 }
 0x1c2   :  { %887 = vst.msk [vmem:[#allocation2 + $0x92] sm:$0xff] %vm6061_vm6, %v883_v22  ;;  %vm6067_vm6 = vcmask 161920  }
 0x1c3   :  { %1365 = vrot.lane.b32.xlu1 %v1350_v63, %s4296_s26 }
 0x1c4   :  { %v825_v2 = vpop.permute.xlu1 %824 }
 0x1c5   :  { %v893_v3 = vpop.permute.xlu0 %892  ;;  %829 = vst.msk [vmem:[#allocation2 + $0x85] sm:$0x7f] %vm124_vm0, %v825_v2 }
 0x1c6   :  { %898 = vst.msk [vmem:[#allocation2 + $0x8c] sm:$0xff] %vm6062_vm11, %v893_v3  ;;  %vm6068_vm11 = vcmask 195744  }
 0x1c8   :  { %v833_v4 = vpop.permute.xlu1 %832 }
 0x1c9   :  { %v901_v5 = vpop.permute.xlu0 %900  ;;  %837 = vst.msk [vmem:[#allocation2 + $0x84] sm:$0xff] %vm134_vm15, %v833_v4 }
 0x1ca   :  { %906 = vst.msk [vmem:[#allocation2 + $0x8b] sm:$0xfe] %vm122_vm2, %v901_v5 }
 0x1cb   :  { %v1141_v6 = vpop.f32.mrb[8].mxu0 }
 0x1cc   :  { %v1142_v7 = vadd.f32 %v5075_v15, %v1141_v6  ;;  %v4076_v8 = vpop.f32.mrb[9].mxu0  ;;  %v923_v9 = vpop.permute.xlu1 %922  ;;  %v4163_v6 = vld [vmem:[%s5995_s3] sm:$0xff]  }
 0x1cd   :  { %v909_v10 = vpop.permute.xlu0 %908  ;;  %928 = vst.msk [vmem:[#allocation2 + $0x99] sm:$0xfe] %vm54_vm4, %v923_v9  ;;  %v1144_v12 = vpop.f32.mrb[10].mxu0  ;;  %vm6063_vm4 = vcmask 97344   ;;  %4110 = vmatprep.subr.bf16.mxu0 %v4163_v6  ;;  %4132 = vmatprep.subr.bf16.mxu1 %v4163_v6  ;;  %v4164_v8 = vld [vmem:[%s5995_s3 + $0x8] sm:$0xff]  }
 0x1ce   :  { %v1215_v11 = vmax.f32 %v1142_v7, 0.0  ;;  %914 = vst.msk [vmem:[#allocation2 + $0x8a] sm:$0xfc] %vm132_vm12, %v909_v10  ;;  %v1145_v16 = vadd.f32 %v5075_v15, %v1144_v12  ;;  %v4077_v25 = vpop.f32.mrb[11].mxu0  ;;  %4111 = vmatpush3.bf16.msra.mxu0 %v4163_v6  ;;  %4137 = vmatpush3.bf16.msra.mxu1 %v4163_v6  ;;  %v4165_v10 = vld [vmem:[%s5995_s3 + $0x10] sm:$0xff]  }
 0x1cf   :  { %4112 = vmatprep.subr.bf16.mxu0 %v4164_v8  ;;  %4133 = vmatprep.subr.bf16.mxu1 %v4164_v8  ;;  %v4167_v12 = vld [vmem:[%s5995_s3 + $0x20] ss:$0 sps:$4 sm:$0xff]  }
 0x1d0   :  { %1237 = vst.msk [vmem:[#allocation3 + $0x20] sm:$0xff] %vm1232_vm9, %v1215_v11  ;;  %v1216_v26 = vmax.f32 %v1145_v16, 0.0  ;;  %v931_v23 = vpop.permute.xlu1 %930  ;;  %v1010_v27 = vld [vmem:[#allocation2 + $0x80] sm:$0xff]  ;;  %v4166_v11 = vld [vmem:[%s5995_s3 + $0x18] sm:$0xff]  }
 0x1d1   :  { %v925_v17 = vpop.permute.xlu0 %924  ;;  %936 = vst.msk [vmem:[#allocation2 + $0x98] sm:$0xfc] %vm64_vm7, %v931_v23  ;;  %vm6066_vm7 = vcmask 128096  }
 0x1d2   :  { %929 = vst.msk [vmem:[#allocation2 + $0xa1] sm:$0x7f] %vm56_vm5, %v925_v17  ;;  %vm6065_vm5 = vcmask 162945   ;;  %4113 = vmatpush3.bf16.msra.mxu0 %v4164_v8  ;;  %4138 = vmatpush3.bf16.msra.mxu1 %v4164_v8 }
 0x1d3   :  { %1238 = vst.msk [vmem:[#allocation3 + $0x28] sm:$0xff] %vm1232_vm9, %v1216_v26  ;;  %4114 = vmatprep.subr.bf16.mxu0 %v4165_v10  ;;  %4134 = vmatprep.subr.bf16.mxu1 %v4165_v10 }
 0x1d4   :  { %v943_v18 = vpop.permute.xlu1 %942 }
 0x1d5   :  { %v933_v24 = vpop.permute.xlu0 %932  ;;  %v1011_v28 = vld [vmem:[#allocation2 + $0x88] sm:$0xff] }
 0x1d6   :  { %937 = vst.msk [vmem:[#allocation2 + $0xa0] sm:$0xff] %vm6063_vm4, %v933_v24  ;;  %v1023_v29 = vpack.c.bf16 %v1011_v28, %v1010_v27  ;;  %4115 = vmatpush3.bf16.msra.mxu0 %v4165_v10  ;;  %4139 = vmatpush3.bf16.msra.mxu1 %v4165_v10  ;;  %vm6019_vm4 = vcmask 326913  }
 0x1d7   :  { %948 = vst.msk [vmem:[#allocation2 + $0x9a] sm:$0xff] %vm6064_vm8, %v943_v18  ;;  %v5154_v30 = vld [vmem:[#allocation3 + $0x1c] sm:$0xff]  ;;  %4116 = vmatprep.subr.bf16.mxu0 %v4166_v11  ;;  %4135 = vmatprep.subr.bf16.mxu1 %v4166_v11  ;;  %vm6020_vm8 = vcmask 323840  }
 0x1d8   :  { %4099 = vmatmul.mubr.msk.bf16.gmra.mrb[32].mxu0 %vm1053_vm1, %v1023_v29  ;;  %1433 = vrot.lane.b32.xlu0 %v5154_v30, %s4294_s24  ;;  %1429 = vst.msk [vmem:[#allocation4 + $0x18] sm:$0xff] %vm1232_vm9, %v5154_v30  ;;  %v951_v31 = vpop.permute.xlu1 %950 }
 0x1d9   :  { %v945_v32 = vpop.permute.xlu0 %944  ;;  %4102 = vmatprep.mubr.msk.bf16.mxu0 %vm6057_vm10, %v4299_v13  ;;  %956 = vst.msk [vmem:[#allocation2 + $0x99] sm:$0xfe] %vm6065_vm5, %v951_v31  ;;  %vm6015_vm5 = vcmask 390464  }
 0x1da   :  { %949 = vst.msk [vmem:[#allocation2 + $0xa2] sm:$0x3f] %vm6066_vm7, %v945_v32  ;;  %v1428_v33 = vld [vmem:[#allocation3 + $0x24] sm:$0x3f]  ;;  %4117 = vmatpush3.bf16.msra.mxu0 %v4166_v11  ;;  %4140 = vmatpush3.bf16.msra.mxu1 %v4166_v11  ;;  %vm6016_vm7 = vcmask 392514  }
 0x1db   :  { %1435 = vrot.lane.b32.xlu1 %v1428_v33, %s4294_s24  ;;  %1430 = vst.msk [vmem:[#allocation4 + $0x20] sm:$0xf] %vm1257_vm3, %v1428_v33  ;;  %v1372_v38 = vld [vmem:[#allocation3 + $0x24] sm:$0x3f] }
 0x1dc   :  { %1285 = vrot.lane.b32.xlu0 %v5117_v60, %s4298_s28  ;;  %v959_v34 = vpop.permute.xlu1 %958  ;;  %v1316_v62 = vld [vmem:[#allocation3 + $0x24] sm:$0x3f] }
 0x1dd   :  { %v953_v35 = vpop.permute.xlu0 %952  ;;  %964 = vst.msk [vmem:[#allocation2 + $0x98] sm:$0xfc] %vm98_vm13, %v959_v34  ;;  %vm6069_vm13 = vcmask 228544  }
 0x1de   :  { %957 = vst.msk [vmem:[#allocation2 + $0xa1] sm:$0x7f] %vm6067_vm6, %v953_v35  ;;  %vm1327_vm6 = vcmask 454016  }
 0x1df   :  { %1287 = vrot.lane.b32.xlu1 %v1282_v36, %s4298_s28 }
 0x1e0   :  { %1375 = vrot.lane.b32.xlu0 %v5154_v30, %s4298_s28  ;;  %v895_v37 = vpop.permute.xlu1 %894 }
 0x1e1   :  { %v961_v46 = vpop.permute.xlu0 %960  ;;  %899 = vst.msk [vmem:[#allocation2 + $0x94] sm:$0x3f] %vm114_vm14, %v895_v37 }
 0x1e2   :  { %965 = vst.msk [vmem:[#allocation2 + $0xa0] sm:$0xff] %vm6068_vm11, %v961_v46  ;;  %vm1325_vm11 = vcmask 458112  }
 0x1e3   :  { %1377 = vrot.lane.b32.xlu1 %v1372_v38, %s4298_s28 }
 0x1e4   :  { %1441 = vrot.lane.b32.xlu0 %v5154_v30, %s4296_s26  ;;  %v903_v45 = vpop.permute.xlu1 %902 }
 0x1e5   :  { %v971_v39 = vpop.permute.xlu0 %970  ;;  %907 = vst.msk [vmem:[#allocation2 + $0x93] sm:$0x7f] %vm124_vm0, %v903_v45 }
 0x1e6   :  { %976 = vst.msk [vmem:[#allocation2 + $0x9a] sm:$0xff] %vm6069_vm13, %v971_v39  ;;  %vm6017_vm13 = vcmask 523713  }
 0x1e7   :  { %1443 = vrot.lane.b32.xlu1 %v1428_v33, %s4296_s26 }
 0x1e8   :  { %1295 = vrot.lane.b32.xlu0 %v5117_v60, %s4301_s17  ;;  %v911_v40 = vpop.permute.xlu1 %910 }
 0x1e9   :  { %v979_v41 = vpop.permute.xlu0 %978  ;;  %915 = vst.msk [vmem:[#allocation2 + $0x92] sm:$0xff] %vm134_vm15, %v911_v40 }
 0x1ea   :  { %984 = vst.msk [vmem:[#allocation2 + $0x99] sm:$0xfe] %vm122_vm2, %v979_v41  ;;  %vm1279_vm2 = vcmask 193664  }
 0x1eb   :  { %1297 = vrot.lane.b32.xlu1 %v1282_v36, %s4301_s17 }
 0x1ec   :  { %1383 = vrot.lane.b32.xlu0 %v5154_v30, %s4301_s17  ;;  %v973_v43 = vpop.permute.xlu1 %972 }
 0x1ed   :  { %v987_v42 = vpop.permute.xlu0 %986  ;;  %977 = vst.msk [vmem:[#allocation2 + $0xa2] sm:$0x3f] %vm114_vm14, %v973_v43  ;;  %vm6014_vm14 = vcmask 1043456  }
 0x1ee   :  { %992 = vst.msk [vmem:[#allocation2 + $0x98] sm:$0xfc] %vm132_vm12, %v987_v42  ;;  %vm1269_vm12 = vcmask 127040   ;;  %4142 = vmatprep.subr.msk.bf16.mxu0 %vm6014_vm14, %v4167_v12  ;;  %v1977_v25 = vsel %vm6014_vm14, %v4167_v12, 0  ;;  %4143 = vmatprep.subr.msk.bf16.mxu1 %vm6014_vm14, %v4167_v12  ;;  %vm1337_vm14 = vcmask 520640  }
 0x1ef   :  { %1385 = vrot.lane.b32.xlu1 %v1372_v38, %s4301_s17  ;;  %v1149_v19 = vpop.f32.mrb[12].mxu0  ;;  %4119 = vmatpush3.bf16.msra.mxu0 %v1977_v25 }
 0x1f0   :  { %v1150_v20 = vadd.f32 %v5075_v15, %v1149_v19  ;;  %v4080_v44 = vpop.f32.mrb[13].mxu0  ;;  %v989_v52 = vpop.permute.xlu1 %988  ;;  %v1012_v54 = vld [vmem:[#allocation2 + $0x90] sm:$0xff]  ;;  %4141 = vmatpush3.bf16.msra.mxu1 %v1977_v25 }
 0x1f1   :  { %v1152_v47 = vpop.f32.mrb[14].mxu0  ;;  %v981_v48 = vpop.permute.xlu0 %980 }
 0x1f2   :  { %v1217_v49 = vmax.f32 %v1150_v20, 0.0  ;;  %v1153_v50 = vadd.f32 %v5075_v15, %v1152_v47  ;;  %v4081_v51 = vpop.f32.mrb[15].mxu0  ;;  %985 = vst.msk [vmem:[#allocation2 + $0xa1] sm:$0x7f] %vm124_vm0, %v981_v48  ;;  %vm1267_vm0 = vcmask 130113  }
 0x1f3   :  { %993 = vst.msk [vmem:[#allocation2 + $0xa0] sm:$0xff] %vm134_vm15, %v989_v52  ;;  %vm1277_vm15 = vcmask 195714  }
 0x1f4   :  { %1239 = vst.msk [vmem:[#allocation3 + $0x30] sm:$0xff] %vm1232_vm9, %v1217_v49  ;;  %v1218_v53 = vmax.f32 %v1153_v50, 0.0 }
 0x1f5   :  { %v1013_v55 = vld [vmem:[#allocation2 + $0x98] sm:$0xff] }
 0x1f6   :  { %1240 = vst.msk [vmem:[#allocation3 + $0x38] sm:$0xff] %vm1232_vm9, %v1218_v53  ;;  %v1024_v59 = vpack.c.bf16 %v1013_v55, %v1012_v54 }
 0x1f8   :  { %4103 = vmatmul.mubr.msk.bf16.gmra.mrb[36].mxu0 %vm1053_vm1, %v1024_v59 }
 0x1f9   :  { %4106 = vmatprep.mubr.msk.bf16.mxu0 %vm6057_vm10, %v4299_v13  ;;  %vm6018_vm10 = vcmask 257216  }
 0x1fa   :  { %v1014_v56 = vld [vmem:[#allocation2 + $0xa0] sm:$0xff] }
 0x1fb   :  { %v1450_v57 = vld [vmem:[#allocation3 + $0x32] sm:$0x3f]  ;;  %v5201_v14 = vld [vmem:[#allocation3 + $0x2a] sm:$0xff]  ;;  %v1025_v58 = vpack.c.bf16 %v1014_v56, %v1014_v56 }
 0x1fc   :  { %1455 = vrot.lane.b32.xlu1 %v1450_v57, %s4298_s28  ;;  %1453 = vrot.lane.b32.xlu0 %v5201_v14, %s4298_s28  ;;  %v5206_v61 = vld [vmem:[#allocation3 + $0x32] sm:$0x3f]  ;;  %1507 = vst.msk [vmem:[#allocation4 + $0x24] sm:$0xff] %vm1232_vm9, %v5201_v14 }
 0x1fd   :  { %1508 = vst.msk [vmem:[#allocation4 + $0x2c] sm:$0xf] %vm1257_vm3, %v5206_v61  ;;  %v1400_v5 = vld [vmem:[#allocation3 + $0x32] sm:$0x3f]  ;;  %v5243_v7 = vld [vmem:[#allocation3 + $0x38] sm:$0xff] }
 0x200   :  { %4107 = vmatmul.mubr.msk.bf16.gmra.mrb[40].mxu0 %vm1053_vm1, %v1025_v58  ;;  %1307 = vrot.lane.b32.xlu1 %v1282_v36, %s4303_s12  ;;  %vm1291_vm1 = vcmask 261312  }
 0x201   :  { %1305 = vrot.lane.b32.xlu0 %v5117_v60, %s4303_s12 }
 0x204   :  { %1393 = vrot.lane.b32.xlu1 %v1372_v38, %s4303_s12 }
 0x205   :  { %1391 = vrot.lane.b32.xlu0 %v5154_v30, %s4303_s12 }
 0x208   :  { %1463 = vrot.lane.b32.xlu1 %v1450_v57, %s4301_s17 }
 0x209   :  { %1461 = vrot.lane.b32.xlu0 %v5201_v14, %s4301_s17 }
 0x20a   :  { %v1262_v13 = vpop.permute.xlu0 %1261 }
 0x20b   :  { %1268 = vst.msk [vmem:[#allocation4 - $0x1] sm:$0xfe] %vm1267_vm0, %v1262_v13 }
 0x20c   :  { %1321 = vrot.lane.b32.xlu1 %v1316_v62, %s4304_s19 }
 0x20d   :  { %v1264_v60 = vpop.permute.xlu1 %1263  ;;  %1319 = vrot.lane.b32.xlu0 %v5154_v30, %s4304_s19 }
 0x20e   :  { %1270 = vst.msk [vmem:[#allocation4 + $0x7] sm:$0x1f] %vm1269_vm12, %v1264_v60 }
 0x20f   :  { %v1157_v63 = vpop.f32.mrb[16].mxu0 }
 0x210   :  { %v1158_v0 = vadd.f32 %v5075_v15, %v1157_v63  ;;  %1469 = vrot.lane.b32.xlu1 %v5201_v14, %s4303_s12  ;;  %v4084_v1 = vpop.f32.mrb[17].mxu0 }
 0x211   :  { %1403 = vrot.lane.b32.xlu0 %v5201_v14, %s4304_s19  ;;  %v1160_v21 = vpop.f32.mrb[18].mxu0 }
 0x212   :  { %v1219_v22 = vmax.f32 %v1158_v0, 0.0  ;;  %v1161_v2 = vadd.f32 %v5075_v15, %v1160_v21  ;;  %v4085_v3 = vpop.f32.mrb[19].mxu0 }
 0x214   :  { %1241 = vst.msk [vmem:[#allocation3 + $0x40] sm:$0xff] %vm1232_vm9, %v1219_v22  ;;  %v1220_v4 = vmax.f32 %v1161_v2, 0.0  ;;  %1329 = vrot.lane.b32.xlu1 %v5154_v30, %s4305_s20 }
 0x215   :  { %1471 = vrot.lane.b32.xlu0 %v1450_v57, %s4303_s12 }
 0x216   :  { %1242 = vst.msk [vmem:[#allocation3 + $0x48] sm:$0xff] %vm1232_vm9, %v1220_v4 }
 0x218   :  { %1405 = vrot.lane.b32.xlu1 %v1400_v5, %s4304_s19 }
 0x219   :  { %1331 = vrot.lane.b32.xlu0 %v1316_v62, %s4305_s20 }
 0x21b   :  { %v1478_v9 = vld [vmem:[#allocation3 + $0x40] sm:$0x3f] }
 0x21c   :  { %1481 = vrot.lane.b32.xlu1 %v5243_v7, %s4304_s19  ;;  %v5326_v56 = vld [vmem:[#allocation3 + $0x40] sm:$0x3f] }
 0x21d   :  { %1411 = vrot.lane.b32.xlu0 %v5201_v14, %s4305_s20 }
 0x220   :  { %1339 = vrot.lane.b32.xlu1 %v5154_v30, %s4306_s13 }
 0x221   :  { %1483 = vrot.lane.b32.xlu0 %v1478_v9, %s4304_s19 }
 0x224   :  { %1413 = vrot.lane.b32.xlu1 %v1400_v5, %s4305_s20 }
 0x225   :  { %1341 = vrot.lane.b32.xlu0 %v1316_v62, %s4306_s13 }
 0x228   :  { %1489 = vrot.lane.b32.xlu1 %v5243_v7, %s4305_s20 }
 0x229   :  { %1419 = vrot.lane.b32.xlu0 %v5201_v14, %s4306_s13 }
 0x22a   :  { %v1356_v16 = vpop.permute.xlu0 %1355 }
 0x22b   :  { %1361 = vst.msk [vmem:[#allocation4 + $0xb] sm:$0xfe] %vm1267_vm0, %v1356_v16 }
 0x22c   :  { %1421 = vrot.lane.b32.xlu1 %v1400_v5, %s4306_s13 }
 0x22d   :  { %v1358_v26 = vpop.permute.xlu1 %1357  ;;  %1491 = vrot.lane.b32.xlu0 %v1478_v9, %s4305_s20 }
 0x22e   :  { %1362 = vst.msk [vmem:[#allocation4 + $0x13] sm:$0x1f] %vm1269_vm12, %v1358_v26  ;;  %v1272_v23 = vpop.permute.xlu0 %1271 }
 0x22f   :  { %1278 = vst.msk [vmem:[#allocation4 - $0x2] sm:$0xfc] %vm1277_vm15, %v1272_v23  ;;  %v1165_v17 = vpop.f32.mrb[20].mxu0 }
 0x230   :  { %v1166_v18 = vadd.f32 %v5075_v15, %v1165_v17  ;;  %1499 = vrot.lane.b32.xlu1 %v1478_v9, %s4306_s13  ;;  %v4088_v24 = vpop.f32.mrb[21].mxu0 }
 0x231   :  { %v1274_v27 = vpop.permute.xlu1 %1273  ;;  %1497 = vrot.lane.b32.xlu0 %v5243_v7, %s4306_s13  ;;  %v1168_v28 = vpop.f32.mrb[22].mxu0 }
 0x232   :  { %v1221_v29 = vmax.f32 %v1166_v18, 0.0  ;;  %1280 = vst.msk [vmem:[#allocation4 + $0x6] sm:$0x3f] %vm1279_vm2, %v1274_v27  ;;  %v1169_v30 = vadd.f32 %v5075_v15, %v1168_v28  ;;  %v1364_v31 = vpop.permute.xlu0 %1363  ;;  %v4089_v32 = vpop.f32.mrb[23].mxu0 }
 0x233   :  { %1369 = vst.msk [vmem:[#allocation4 + $0xa] sm:$0xfc] %vm1277_vm15, %v1364_v31 }
 0x234   :  { %1243 = vst.msk [vmem:[#allocation3 + $0x50] sm:$0xff] %vm1232_vm9, %v1221_v29  ;;  %v1222_v33 = vmax.f32 %v1169_v30, 0.0  ;;  %1513 = vrot.lane.b32.xlu1 %v5206_v61, %s4294_s24 }
 0x235   :  { %v1366_v34 = vpop.permute.xlu1 %1365  ;;  %1511 = vrot.lane.b32.xlu0 %v5201_v14, %s4294_s24 }
 0x236   :  { %1244 = vst.msk [vmem:[#allocation3 + $0x58] sm:$0xff] %vm1232_vm9, %v1222_v33 }
 0x237   :  { %1370 = vst.msk [vmem:[#allocation4 + $0x12] sm:$0x3f] %vm1279_vm2, %v1366_v34 }
 0x238   :  { %1521 = vrot.lane.b32.xlu1 %v5206_v61, %s4296_s26 }
 0x239   :  { %1519 = vrot.lane.b32.xlu0 %v5201_v14, %s4296_s26 }
 0x23d   :  { %v1583_v35 = vld [vmem:[#allocation3 + $0x54] sm:$0xff] }
 0x23e   :  { %1589 = vrot.lane.b32.xlu0 %v1583_v35, %s4294_s24  ;;  %1585 = vst.msk [vmem:[#allocation4 + $0x30] sm:$0xff] %vm1232_vm9, %v1583_v35 }
 0x24a   :  { %v1434_v36 = vpop.permute.xlu0 %1433 }
 0x24b   :  { %1439 = vst.msk [vmem:[#allocation4 + $0x17] sm:$0xfe] %vm1267_vm0, %v1434_v36 }
 0x24d   :  { %v1436_v37 = vpop.permute.xlu1 %1435 }
 0x24e   :  { %1440 = vst.msk [vmem:[#allocation4 + $0x1f] sm:$0x1f] %vm1269_vm12, %v1436_v37  ;;  %v1286_v46 = vpop.permute.xlu0 %1285 }
 0x24f   :  { %1292 = vst.msk [vmem:[#allocation4] sm:$0xff] %vm1291_vm1, %v1286_v46  ;;  %v1173_v38 = vpop.f32.mrb[24].mxu0 }
 0x250   :  { %v1174_v45 = vadd.f32 %v5075_v15, %v1173_v38  ;;  %v4092_v39 = vpop.f32.mrb[25].mxu0 }
 0x251   :  { %v1288_v40 = vpop.permute.xlu1 %1287  ;;  %v1176_v41 = vpop.f32.mrb[26].mxu0 }
 0x252   :  { %v1223_v42 = vmax.f32 %v1174_v45, 0.0  ;;  %1294 = vst.msk [vmem:[#allocation4 + $0x8] sm:$0xf] %vm6018_vm10, %v1288_v40  ;;  %v1177_v43 = vadd.f32 %v5075_v15, %v1176_v41  ;;  %v1376_v19 = vpop.permute.xlu0 %1375  ;;  %v4093_v20 = vpop.f32.mrb[27].mxu0  ;;  %v1555_v40 = vld [vmem:[#allocation3 + $0x46] sm:$0xff] }
 0x253   :  { %1381 = vst.msk [vmem:[#allocation4 + $0xc] sm:$0xff] %vm1291_vm1, %v1376_v19  ;;  %v1556_v41 = vld [vmem:[#allocation3 + $0x4e] sm:$0x3f] }
 0x254   :  { %1245 = vst.msk [vmem:[#allocation3 + $0x60] sm:$0xff] %vm1232_vm9, %v1223_v42  ;;  %v1224_v44 = vmax.f32 %v1177_v43, 0.0 }
 0x255   :  { %v1378_v47 = vpop.permute.xlu1 %1377 }
 0x256   :  { %1246 = vst.msk [vmem:[#allocation3 + $0x68] sm:$0xff] %vm1232_vm9, %v1224_v44  ;;  %v1442_v48 = vpop.permute.xlu0 %1441 }
 0x257   :  { %1382 = vst.msk [vmem:[#allocation4 + $0x14] sm:$0xf] %vm6018_vm10, %v1378_v47 }
 0x258   :  { %1447 = vst.msk [vmem:[#allocation4 + $0x16] sm:$0xfc] %vm1277_vm15, %v1442_v48 }
 0x259   :  { %v1444_v49 = vpop.permute.xlu1 %1443 }
 0x25a   :  { %1448 = vst.msk [vmem:[#allocation4 + $0x1e] sm:$0x3f] %vm1279_vm2, %v1444_v49  ;;  %v1296_v50 = vpop.permute.xlu0 %1295 }
 0x25b   :  { %1302 = vst.msk [vmem:[#allocation4 - $0x1] sm:$0xfe] %vm6019_vm4, %v1296_v50  ;;  %v1584_v51 = vld [vmem:[#allocation3 + $0x5c] sm:$0x3f] }
 0x25c   :  { %1591 = vrot.lane.b32.xlu1 %v1584_v51, %s4294_s24  ;;  %1586 = vst.msk [vmem:[#allocation4 + $0x38] sm:$0xf] %vm1257_vm3, %v1584_v51 }
 0x25d   :  { %v1298_v52 = vpop.permute.xlu1 %1297  ;;  %v5313_v53 = vld [vmem:[#allocation3 + $0x62] sm:$0xff]  ;;  %v1662_v54 = vld [vmem:[#allocation3 + $0x6a] sm:$0x3f] }
 0x25e   :  { %1304 = vst.msk [vmem:[#allocation4 + $0x7] sm:$0x1f] %vm6020_vm8, %v1298_v52  ;;  %v1384_v55 = vpop.permute.xlu0 %1383  ;;  %1667 = vrot.lane.b32.xlu0 %v5313_v53, %s4294_s24  ;;  %v5344_v13 = vld [vmem:[#allocation3 + $0x6a] sm:$0x3f] }
 0x25f   :  { %1663 = vst.msk [vmem:[#allocation4 + $0x3c] sm:$0xff] %vm1232_vm9, %v5313_v53 }
 0x260   :  { %1664 = vst.msk [vmem:[#allocation4 + $0x44] sm:$0xf] %vm1257_vm3, %v1662_v54  ;;  %1669 = vrot.lane.b32.xlu1 %v1662_v54, %s4294_s24 }
 0x261   :  { %1389 = vst.msk [vmem:[#allocation4 + $0xb] sm:$0xfe] %vm6019_vm4, %v1384_v55  ;;  %v1386_v59 = vpop.permute.xlu1 %1385 }
 0x262   :  { %1390 = vst.msk [vmem:[#allocation4 + $0x13] sm:$0x1f] %vm6020_vm8, %v1386_v59  ;;  %1531 = vrot.lane.b32.xlu0 %v5243_v7, %s4298_s28 }
 0x264   :  { %1533 = vrot.lane.b32.xlu1 %v5326_v56, %s4298_s28 }
 0x266   :  { %1597 = vrot.lane.b32.xlu0 %v1583_v35, %s4296_s26 }
 0x268   :  { %1599 = vrot.lane.b32.xlu1 %v1584_v51, %s4296_s26 }
 0x26a   :  { %1675 = vrot.lane.b32.xlu0 %v5313_v53, %s4296_s26 }
 0x26c   :  { %1677 = vrot.lane.b32.xlu1 %v1662_v54, %s4296_s26 }
 0x26e   :  { %v1456_v57 = vpop.permute.xlu1 %1455  ;;  %v1454_v14 = vpop.permute.xlu0 %1453  ;;  %1539 = vrot.lane.b32.xlu0 %v5243_v7, %s4301_s17 }
 0x26f   :  { %1460 = vst.msk [vmem:[#allocation4 + $0x20] sm:$0xf] %vm6018_vm10, %v1456_v57 }
 0x270   :  { %1459 = vst.msk [vmem:[#allocation4 + $0x18] sm:$0xff] %vm1291_vm1, %v1454_v14  ;;  %1541 = vrot.lane.b32.xlu1 %v5326_v56, %s4301_s17  ;;  %v4268_v14 = vld [vmem:[%s5994_s2] ss:$0 sm:$0xff] }
 0x272   :  { %v1308_v58 = vpop.permute.xlu1 %1307  ;;  %1609 = vrot.lane.b32.xlu0 %v5313_v53, %s4298_s28 }
 0x273   :  { %1314 = vst.msk [vmem:[#allocation4 + $0x6] sm:$0x3f] %vm6015_vm5, %v1308_v58  ;;  %v1306_v61 = vpop.permute.xlu0 %1305 }
 0x274   :  { %1312 = vst.msk [vmem:[#allocation4 - $0x2] sm:$0xfc] %vm6016_vm7, %v1306_v61  ;;  %1611 = vrot.lane.b32.xlu1 %v5344_v13, %s4298_s28 }
 0x276   :  { %v1394_v62 = vpop.permute.xlu1 %1393 }
 0x277   :  { %1398 = vst.msk [vmem:[#allocation4 + $0x12] sm:$0x3f] %vm6015_vm5, %v1394_v62  ;;  %v1392_v60 = vpop.permute.xlu0 %1391 }
 0x278   :  { %1397 = vst.msk [vmem:[#allocation4 + $0xa] sm:$0xfc] %vm6016_vm7, %v1392_v60 }
 0x27a   :  { %v1464_v63 = vpop.permute.xlu1 %1463 }
 0x27b   :  { %1468 = vst.msk [vmem:[#allocation4 + $0x1f] sm:$0x1f] %vm6020_vm8, %v1464_v63  ;;  %v1462_v0 = vpop.permute.xlu0 %1461 }
 0x27c   :  { %1467 = vst.msk [vmem:[#allocation4 + $0x17] sm:$0xfe] %vm6019_vm4, %v1462_v0 }
 0x27e   :  { %v1322_v1 = vpop.permute.xlu1 %1321 }
 0x27f   :  { %1328 = vst.msk [vmem:[#allocation4 + $0x8] sm:$0xf] %vm1327_vm6, %v1322_v1  ;;  %v1320_v21 = vpop.permute.xlu0 %1319 }
 0x280   :  { %1326 = vst.msk [vmem:[#allocation4] sm:$0xff] %vm1325_vm11, %v1320_v21 }
 0x282   :  { %v1470_v22 = vpop.permute.xlu1 %1469 }
 0x283   :  { %1475 = vst.msk [vmem:[#allocation4 + $0x16] sm:$0xfc] %vm6016_vm7, %v1470_v22  ;;  %v1404_v2 = vpop.permute.xlu0 %1403  ;;  %vm1347_vm7 = vcmask 587264  }
 0x284   :  { %1409 = vst.msk [vmem:[#allocation4 + $0xc] sm:$0xff] %vm1325_vm11, %v1404_v2 }
 0x286   :  { %v1330_v3 = vpop.permute.xlu1 %1329 }
 0x287   :  { %1336 = vst.msk [vmem:[#allocation4 - $0x1] sm:$0xfe] %vm6017_vm13, %v1330_v3  ;;  %v1472_v4 = vpop.permute.xlu0 %1471 }
 0x288   :  { %1476 = vst.msk [vmem:[#allocation4 + $0x1e] sm:$0x3f] %vm6015_vm5, %v1472_v4  ;;  %vm1345_vm5 = vcmask 589314  }
 0x28a   :  { %v1406_v5 = vpop.permute.xlu1 %1405 }
 0x28b   :  { %1410 = vst.msk [vmem:[#allocation4 + $0x14] sm:$0xf] %vm1327_vm6, %v1406_v5  ;;  %v1332_v6 = vpop.permute.xlu0 %1331  ;;  %v1181_v8 = vpop.f32.mrb[28].mxu0 }
 0x28c   :  { %1338 = vst.msk [vmem:[#allocation4 + $0x7] sm:$0x1f] %vm1337_vm14, %v1332_v6  ;;  %v1182_v9 = vadd.f32 %v5075_v15, %v1181_v8  ;;  %v4096_v10 = vpop.f32.mrb[29].mxu0 }
 0x28d   :  { %v1184_v11 = vpop.f32.mrb[30].mxu0 }
 0x28e   :  { %v1225_v12 = vmax.f32 %v1182_v9, 0.0  ;;  %v1185_v16 = vadd.f32 %v5075_v15, %v1184_v11  ;;  %v1482_v25 = vpop.permute.xlu1 %1481  ;;  %v4097_v26 = vpop.f32.mrb[31].mxu0 }
 0x28f   :  { %v1412_v23 = vpop.permute.xlu0 %1411  ;;  %1487 = vst.msk [vmem:[#allocation4 + $0x18] sm:$0xff] %vm1325_vm11, %v1482_v25 }
 0x290   :  { %1247 = vst.msk [vmem:[#allocation3 + $0x70] sm:$0xff] %vm1232_vm9, %v1225_v12  ;;  %v1226_v17 = vmax.f32 %v1185_v16, 0.0 }
 0x291   :  { %1417 = vst.msk [vmem:[#allocation4 + $0xb] sm:$0xfe] %vm6017_vm13, %v1412_v23 }
 0x292   :  { %1248 = vst.msk [vmem:[#allocation3 + $0x78] sm:$0xff] %vm1232_vm9, %v1226_v17  ;;  %v1340_v18 = vpop.permute.xlu1 %1339 }
 0x293   :  { %1346 = vst.msk [vmem:[#allocation4 - $0x2] sm:$0xfc] %vm1345_vm5, %v1340_v18  ;;  %v1484_v24 = vpop.permute.xlu0 %1483 }
 0x294   :  { %1488 = vst.msk [vmem:[#allocation4 + $0x20] sm:$0xf] %vm1327_vm6, %v1484_v24 }
 0x296   :  { %v1414_v27 = vpop.permute.xlu1 %1413 }
 0x297   :  { %1418 = vst.msk [vmem:[#allocation4 + $0x13] sm:$0x1f] %vm1337_vm14, %v1414_v27  ;;  %v1342_v28 = vpop.permute.xlu0 %1341  ;;  %v5370_v29 = vld [vmem:[#allocation3 + $0x70] sm:$0xff] }
 0x298   :  { %1348 = vst.msk [vmem:[#allocation4 + $0x6] sm:$0x3f] %vm1347_vm7, %v1342_v28  ;;  %1687 = vrot.lane.b32.xlu0 %v5370_v29, %s4298_s28 }
 0x299   :  { %1741 = vst.msk [vmem:[#allocation4 + $0x48] sm:$0xff] %vm1232_vm9, %v5370_v29  ;;  %v1684_v30 = vld [vmem:[#allocation3 + $0x78] sm:$0x3f] }
 0x29a   :  { %v5377_v31 = vld [vmem:[#allocation3 + $0x78] sm:$0x3f]  ;;  %v1490_v32 = vpop.permute.xlu1 %1489  ;;  %1689 = vrot.lane.b32.xlu1 %v1684_v30, %s4298_s28 }
 0x29b   :  { %1742 = vst.msk [vmem:[#allocation4 + $0x50] sm:$0xf] %vm1257_vm3, %v5377_v31  ;;  %v1420_v33 = vpop.permute.xlu0 %1419 }
 0x29c   :  { %1495 = vst.msk [vmem:[#allocation4 + $0x17] sm:$0xfe] %vm6017_vm13, %v1490_v32  ;;  %1547 = vrot.lane.b32.xlu0 %v5243_v7, %s4303_s12  ;;  %vm1956_vm13 = vcmask 588800  }
 0x29d   :  { %1425 = vst.msk [vmem:[#allocation4 + $0xa] sm:$0xfc] %vm1345_vm5, %v1420_v33 }
 0x29e   :  { %v1422_v34 = vpop.permute.xlu1 %1421  ;;  %1549 = vrot.lane.b32.xlu1 %v5326_v56, %s4303_s12 }
 0x29f   :  { %1426 = vst.msk [vmem:[#allocation4 + $0x12] sm:$0x3f] %vm1347_vm7, %v1422_v34  ;;  %v1492_v35 = vpop.permute.xlu0 %1491  ;;  %v1895_v7 = vld [vmem:[#allocation4] sm:$0xff] }
 0x2a0   :  { %1496 = vst.msk [vmem:[#allocation4 + $0x1f] sm:$0x1f] %vm1337_vm14, %v1492_v35  ;;  %1617 = vrot.lane.b32.xlu0 %v5313_v53, %s4301_s17 }
 0x2a2   :  { %v1500_v36 = vpop.permute.xlu1 %1499  ;;  %1619 = vrot.lane.b32.xlu1 %v5344_v13, %s4301_s17 }
 0x2a3   :  { %1504 = vst.msk [vmem:[#allocation4 + $0x1e] sm:$0x3f] %vm1347_vm7, %v1500_v36  ;;  %v1498_v37 = vpop.permute.xlu0 %1497 }
 0x2a4   :  { %v1896_v46 = vld [vmem:[#allocation4 + $0x8] sm:$0xff]  ;;  %1503 = vst.msk [vmem:[#allocation4 + $0x16] sm:$0xfc] %vm1345_vm5, %v1498_v37  ;;  %1695 = vrot.lane.b32.xlu0 %v5370_v29, %s4301_s17 }
 0x2a5   :  { %v1907_v38 = vpack.c.bf16 %v1896_v46, %v1895_v7 }
 0x2a6   :  { %v1514_v45 = vpop.permute.xlu1 %1513  ;;  %1697 = vrot.lane.b32.xlu1 %v1684_v30, %s4301_s17  ;;  %v1897_v20 = vld [vmem:[#allocation4 + $0x10] sm:$0xff] }
 0x2a7   :  { %4120 = vmatprep.mubr.msk.bf16.mxu0 %vm1956_vm13, %v1907_v38  ;;  %1518 = vst.msk [vmem:[#allocation4 + $0x2b] sm:$0x1f] %vm1269_vm12, %v1514_v45  ;;  %v1512_v39 = vpop.permute.xlu0 %1511 }
 0x2a8   :  { %1517 = vst.msk [vmem:[#allocation4 + $0x23] sm:$0xfe] %vm1267_vm0, %v1512_v39  ;;  %1559 = vrot.lane.b32.xlu0 %v1555_v40, %s4304_s19 }
 0x2aa   :  { %v1522_v42 = vpop.permute.xlu1 %1521  ;;  %1561 = vrot.lane.b32.xlu1 %v1556_v41, %s4304_s19 }
 0x2ab   :  { %1526 = vst.msk [vmem:[#allocation4 + $0x2a] sm:$0x3f] %vm1279_vm2, %v1522_v42  ;;  %v1520_v43 = vpop.permute.xlu0 %1519  ;;  %v1189_v19 = vpop.f32.mrb[32].mxu0  ;;  %v1898_v44 = vld [vmem:[#allocation4 + $0x18] sm:$0xff] }
 0x2ac   :  { %1525 = vst.msk [vmem:[#allocation4 + $0x22] sm:$0xfc] %vm1277_vm15, %v1520_v43  ;;  %v1190_v47 = vadd.f32 %v5075_v15, %v1189_v19  ;;  %1625 = vrot.lane.b32.xlu0 %v5313_v53, %s4303_s12  ;;  %v4100_v48 = vpop.f32.mrb[33].mxu0  ;;  %v1908_v49 = vpack.c.bf16 %v1898_v44, %v1897_v20  ;;  %v1634_v53 = vld [vmem:[#allocation3 + $0x78] sm:$0x3f] }
 0x2ad   :  { %v1192_v50 = vpop.f32.mrb[34].mxu0 }
 0x2ae   :  { %v1227_v51 = vmax.f32 %v1190_v47, 0.0  ;;  %v1193_v52 = vadd.f32 %v5075_v15, %v1192_v50  ;;  %4121 = vmatmul.mubr.msk.bf16.vlgmr.msra.gmra.mrb[44].mxu0 %vm1956_vm13, %v1908_v49  ;;  %1627 = vrot.lane.b32.xlu1 %v5344_v13, %s4303_s12  ;;  %v4101_v54 = vpop.f32.mrb[35].mxu0 }
 0x2b0   :  { %1249 = vst.msk [vmem:[#allocation3 + $0x80] sm:$0xff] %vm1232_vm9, %v1227_v51  ;;  %v1228_v55 = vmax.f32 %v1193_v52, 0.0  ;;  %v1590_v59 = vpop.permute.xlu0 %1589  ;;  %1703 = vrot.lane.b32.xlu0 %v5370_v29, %s4303_s12 }
 0x2b1   :  { %1595 = vst.msk [vmem:[#allocation4 + $0x2f] sm:$0xfe] %vm1267_vm0, %v1590_v59 }
 0x2b2   :  { %1250 = vst.msk [vmem:[#allocation3 + $0x88] sm:$0xff] %vm1232_vm9, %v1228_v55  ;;  %1705 = vrot.lane.b32.xlu1 %v1684_v30, %s4303_s12 }
 0x2b4   :  { %1567 = vrot.lane.b32.xlu0 %v1555_v40, %s4305_s20 }
 0x2b6   :  { %1569 = vrot.lane.b32.xlu1 %v1556_v41, %s4305_s20 }
 0x2b7   :  { %v5421_v15 = vld [vmem:[#allocation3 + $0x7e] sm:$0xff] }
 0x2b8   :  { %1637 = vrot.lane.b32.xlu0 %v5370_v29, %s4304_s19  ;;  %1819 = vst.msk [vmem:[#allocation4 + $0x54] sm:$0xff] %vm1232_vm9, %v5421_v15 }
 0x2b9   :  { %v1818_v56 = vld [vmem:[#allocation3 + $0x86] sm:$0x3f] }
 0x2ba   :  { %1639 = vrot.lane.b32.xlu1 %v1634_v53, %s4304_s19  ;;  %1820 = vst.msk [vmem:[#allocation4 + $0x5c] sm:$0xf] %vm1257_vm3, %v1818_v56  ;;  %v1762_v16 = vld [vmem:[#allocation3 + $0x86] sm:$0x3f]  ;;  %vm6071_vm3 = vcmask 390464  }
 0x2bc   :  { %1715 = vrot.lane.b32.xlu0 %v5421_v15, %s4304_s19 }
 0x2be   :  { %1575 = vrot.lane.b32.xlu1 %v1555_v40, %s4306_s13 }
 0x2c0   :  { %1577 = vrot.lane.b32.xlu0 %v1556_v41, %s4306_s13 }
 0x2c2   :  { %1645 = vrot.lane.b32.xlu1 %v5370_v29, %s4305_s20 }
 0x2c4   :  { %1647 = vrot.lane.b32.xlu0 %v1634_v53, %s4305_s20 }
 0x2c6   :  { %1723 = vrot.lane.b32.xlu1 %v5421_v15, %s4305_s20 }
 0x2c8   :  { %1653 = vrot.lane.b32.xlu0 %v5370_v29, %s4306_s13 }
 0x2ca   :  { %1655 = vrot.lane.b32.xlu1 %v1634_v53, %s4306_s13 }
 0x2cb   :  { %v1197_v57 = vpop.f32.mrb[36].mxu0 }
 0x2cc   :  { %v1198_v58 = vadd.f32 %v4268_v14, %v1197_v57  ;;  %1731 = vrot.lane.b32.xlu0 %v5421_v15, %s4306_s13  ;;  %v4104_v61 = vpop.f32.mrb[37].mxu0 }
 0x2cd   :  { %v1200_v13 = vpop.f32.mrb[38].mxu0 }
 0x2ce   :  { %v1229_v62 = vmax.f32 %v1198_v58, 0.0  ;;  %v1201_v60 = vadd.f32 %v4268_v14, %v1200_v13  ;;  %v1592_v63 = vpop.permute.xlu1 %1591  ;;  %1745 = vrot.lane.b32.xlu1 %v5370_v29, %s4294_s24  ;;  %v4105_v0 = vpop.f32.mrb[39].mxu0 }
 0x2cf   :  { %1596 = vst.msk [vmem:[#allocation4 + $0x37] sm:$0x1f] %vm1269_vm12, %v1592_v63 }
 0x2d0   :  { %1251 = vst.msk [vmem:[#allocation3 + $0x90] sm:$0xff] %vm1232_vm9, %v1229_v62  ;;  %v1230_v1 = vmax.f32 %v1201_v60, 0.0  ;;  %v1668_v21 = vpop.permute.xlu0 %1667  ;;  %1747 = vrot.lane.b32.xlu0 %v5377_v31, %s4294_s24 }
 0x2d1   :  { %1673 = vst.msk [vmem:[#allocation4 + $0x3b] sm:$0xfe] %vm1267_vm0, %v1668_v21 }
 0x2d2   :  { %1252 = vst.msk [vmem:[#allocation3 + $0x98] sm:$0xff] %vm1232_vm9, %v1230_v1  ;;  %v1670_v22 = vpop.permute.xlu1 %1669  ;;  %1753 = vrot.lane.b32.xlu1 %v5370_v29, %s4296_s26  ;;  %v1712_v29 = vld [vmem:[#allocation3 + $0x86] sm:$0x3f] }
 0x2d3   :  { %1674 = vst.msk [vmem:[#allocation4 + $0x43] sm:$0x1f] %vm1269_vm12, %v1670_v22  ;;  %v1205_v2 = vpop.f32.mrb[40].mxu0 }
 0x2d4   :  { %v1206_v3 = vadd.f32 %v4268_v14, %v1205_v2  ;;  %v1532_v4 = vpop.permute.xlu0 %1531  ;;  %1755 = vrot.lane.b32.xlu0 %v5377_v31, %s4296_s26  ;;  %v4108_v5 = vpop.f32.mrb[41].mxu0 }
 0x2d5   :  { %1537 = vst.msk [vmem:[#allocation4 + $0x24] sm:$0xff] %vm1291_vm1, %v1532_v4  ;;  %v1208_v6 = vpop.f32.mrb[42].mxu0 }
 0x2d6   :  { %v1231_v8 = vmax.f32 %v1206_v3, 0.0  ;;  %v1534_v9 = vpop.permute.xlu1 %1533  ;;  %1823 = vrot.lane.b32.xlu1 %v5421_v15, %s4294_s24  ;;  %v4109_v10 = vpop.f32.mrb[43].mxu0 }
 0x2d7   :  { %1538 = vst.msk [vmem:[#allocation4 + $0x2c] sm:$0xf] %vm6018_vm10, %v1534_v9  ;;  %v1839_v24 = vld [vmem:[#allocation3 + $0x8c] sm:$0xff] }
 0x2d8   :  { %1253 = vst.msk [vmem:[#allocation3 + $0xa0] sm:$0xff] %vm1232_vm9, %v1231_v8  ;;  %v1598_v11 = vpop.permute.xlu0 %1597  ;;  %1825 = vrot.lane.b32.xlu0 %v1818_v56, %s4294_s24  ;;  %vm6070_vm9 = vcmask 392514  }
 0x2d9   :  { %1603 = vst.msk [vmem:[#allocation4 + $0x2e] sm:$0xfc] %vm1277_vm15, %v1598_v11  ;;  %v1840_v28 = vld [vmem:[#allocation3 + $0x94] sm:$0x3f] }
 0x2da   :  { %v1600_v12 = vpop.permute.xlu1 %1599  ;;  %1765 = vrot.lane.b32.xlu1 %v5421_v15, %s4298_s28  ;;  %v1790_v30 = vld [vmem:[#allocation3 + $0x94] sm:$0x3f] }
 0x2db   :  { %1604 = vst.msk [vmem:[#allocation4 + $0x36] sm:$0x3f] %vm1279_vm2, %v1600_v12 }
 0x2dc   :  { %v1676_v25 = vpop.permute.xlu0 %1675  ;;  %1767 = vrot.lane.b32.xlu0 %v1762_v16, %s4298_s28 }
 0x2dd   :  { %1681 = vst.msk [vmem:[#allocation4 + $0x3a] sm:$0xfc] %vm1277_vm15, %v1676_v25 }
 0x2de   :  { %v1678_v26 = vpop.permute.xlu1 %1677  ;;  %1831 = vrot.lane.b32.xlu1 %v5421_v15, %s4296_s26 }
 0x2df   :  { %1682 = vst.msk [vmem:[#allocation4 + $0x42] sm:$0x3f] %vm1279_vm2, %v1678_v26  ;;  %v1867_v31 = vld [vmem:[#allocation3 + $0x9a] sm:$0xff]  ;;  %v1868_v32 = vld [vmem:[#allocation3 + $0xa2] sm:$0x3f] }
 0x2e0   :  { %v1540_v23 = vpop.permute.xlu0 %1539  ;;  %1833 = vrot.lane.b32.xlu0 %v1818_v56, %s4296_s26 }
 0x2e1   :  { %1545 = vst.msk [vmem:[#allocation4 + $0x23] sm:$0xfe] %vm6019_vm4, %v1540_v23 }
 0x2e2   :  { %v1542_v17 = vpop.permute.xlu1 %1541  ;;  %1773 = vrot.lane.b32.xlu1 %v5421_v15, %s4301_s17 }
 0x2e3   :  { %1546 = vst.msk [vmem:[#allocation4 + $0x2b] sm:$0x1f] %vm6020_vm8, %v1542_v17 }
 0x2e4   :  { %v1610_v18 = vpop.permute.xlu0 %1609  ;;  %1775 = vrot.lane.b32.xlu0 %v1762_v16, %s4301_s17 }
 0x2e5   :  { %1615 = vst.msk [vmem:[#allocation4 + $0x30] sm:$0xff] %vm1291_vm1, %v1610_v18 }
 0x2e6   :  { %v1612_v27 = vpop.permute.xlu1 %1611  ;;  %1843 = vrot.lane.b32.xlu1 %v1839_v24, %s4298_s28 }
 0x2e7   :  { %1616 = vst.msk [vmem:[#allocation4 + $0x38] sm:$0xf] %vm6018_vm10, %v1612_v27 }
 0x2e8   :  { %1845 = vrot.lane.b32.xlu0 %v1840_v28, %s4298_s28 }
 0x2ea   :  { %1781 = vrot.lane.b32.xlu1 %v5421_v15, %s4303_s12 }
 0x2ec   :  { %1783 = vrot.lane.b32.xlu0 %v1762_v16, %s4303_s12 }
 0x2ee   :  { %1851 = vrot.lane.b32.xlu1 %v1839_v24, %s4301_s17 }
 0x2f0   :  { %1853 = vrot.lane.b32.xlu0 %v1840_v28, %s4301_s17 }
 0x2f2   :  { %1717 = vrot.lane.b32.xlu1 %v1712_v29, %s4304_s19 }
 0x2f4   :  { %1793 = vrot.lane.b32.xlu0 %v1839_v24, %s4304_s19 }
 0x2f6   :  { %1795 = vrot.lane.b32.xlu1 %v1790_v30, %s4304_s19 }
 0x2f8   :  { %1859 = vrot.lane.b32.xlu0 %v1839_v24, %s4303_s12 }
 0x2fa   :  { %1861 = vrot.lane.b32.xlu1 %v1840_v28, %s4303_s12 }
 0x2fc   :  { %1725 = vrot.lane.b32.xlu0 %v1712_v29, %s4305_s20 }
 0x2fe   :  { %1801 = vrot.lane.b32.xlu1 %v1839_v24, %s4305_s20 }
 0x300   :  { %1803 = vrot.lane.b32.xlu0 %v1790_v30, %s4305_s20 }
 0x302   :  { %1871 = vrot.lane.b32.xlu1 %v1867_v31, %s4304_s19 }
 0x304   :  { %1873 = vrot.lane.b32.xlu0 %v1868_v32, %s4304_s19 }
 0x306   :  { %1733 = vrot.lane.b32.xlu1 %v1712_v29, %s4306_s13 }
 0x308   :  { %1809 = vrot.lane.b32.xlu0 %v1839_v24, %s4306_s13 }
 0x30a   :  { %v1688_v33 = vpop.permute.xlu0 %1687  ;;  %1811 = vrot.lane.b32.xlu1 %v1790_v30, %s4306_s13 }
 0x30b   :  { %1693 = vst.msk [vmem:[#allocation4 + $0x3c] sm:$0xff] %vm1291_vm1, %v1688_v33 }
 0x30c   :  { %v1690_v34 = vpop.permute.xlu1 %1689  ;;  %1879 = vrot.lane.b32.xlu0 %v1867_v31, %s4305_s20 }
 0x30d   :  { %1694 = vst.msk [vmem:[#allocation4 + $0x44] sm:$0xf] %vm6018_vm10, %v1690_v34  ;;  %vm6072_vm10 = vmmov %vm6070_vm9  ;;  %v5570_v34 = vld [vmem:[%s5996_s4] ss:$0 sm:$0xff] }
 0x30e   :  { %v1548_v35 = vpop.permute.xlu0 %1547  ;;  %1881 = vrot.lane.b32.xlu1 %v1868_v32, %s4305_s20 }
 0x30f   :  { %1553 = vst.msk [vmem:[#allocation4 + $0x22] sm:$0xfc] %vm6070_vm9, %v1548_v35 }
 0x310   :  { %v1550_v36 = vpop.permute.xlu1 %1549  ;;  %1887 = vrot.lane.b32.xlu0 %v1867_v31, %s4306_s13 }
 0x311   :  { %1554 = vst.msk [vmem:[#allocation4 + $0x2a] sm:$0x3f] %vm6071_vm3, %v1550_v36 }
 0x312   :  { %v1618_v37 = vpop.permute.xlu0 %1617  ;;  %1889 = vrot.lane.b32.xlu1 %v1868_v32, %s4306_s13 }
 0x313   :  { %1623 = vst.msk [vmem:[#allocation4 + $0x2f] sm:$0xfe] %vm6019_vm4, %v1618_v37 }
 0x314   :  { %v1620_v7 = vpop.permute.xlu1 %1619 }
 0x315   :  { %1624 = vst.msk [vmem:[#allocation4 + $0x37] sm:$0x1f] %vm6020_vm8, %v1620_v7 }
 0x316   :  { %v1696_v46 = vpop.permute.xlu0 %1695 }
 0x317   :  { %1701 = vst.msk [vmem:[#allocation4 + $0x3b] sm:$0xfe] %vm6019_vm4, %v1696_v46  ;;  %vm6073_vm4 = vmmov %vm6071_vm3 }
 0x318   :  { %v1698_v38 = vpop.permute.xlu1 %1697 }
 0x319   :  { %1702 = vst.msk [vmem:[#allocation4 + $0x43] sm:$0x1f] %vm6020_vm8, %v1698_v38  ;;  %vm6074_vm8 = vcmask 523713  }
 0x31a   :  { %v1560_v45 = vpop.permute.xlu0 %1559 }
 0x31b   :  { %1565 = vst.msk [vmem:[#allocation4 + $0x24] sm:$0xff] %vm1325_vm11, %v1560_v45 }
 0x31c   :  { %v1562_v39 = vpop.permute.xlu1 %1561 }
 0x31d   :  { %1566 = vst.msk [vmem:[#allocation4 + $0x2c] sm:$0xf] %vm1327_vm6, %v1562_v39 }
 0x31e   :  { %v1626_v40 = vpop.permute.xlu0 %1625 }
 0x31f   :  { %1631 = vst.msk [vmem:[#allocation4 + $0x2e] sm:$0xfc] %vm6070_vm9, %v1626_v40  ;;  %vm6078_vm9 = vcmask 326913  }
 0x320   :  { %v1628_v41 = vpop.permute.xlu1 %1627 }
 0x321   :  { %1632 = vst.msk [vmem:[#allocation4 + $0x36] sm:$0x3f] %vm6071_vm3, %v1628_v41  ;;  %vm6081_vm3 = vcmask 392514  }
 0x322   :  { %v1704_v42 = vpop.permute.xlu0 %1703 }
 0x323   :  { %1709 = vst.msk [vmem:[#allocation4 + $0x3a] sm:$0xfc] %vm6072_vm10, %v1704_v42  ;;  %vm6075_vm10 = vmmov %vm6074_vm8 }
 0x324   :  { %v1706_v43 = vpop.permute.xlu1 %1705 }
 0x325   :  { %1710 = vst.msk [vmem:[#allocation4 + $0x42] sm:$0x3f] %vm6073_vm4, %v1706_v43  ;;  %vm6076_vm4 = vmmov %vm6074_vm8 }
 0x326   :  { %v1568_v19 = vpop.permute.xlu0 %1567 }
 0x327   :  { %1573 = vst.msk [vmem:[#allocation4 + $0x23] sm:$0xfe] %vm6074_vm8, %v1568_v19  ;;  %vm6077_vm8 = vcmask 257216  }
 0x328   :  { %v1570_v20 = vpop.permute.xlu1 %1569 }
 0x329   :  { %1574 = vst.msk [vmem:[#allocation4 + $0x2b] sm:$0x1f] %vm1337_vm14, %v1570_v20 }
 0x32a   :  { %v1638_v44 = vpop.permute.xlu0 %1637 }
 0x32b   :  { %1643 = vst.msk [vmem:[#allocation4 + $0x30] sm:$0xff] %vm1325_vm11, %v1638_v44 }
 0x32c   :  { %v1640_v47 = vpop.permute.xlu1 %1639 }
 0x32d   :  { %1644 = vst.msk [vmem:[#allocation4 + $0x38] sm:$0xf] %vm1327_vm6, %v1640_v47 }
 0x32e   :  { %v1716_v48 = vpop.permute.xlu0 %1715 }
 0x32f   :  { %1721 = vst.msk [vmem:[#allocation4 + $0x3c] sm:$0xff] %vm1325_vm11, %v1716_v48 }
 0x330   :  { %v1576_v49 = vpop.permute.xlu1 %1575 }
 0x331   :  { %1581 = vst.msk [vmem:[#allocation4 + $0x22] sm:$0xfc] %vm1345_vm5, %v1576_v49 }
 0x332   :  { %v1578_v50 = vpop.permute.xlu0 %1577 }
 0x333   :  { %1582 = vst.msk [vmem:[#allocation4 + $0x2a] sm:$0x3f] %vm1347_vm7, %v1578_v50 }
 0x334   :  { %v1646_v51 = vpop.permute.xlu1 %1645 }
 0x335   :  { %1651 = vst.msk [vmem:[#allocation4 + $0x2f] sm:$0xfe] %vm6075_vm10, %v1646_v51 }
 0x336   :  { %v1648_v52 = vpop.permute.xlu0 %1647 }
 0x337   :  { %1652 = vst.msk [vmem:[#allocation4 + $0x37] sm:$0x1f] %vm1337_vm14, %v1648_v52 }
 0x338   :  { %v1724_v54 = vpop.permute.xlu1 %1723  ;;  %v1899_v59 = vld [vmem:[#allocation4 + $0x20] sm:$0xff] }
 0x339   :  { %1729 = vst.msk [vmem:[#allocation4 + $0x3b] sm:$0xfe] %vm6076_vm4, %v1724_v54 }
 0x33a   :  { %v1654_v55 = vpop.permute.xlu0 %1653  ;;  %v1900_v15 = vld [vmem:[#allocation4 + $0x28] sm:$0xff] }
 0x33b   :  { %1659 = vst.msk [vmem:[#allocation4 + $0x2e] sm:$0xfc] %vm1345_vm5, %v1654_v55  ;;  %v1909_v53 = vpack.c.bf16 %v1900_v15, %v1899_v59 }
 0x33c   :  { %v1656_v56 = vpop.permute.xlu1 %1655 }
 0x33d   :  { %1660 = vst.msk [vmem:[#allocation4 + $0x36] sm:$0x3f] %vm1347_vm7, %v1656_v56  ;;  %4124 = vmatprep.mubr.msk.bf16.mxu0 %vm1956_vm13, %v1909_v53 }
 0x33e   :  { %v1732_v57 = vpop.permute.xlu0 %1731 }
 0x33f   :  { %1737 = vst.msk [vmem:[#allocation4 + $0x3a] sm:$0xfc] %vm1345_vm5, %v1732_v57  ;;  %v5585_v57 = vld [vmem:[%s5997_s5 + $0x14] ss:$8 sps:$4 sm:$0xff]  }
 0x340   :  { %v1746_v14 = vpop.permute.xlu1 %1745  ;;  %2115 = vmatprep.subr.bf16.mxu1 %v5585_v57 }
 0x341   :  { %1751 = vst.msk [vmem:[#allocation4 + $0x47] sm:$0xfe] %vm1267_vm0, %v1746_v14  ;;  %v5590_v14 = vld [vmem:[%s5997_s5 + $0x10] ss:$8 sps:$4 sm:$0xff]  }
 0x342   :  { %v1748_v58 = vpop.permute.xlu0 %1747 }
 0x343   :  { %1752 = vst.msk [vmem:[#allocation4 + $0x4f] sm:$0x1f] %vm1269_vm12, %v1748_v58  ;;  %v5596_v58 = vld [vmem:[%s5997_s5 + $0x74] ss:$8 sps:$4 sm:$0xff]  }
 0x344   :  { %v1754_v61 = vpop.permute.xlu1 %1753  ;;  %v1901_v62 = vld [vmem:[#allocation4 + $0x30] sm:$0xff]  ;;  %2527 = vmatprep.subr.bf16.mxu0 %v5596_v58 }
 0x345   :  { %1759 = vst.msk [vmem:[#allocation4 + $0x46] sm:$0xfc] %vm1277_vm15, %v1754_v61  ;;  %v5602_v61 = vld [vmem:[%s5997_s5 + $0x70] ss:$8 sps:$4 sm:$0xff]  }
 0x346   :  { %v1756_v13 = vpop.permute.xlu0 %1755  ;;  %v1902_v60 = vld [vmem:[#allocation4 + $0x38] sm:$0xff]  ;;  %2528 = vmatpush1.bf16.msra.mxu0 %v5602_v61 }
 0x347   :  { %1760 = vst.msk [vmem:[#allocation4 + $0x4e] sm:$0x3f] %vm1279_vm2, %v1756_v13  ;;  %v1910_v63 = vpack.c.bf16 %v1902_v60, %v1901_v62  ;;  %v4176_v13 = vld [vmem:[%s5997_s5 + $0x4] ss:$8 sps:$4 sm:$0xff]   ;;  %v4307_v62 = vmov 0  }
 0x348   :  { %v1824_v0 = vpop.permute.xlu1 %1823  ;;  %v5614_v60 = vld [vmem:[%s5997_s5 + $0x94] ss:$8 sps:$4 sm:$0xff]  }
 0x349   :  { %1829 = vst.msk [vmem:[#allocation4 + $0x53] sm:$0xfe] %vm1267_vm0, %v1824_v0  ;;  %4125 = vmatmul.mubr.msk.bf16.gmra.mrb[48].mxu0 %vm1956_vm13, %v1910_v63  ;;  %vm6079_vm0 = vcmask 323840   ;;  %2648 = vmatprep.subr.bf16.mxu0 %v5614_v60 }
 0x34a   :  { %v1826_v1 = vpop.permute.xlu0 %1825  ;;  %vm6084_vm10 = vmmov %vm6079_vm0  ;;  %2559 = vmatprep.mubr.bf16.mxu0 %v4307_v62 }
 0x34b   :  { %1830 = vst.msk [vmem:[#allocation4 + $0x5b] sm:$0x1f] %vm1269_vm12, %v1826_v1  ;;  %vm6080_vm12 = vmmov %vm6077_vm8 }
 0x34c   :  { %v1766_v21 = vpop.permute.xlu1 %1765 }
 0x34d   :  { %1771 = vst.msk [vmem:[#allocation4 + $0x48] sm:$0xff] %vm1291_vm1, %v1766_v21 }
 0x34e   :  { %v1768_v22 = vpop.permute.xlu0 %1767 }
 0x34f   :  { %1772 = vst.msk [vmem:[#allocation4 + $0x50] sm:$0xf] %vm6077_vm8, %v1768_v22  ;;  %vm6087_vm8 = vcmask 523713  }
 0x350   :  { %v1832_v2 = vpop.permute.xlu1 %1831 }
 0x351   :  { %1837 = vst.msk [vmem:[#allocation4 + $0x52] sm:$0xfc] %vm1277_vm15, %v1832_v2  ;;  %vm6082_vm15 = vcmask 390464  }
 0x352   :  { %v1834_v3 = vpop.permute.xlu0 %1833  ;;  %vm6086_vm4 = vmmov %vm6082_vm15 }
 0x353   :  { %1838 = vst.msk [vmem:[#allocation4 + $0x5a] sm:$0x3f] %vm1279_vm2, %v1834_v3  ;;  %vm6083_vm2 = vmmov %vm6078_vm9 }
 0x354   :  { %v1774_v4 = vpop.permute.xlu1 %1773 }
 0x355   :  { %1779 = vst.msk [vmem:[#allocation4 + $0x47] sm:$0xfe] %vm6078_vm9, %v1774_v4  ;;  %vm6088_vm9 = vmmov %vm6087_vm8 }
 0x356   :  { %v1776_v5 = vpop.permute.xlu0 %1775 }
 0x357   :  { %1780 = vst.msk [vmem:[#allocation4 + $0x4f] sm:$0x1f] %vm6079_vm0, %v1776_v5  ;;  %vm3851_vm0 = vcmask 254976  }
 0x358   :  { %v1844_v6 = vpop.permute.xlu1 %1843 }
 0x359   :  { %1849 = vst.msk [vmem:[#allocation4 + $0x54] sm:$0xff] %vm1291_vm1, %v1844_v6  ;;  %vm6085_vm1 = vmmov %vm6081_vm3 }
 0x35a   :  { %v1846_v8 = vpop.permute.xlu0 %1845 }
 0x35b   :  { %1850 = vst.msk [vmem:[#allocation4 + $0x5c] sm:$0xf] %vm6080_vm12, %v1846_v8 }
 0x35c   :  { %v1782_v9 = vpop.permute.xlu1 %1781 }
 0x35d   :  { %1787 = vst.msk [vmem:[#allocation4 + $0x46] sm:$0xfc] %vm6081_vm3, %v1782_v9 }
 0x35e   :  { %v1784_v10 = vpop.permute.xlu0 %1783 }
 0x35f   :  { %1788 = vst.msk [vmem:[#allocation4 + $0x4e] sm:$0x3f] %vm6082_vm15, %v1784_v10 }
 0x360   :  { %v1852_v11 = vpop.permute.xlu1 %1851 }
 0x361   :  { %1857 = vst.msk [vmem:[#allocation4 + $0x53] sm:$0xfe] %vm6083_vm2, %v1852_v11 }
 0x362   :  { %v1854_v12 = vpop.permute.xlu0 %1853 }
 0x363   :  { %1858 = vst.msk [vmem:[#allocation4 + $0x5b] sm:$0x1f] %vm6084_vm10, %v1854_v12 }
 0x364   :  { %v1718_v16 = vpop.permute.xlu1 %1717 }
 0x365   :  { %1722 = vst.msk [vmem:[#allocation4 + $0x44] sm:$0xf] %vm1327_vm6, %v1718_v16  ;;  %v4174_v16 = vld [vmem:[%s5997_s5] ss:$8 sps:$4 sm:$0xff]  }
 0x366   :  { %v1794_v25 = vpop.permute.xlu0 %1793 }
 0x367   :  { %1799 = vst.msk [vmem:[#allocation4 + $0x48] sm:$0xff] %vm1325_vm11, %v1794_v25 }
 0x368   :  { %v1796_v26 = vpop.permute.xlu1 %1795 }
 0x369   :  { %1800 = vst.msk [vmem:[#allocation4 + $0x50] sm:$0xf] %vm1327_vm6, %v1796_v26  ;;  %v5633_v26 = vld [vmem:[%s5997_s5 + $0x24] ss:$8 sps:$4 sm:$0xff]  }
 0x36a   :  { %v1860_v23 = vpop.permute.xlu0 %1859 }
 0x36b   :  { %1865 = vst.msk [vmem:[#allocation4 + $0x52] sm:$0xfc] %vm6085_vm1, %v1860_v23  ;;  %v5638_v23 = vld [vmem:[%s5997_s5 + $0x90] ss:$8 sps:$4 sm:$0xff]  }
 0x36c   :  { %v1862_v17 = vpop.permute.xlu1 %1861 }
 0x36d   :  { %1866 = vst.msk [vmem:[#allocation4 + $0x5a] sm:$0x3f] %vm6086_vm4, %v1862_v17 }
 0x36e   :  { %v1726_v18 = vpop.permute.xlu0 %1725 }
 0x36f   :  { %1730 = vst.msk [vmem:[#allocation4 + $0x43] sm:$0x1f] %vm1337_vm14, %v1726_v18  ;;  %v5644_v18 = vld [vmem:[%s5997_s5 + $0xb4] ss:$8 sps:$4 sm:$0xff]  }
 0x370   :  { %v1802_v24 = vpop.permute.xlu1 %1801 }
 0x371   :  { %1807 = vst.msk [vmem:[#allocation4 + $0x47] sm:$0xfe] %vm6087_vm8, %v1802_v24 }
 0x372   :  { %v1804_v27 = vpop.permute.xlu0 %1803 }
 0x373   :  { %1808 = vst.msk [vmem:[#allocation4 + $0x4f] sm:$0x1f] %vm1337_vm14, %v1804_v27  ;;  %v5657_v27 = vld [vmem:[%s5997_s5 + $0x20] ss:$8 sps:$4 sm:$0xff]  }
 0x374   :  { %v1872_v28 = vpop.permute.xlu1 %1871 }
 0x375   :  { %1877 = vst.msk [vmem:[#allocation4 + $0x54] sm:$0xff] %vm1325_vm11, %v1872_v28  ;;  %v4188_v28 = vld [vmem:[%s5997_s5 + $0x34] ss:$8 sps:$4 sm:$0xff]  }
 0x376   :  { %v1874_v29 = vpop.permute.xlu0 %1873 }
 0x377   :  { %1878 = vst.msk [vmem:[#allocation4 + $0x5c] sm:$0xf] %vm1327_vm6, %v1874_v29  ;;  %v5665_v29 = vld [vmem:[%s5997_s5 + $0xb0] ss:$8 sps:$4 sm:$0xff]  }
 0x378   :  { %v1734_v30 = vpop.permute.xlu1 %1733 }
 0x379   :  { %1738 = vst.msk [vmem:[#allocation4 + $0x42] sm:$0x3f] %vm1347_vm7, %v1734_v30 }
 0x37a   :  { %v1810_v31 = vpop.permute.xlu0 %1809 }
 0x37b   :  { %1815 = vst.msk [vmem:[#allocation4 + $0x46] sm:$0xfc] %vm1345_vm5, %v1810_v31  ;;  %v5678_v31 = vld [vmem:[%s5997_s5 + $0x30] ss:$8 sps:$4 sm:$0xff]  }
 0x37c   :  { %v1812_v32 = vpop.permute.xlu1 %1811 }
 0x37d   :  { %1816 = vst.msk [vmem:[#allocation4 + $0x4e] sm:$0x3f] %vm1347_vm7, %v1812_v32 }
 0x37e   :  { %v1880_v33 = vpop.permute.xlu0 %1879 }
 0x37f   :  { %1885 = vst.msk [vmem:[#allocation4 + $0x53] sm:$0xfe] %vm6088_vm9, %v1880_v33  ;;  %v5684_v33 = vld [vmem:[%s5997_s5 + $0x44] ss:$8 sps:$4 sm:$0xff]  }
 0x380   :  { %v1882_v35 = vpop.permute.xlu1 %1881  ;;  %v1903_v41 = vld [vmem:[#allocation4 + $0x40] sm:$0xff] }
 0x381   :  { %1886 = vst.msk [vmem:[#allocation4 + $0x5b] sm:$0x1f] %vm1337_vm14, %v1882_v35  ;;  %v4122_v36 = vpop.f32.mrb[44].mxu0  ;;  %vm6089_vm14 = vcmask 1043456  }
 0x382   :  { %v2022_v37 = vadd.f32 %v4122_v36, %v5570_v34  ;;  %v2013_v7 = vpop.f32.mrb[45].mxu0  ;;  %v1888_v46 = vpop.permute.xlu0 %1887  ;;  %v5695_v36 = vld [vmem:[%s5997_s5 + $0x40] ss:$8 sps:$4 sm:$0xff]  }
 0x383   :  { %1893 = vst.msk [vmem:[#allocation4 + $0x52] sm:$0xfc] %vm1345_vm5, %v1888_v46  ;;  %v4123_v38 = vpop.f32.mrb[46].mxu0  ;;  %v2014_v44 = vadd.f32 %v5570_v34, %v2013_v7  ;;  %vm6090_vm5 = vmmov %vm6089_vm14  ;;  %v5700_v7 = vld [vmem:[%s5997_s5 + $0x54] ss:$8 sps:$4 sm:$0xff]  }
 0x384   :  { %v2062_v45 = vmax.f32 %v2022_v37, 0.0  ;;  %v2016_v39 = vpop.f32.mrb[47].mxu0  ;;  %v1890_v40 = vpop.permute.xlu1 %1889  ;;  %v1904_v42 = vld [vmem:[#allocation4 + $0x48] sm:$0xff]  ;;  %v2025_v48 = vadd.f32 %v4123_v38, %v5570_v34  ;;  %vm6091_vm6 = vmmov %vm6090_vm5 }
 0x385   :  { %v2017_v43 = vadd.f32 %v5570_v34, %v2016_v39  ;;  %1894 = vst.msk [vmem:[#allocation4 + $0x5a] sm:$0x3f] %vm1347_vm7, %v1890_v40  ;;  %v1911_v19 = vpack.c.bf16 %v1904_v42, %v1903_v41  ;;  %v2060_v51 = vmax.f32 %v2014_v44, 0.0  ;;  %vm2111_vm7 = vcmask 130048   ;;  %v5709_v46 = vld [vmem:[%s5997_s5 + $0x50] ss:$8 sps:$4 sm:$0xff]   ;;  %vm6092_vm11 = vmmov %vm6090_vm5 }
 0x386   :  { %v2075_v20 = vrot.slane %v2062_v45, 4  ;;  %v2063_v54 = vmax.f32 %v2025_v48, 0.0  ;;  %v5715_v45 = vld [vmem:[%s5997_s5 + $0x64] ss:$8 sps:$4 sm:$0xff]   ;;  %v5724_v39 = vld [vmem:[%s5997_s5 + $0x60] ss:$8 sps:$4 sm:$0xff]  }
 0x387   :  { %v2061_v47 = vmax.f32 %v2017_v43, 0.0  ;;  %4128 = vmatprep.mubr.msk.bf16.mxu1 %vm1956_vm13, %v1911_v19  ;;  %v5729_v41 = vld [vmem:[%s5997_s5 + $0x84] ss:$8 sps:$4 sm:$0xff]   ;;  %v5738_v42 = vld [vmem:[%s5997_s5 + $0x80] ss:$8 sps:$4 sm:$0xff]  }
 0x388   :  { %v5744_v19 = vld [vmem:[%s5997_s5 + $0xa4] ss:$8 sps:$4 sm:$0xff]  }
 0x389   :  { %v2074_v49 = vrot.slane %v2061_v47, 4  ;;  %v2080_v50 = vmax.f32 %v2061_v47, %v2075_v20  ;;  %v5755_v47 = vld [vmem:[%s5997_s5 + $0xa0] ss:$8 sps:$4 sm:$0xff]  }
 0x38a   :  { %v1905_v59 = vld [vmem:[#allocation4 + $0x50] sm:$0xff] }
 0x38b   :  { %v2076_v52 = vsel %vm6089_vm14, %v2074_v49, %v2075_v20 }
 0x38c   :  { %v2079_v55 = vmax.f32 %v2060_v51, %v2076_v52  ;;  %v1906_v15 = vld [vmem:[#allocation4 + $0x58] sm:$0xff] }
 0x38d   :  { %v1912_v53 = vpack.c.bf16 %v1906_v15, %v1905_v59 }
 0x38e   :  { %v2081_v56 = vmax.f32 %v2079_v55, %v2063_v54 }
 0x38f   :  { %4129 = vmatmul.mubr.msk.bf16.vlgmr.msra.gmra.mrb[0].mxu1 %vm1956_vm13, %v1912_v53  ;;  %vm3422_vm13 = vcmask 1040384  }
 0x390   :  { %2116 = vmatpush1.bf16.msra.mxu1 %v5590_v14  ;;  %2147 = vmatprep.mubr.bf16.mxu1 %v4307_v62 }
 0x391   :  { %2168 = vmatprep.subr.bf16.mxu1 %v4176_v13 }
 0x41c   :  { %v5617_v63 = vpop.f32.mrb[48].mxu0 }
 0x41d   :  { %v2029_v0 = vpop.f32.mrb[49].mxu0  ;;  %v2038_v54 = vadd.f32 %v5617_v63, %v5570_v34 }
 0x41e   :  { %v2030_v1 = vadd.f32 %v5570_v34, %v2029_v0  ;;  %v5620_v21 = vpop.f32.mrb[50].mxu0 }
 0x41f   :  { %v2032_v22 = vpop.f32.mrb[51].mxu0  ;;  %v2041_v20 = vadd.f32 %v5620_v21, %v5570_v34  ;;  %v2066_v63 = vmax.f32 %v2038_v54, 0.0  ;;  %v4249_v54 = vld [vmem:[%s5999_s7 + $0xf0] ss:$8 sps:$4 sm:$0xff]  }
 0x420   :  { %v2064_v2 = vmax.f32 %v2030_v1, 0.0  ;;  %v2033_v3 = vadd.f32 %v5570_v34, %v2032_v22 }
 0x422   :  { %v2082_v4 = vmax.f32 %v2080_v50, %v2064_v2  ;;  %v2065_v5 = vmax.f32 %v2033_v3, 0.0  ;;  %v2085_v6 = vrot.slane %v2064_v2, 4  ;;  %v2067_v50 = vmax.f32 %v2041_v20, 0.0  ;;  %v4237_v20 = vld [vmem:[%s5999_s7 + $0xb0] ss:$8 sps:$4 sm:$0xff]  }
 0x424   :  { %v2086_v8 = vrot.slane %v2065_v5, 4  ;;  %v2830_v0 = vrot.slane %v2067_v50, 4 }
 0x426   :  { %v2087_v9 = vsel %vm6090_vm5, %v2085_v6, %v2086_v8  ;;  %v2091_v10 = vmax.f32 %v2082_v4, %v2086_v8 }
 0x427   :  { %v2090_v11 = vmax.f32 %v2081_v56, %v2087_v9 }
 0x428   :  { %v5651_v24 = vpack.c.bf16 %v2091_v10, %v2091_v10 }
 0x429   :  { %v5624_v12 = vpack.c.bf16 %v2090_v11, %v2090_v11 }
 0x42a   :  { %v2633_v30 = vshrl.u32 %v5651_v24, 16  ;;  %v2695_v4 = vrot.slane %v5651_v24, 1 }
 0x42b   :  { %v2099_v25 = vshrl.u32 %v5624_v12, 16  ;;  %v2213_v32 = vrot.slane %v5624_v12, 1  ;;  %v2333_v38 = vrot.slane %v5624_v12, 2  ;;  %v2453_v43 = vrot.slane %v5624_v12, 3 }
 0x42c   :  { %v2755_v35 = vrot.slane %v2633_v30, 1 }
 0x42d   :  { %3898 = vmatmul.mubr.msk.bf16.vlgmr.msra.gmra.mrb[4].mxu1 %vm2111_vm7, %v2099_v25  ;;  %v2513_v17 = vrot.slane %v2099_v25, 3  ;;  %v2273_v37 = vrot.slane %v2099_v25, 1  ;;  %v2393_v40 = vrot.slane %v2099_v25, 2 }
 0x42e   :  { %2169 = vmatpush1.bf16.msra.mxu1 %v4174_v16  ;;  %2200 = vmatprep.mubr.bf16.mxu1 %v4307_v62 }
 0x42f   :  { %3931 = vmatmul.mubr.msk.bf16.vlgmr.msra.gmra.mrb[52].mxu0 %vm2111_vm7, %v2513_v17  ;;  %2227 = vmatprep.subr.bf16.mxu1 %v5633_v26 }
 0x430   :  { %2649 = vmatpush1.bf16.msra.mxu0 %v5638_v23  ;;  %2680 = vmatprep.mubr.bf16.mxu0 %v4307_v62 }
 0x431   :  { %2769 = vmatprep.subr.bf16.mxu0 %v5644_v18 }
 0x435   :  { %3901 = vmatmul.mubr.msk.bf16.vlgmr.msra.gmra.mrb[8].mxu1 %vm2111_vm7, %v5624_v12 }
 0x436   :  { %2228 = vmatpush1.bf16.msra.mxu1 %v5657_v27  ;;  %2259 = vmatprep.mubr.bf16.mxu1 %v4307_v62 }
 0x437   :  { %3941 = vmatmul.mubr.msk.bf16.vlgmr.msra.gmra.mrb[56].mxu0 %vm2111_vm7, %v2633_v30  ;;  %2287 = vmatprep.subr.bf16.mxu1 %v4188_v28  ;;  %v4210_v30 = vld [vmem:[%s5999_s7 + $0x20] ss:$8 sps:$4 sm:$0xff]  }
 0x438   :  { %2770 = vmatpush1.bf16.msra.mxu0 %v5665_v29  ;;  %2801 = vmatprep.mubr.bf16.mxu0 %v4307_v62 }
 0x439   :  { %2898 = vmatprep.subr.bf16.mxu0 %v4176_v13 }
 0x43d   :  { %3906 = vmatmul.mubr.msk.bf16.vlgmr.msra.gmra.mrb[12].mxu1 %vm2111_vm7, %v2213_v32  ;;  %v4215_v32 = vld [vmem:[%s5999_s7 + $0x34] ss:$8 sps:$4 sm:$0xff]  }
 0x43e   :  { %2288 = vmatpush1.bf16.msra.mxu1 %v5678_v31  ;;  %2319 = vmatprep.mubr.bf16.mxu1 %v4307_v62 }
 0x43f   :  { %3951 = vmatmul.mubr.msk.bf16.vlgmr.msra.gmra.mrb[60].mxu0 %vm2111_vm7, %v2755_v35  ;;  %2347 = vmatprep.subr.bf16.mxu1 %v5684_v33  ;;  %v4216_v35 = vld [vmem:[%s5999_s7 + $0x40] ss:$8 sps:$4 sm:$0xff]  }
 0x440   :  { %2899 = vmatpush1.bf16.msra.mxu0 %v4174_v16  ;;  %2930 = vmatprep.mubr.bf16.mxu0 %v4307_v62 }
 0x441   :  { %2991 = vmatprep.subr.bf16.mxu0 %v4188_v28  ;;  %v4207_v28 = vld [vmem:[%s5999_s7 + $0x10] ss:$8 sps:$4 sm:$0xff]  }
 0x445   :  { %3911 = vmatmul.mubr.msk.bf16.vlgmr.msra.gmra.mrb[16].mxu1 %vm2111_vm7, %v2273_v37  ;;  %v4221_v37 = vld [vmem:[%s5999_s7 + $0x54] ss:$8 sps:$4 sm:$0xff]  }
 0x446   :  { %2348 = vmatpush1.bf16.msra.mxu1 %v5695_v36  ;;  %2379 = vmatprep.mubr.bf16.mxu1 %v4307_v62 }
 0x447   :  { %2407 = vmatprep.subr.bf16.mxu1 %v5700_v7 }
 0x44d   :  { %3916 = vmatmul.mubr.msk.bf16.vlgmr.msra.gmra.mrb[20].mxu1 %vm2111_vm7, %v2333_v38  ;;  %v4225_v38 = vld [vmem:[%s5999_s7 + $0x70] ss:$8 sps:$4 sm:$0xff]  }
 0x44e   :  { %2408 = vmatpush1.bf16.msra.mxu1 %v5709_v46  ;;  %2439 = vmatprep.mubr.bf16.mxu1 %v4307_v62 }
 0x44f   :  { %2467 = vmatprep.subr.bf16.mxu1 %v5715_v45 }
 0x455   :  { %3921 = vmatmul.mubr.msk.bf16.vlgmr.msra.gmra.mrb[24].mxu1 %vm2111_vm7, %v2393_v40  ;;  %v4228_v40 = vld [vmem:[%s5999_s7 + $0x80] ss:$8 sps:$4 sm:$0xff]  }
 0x456   :  { %2468 = vmatpush1.bf16.msra.mxu1 %v5724_v39  ;;  %2499 = vmatprep.mubr.bf16.mxu1 %v4307_v62 }
 0x457   :  { %2587 = vmatprep.subr.bf16.mxu1 %v5729_v41 }
 0x45d   :  { %3926 = vmatmul.mubr.msk.bf16.vlgmr.msra.gmra.mrb[28].mxu1 %vm2111_vm7, %v2453_v43  ;;  %v4236_v43 = vld [vmem:[%s5999_s7 + $0xa4] ss:$8 sps:$4 sm:$0xff]  }
 0x45e   :  { %2588 = vmatpush1.bf16.msra.mxu1 %v5738_v42  ;;  %2619 = vmatprep.mubr.bf16.mxu1 %v4307_v62 }
 0x45f   :  { %2709 = vmatprep.subr.bf16.mxu1 %v5744_v19 }
 0x462   :  { %v4130_v44 = vpop.f32.mrb[0].mxu1 }
 0x463   :  { %v2054_v48 = vadd.f32 %v4130_v44, %v5570_v34  ;;  %v2045_v49 = vpop.f32.mrb[1].mxu1  ;;  %v4239_v44 = vld [vmem:[%s5999_s7 + $0xb4] ss:$8 sps:$4 sm:$0xff]  }
 0x464   :  { %v2046_v51 = vadd.f32 %v5570_v34, %v2045_v49  ;;  %v4131_v52 = vpop.f32.mrb[2].mxu1  ;;  %v4245_v49 = vld [vmem:[%s5999_s7 + $0xd4] ss:$8 sps:$4 sm:$0xff]  }
 0x465   :  { %v2070_v55 = vmax.f32 %v2054_v48, 0.0  ;;  %v2057_v59 = vadd.f32 %v4131_v52, %v5570_v34  ;;  %v2048_v15 = vpop.f32.mrb[3].mxu1  ;;  %3936 = vmatmul.mubr.msk.bf16.vlgmr.msra.gmra.mrb[32].mxu1 %vm2111_vm7, %v5651_v24  ;;  %v4206_v24 = vld [vmem:[%s5999_s7 + $0x4] ss:$8 sps:$4 sm:$0xff]   ;;  %v4240_v48 = vld [vmem:[%s5999_s7 + $0xc0] ss:$8 sps:$4 sm:$0xff]  }
 0x466   :  { %v2068_v53 = vmax.f32 %v2046_v51, 0.0  ;;  %2710 = vmatpush1.bf16.msra.mxu1 %v5755_v47  ;;  %2741 = vmatprep.mubr.bf16.mxu1 %v4307_v62  ;;  %v2049_v13 = vadd.f32 %v5570_v34, %v2048_v15  ;;  %v4248_v51 = vld [vmem:[%s5999_s7 + $0xe4] ss:$8 sps:$4 sm:$0xff]   ;;  %v4246_v52 = vld [vmem:[%s5999_s7 + $0xe0] ss:$8 sps:$4 sm:$0xff]  }
 0x467   :  { %v2071_v56 = vmax.f32 %v2057_v59, 0.0  ;;  %2855 = vmatprep.subr.bf16.mxu1 %v5585_v57  ;;  %v2841_v21 = vrot.slane %v2070_v55, 4  ;;  %v4252_v15 = vld [vmem:[%s6001_s9 + $0x40] sm:$0xff]  }
 0x468   :  { %v2831_v1 = vrot.slane %v2068_v53, 4  ;;  %v2069_v5 = vmax.f32 %v2049_v13, 0.0  ;;  %v4253_v53 = vld [vmem:[%s6001_s9] sm:$0xff]  }
 0x469   :  { %v2842_v22 = vrot.slane %v2071_v56, 4  ;;  %v4254_v56 = vld [vmem:[%s6001_s9 + $0x48] sm:$0xff]  }
 0x46a   :  { %v2836_v2 = vmax.f32 %v2067_v50, %v2831_v1  ;;  %v2832_v3 = vsel %vm6091_vm6, %v2830_v0, %v2831_v1  ;;  %v4243_v50 = vld [vmem:[%s5999_s7 + $0xd0] ss:$8 sps:$4 sm:$0xff]  }
 0x46b   :  { %v2835_v6 = vmax.f32 %v2066_v63, %v2832_v3  ;;  %v2843_v8 = vsel %vm6092_vm11, %v2841_v21, %v2842_v22  ;;  %v4256_v3 = vld [vmem:[%s6001_s9 + $0x50] sm:$0xff]  }
 0x46c   :  { %v2838_v9 = vmax.f32 %v2836_v2, %v2070_v55  ;;  %v4251_v55 = vld [vmem:[%s5999_s7 + $0xf4] ss:$8 sps:$4 sm:$0xff]  }
 0x46d   :  { %v2837_v10 = vmax.f32 %v2835_v6, %v2069_v5  ;;  %3946 = vmatmul.mubr.msk.bf16.vlgmr.msra.gmra.mrb[36].mxu1 %vm2111_vm7, %v2695_v4  ;;  %v4257_v5 = vld [vmem:[%s6001_s9 + $0x10] sm:$0xff]  }
 0x46e   :  { %v2847_v34 = vmax.f32 %v2838_v9, %v2842_v22  ;;  %2856 = vmatpush1.bf16.msra.mxu1 %v5590_v14  ;;  %2887 = vmatprep.mubr.bf16.mxu1 %v4307_v62  ;;  %v4255_v22 = vld [vmem:[%s6001_s9 + $0x8] sm:$0xff]  }
 0x46f   :  { %v2846_v57 = vmax.f32 %v2837_v10, %v2843_v8  ;;  %2944 = vmatprep.subr.bf16.mxu1 %v5633_v26  ;;  %v4258_v8 = vld [vmem:[%s6001_s9 + $0x58] sm:$0xff]  }
 0x471   :  { %v2848_v11 = vpack.c.bf16 %v2846_v57, %v2846_v57 }
 0x473   :  { %3953 = vmatmul.mubr.msk.bf16.vlgmr.msra.gmra.mrb[64].mxu0 %vm2111_vm7, %v2848_v11  ;;  %v2850_v12 = vshrl.u32 %v2848_v11, 16  ;;  %v2940_v16 = vrot.slane %v2848_v11, 1  ;;  %v3034_v26 = vrot.slane %v2848_v11, 2  ;;  %v3128_v17 = vrot.slane %v2848_v11, 3 }
 0x474   :  { %2992 = vmatpush1.bf16.msra.mxu0 %v5678_v31  ;;  %3023 = vmatprep.mubr.bf16.mxu0 %v4307_v62  ;;  %v4213_v31 = vld [vmem:[%s5999_s7 + $0x30] ss:$8 sps:$4 sm:$0xff]  }
 0x475   :  { %3952 = vmatmul.mubr.msk.bf16.vlgmr.msra.gmra.mrb[40].mxu1 %vm2111_vm7, %v2850_v12  ;;  %3085 = vmatprep.subr.bf16.mxu0 %v5700_v7  ;;  %v2987_v14 = vrot.slane %v2850_v12, 1  ;;  %v3081_v25 = vrot.slane %v2850_v12, 2  ;;  %v4224_v7 = vld [vmem:[%s5999_s7 + $0x64] ss:$8 sps:$4 sm:$0xff]  }
 0x476   :  { %2945 = vmatpush1.bf16.msra.mxu1 %v5657_v27  ;;  %2976 = vmatprep.mubr.bf16.mxu1 %v4307_v62  ;;  %v4204_v27 = vld [vmem:[%s5999_s7] ss:$8 sps:$4 sm:$0xff]  }
 0x477   :  { %3038 = vmatprep.subr.bf16.mxu1 %v5684_v33  ;;  %v4218_v33 = vld [vmem:[%s5999_s7 + $0x44] ss:$8 sps:$4 sm:$0xff]  }
 0x47b   :  { %3955 = vmatmul.mubr.msk.bf16.vlgmr.msra.gmra.mrb[68].mxu0 %vm2111_vm7, %v2987_v14 }
 0x47c   :  { %3086 = vmatpush1.bf16.msra.mxu0 %v5709_v46  ;;  %3117 = vmatprep.mubr.bf16.mxu0 %v4307_v62  ;;  %v4222_v46 = vld [vmem:[%s5999_s7 + $0x60] ss:$8 sps:$4 sm:$0xff]  }
 0x47d   :  { %3954 = vmatmul.mubr.msk.bf16.vlgmr.msra.gmra.mrb[44].mxu1 %vm2111_vm7, %v2940_v16  ;;  %3179 = vmatprep.subr.bf16.mxu0 %v5596_v58  ;;  %v3175_v58 = vrot.slane %v2850_v12, 3  ;;  %v4259_v16 = vld [vmem:[%s6001_s9 + $0x18] sm:$0xff]  }
 0x47e   :  { %3039 = vmatpush1.bf16.msra.mxu1 %v5695_v36  ;;  %3070 = vmatprep.mubr.bf16.mxu1 %v4307_v62  ;;  %v4219_v36 = vld [vmem:[%s5999_s7 + $0x50] ss:$8 sps:$4 sm:$0xff]  }
 0x47f   :  { %3132 = vmatprep.subr.bf16.mxu1 %v5715_v45  ;;  %v4227_v45 = vld [vmem:[%s5999_s7 + $0x74] ss:$8 sps:$4 sm:$0xff]  }
 0x483   :  { %3957 = vmatmul.mubr.msk.bf16.vlgmr.msra.gmra.mrb[72].mxu0 %vm2111_vm7, %v3081_v25 }
 0x484   :  { %3180 = vmatpush1.bf16.msra.mxu0 %v5602_v61  ;;  %3211 = vmatprep.mubr.bf16.mxu0 %v4307_v62  ;;  %v3222_v61 = vpack.c.bf16 %v2847_v34, %v2847_v34 }
 0x485   :  { %3956 = vmatmul.mubr.msk.bf16.vlgmr.msra.gmra.mrb[48].mxu1 %vm2111_vm7, %v3034_v26  ;;  %3274 = vmatprep.subr.bf16.mxu0 %v5614_v60  ;;  %v4260_v26 = vld [vmem:[%s6001_s9 + $0x60] sm:$0xff]  }
 0x486   :  { %3133 = vmatpush1.bf16.msra.mxu1 %v5724_v39  ;;  %3164 = vmatprep.mubr.bf16.mxu1 %v4307_v62  ;;  %v3269_v60 = vshrl.u32 %v3222_v61, 16  ;;  %v4230_v39 = vld [vmem:[%s5999_s7 + $0x84] ss:$8 sps:$4 sm:$0xff]  }
 0x487   :  { %3226 = vmatprep.subr.bf16.mxu1 %v5729_v41  ;;  %v4231_v41 = vld [vmem:[%s5999_s7 + $0x90] ss:$8 sps:$4 sm:$0xff]  }
 0x48b   :  { %3959 = vmatmul.mubr.msk.bf16.vlgmr.msra.gmra.mrb[76].mxu0 %vm2111_vm7, %v3175_v58 }
 0x48c   :  { %3275 = vmatpush1.bf16.msra.mxu0 %v5638_v23  ;;  %3306 = vmatprep.mubr.bf16.mxu0 %v4307_v62  ;;  %v3365_v23 = vrot.slane %v3269_v60, 1 }
 0x48d   :  { %3958 = vmatmul.mubr.msk.bf16.vlgmr.msra.gmra.mrb[52].mxu1 %vm2111_vm7, %v3128_v17  ;;  %3369 = vmatprep.subr.bf16.mxu0 %v5644_v18  ;;  %v3318_v18 = vrot.slane %v3222_v61, 1  ;;  %v4261_v17 = vld [vmem:[%s6001_s9 + $0x20] sm:$0xff]  }
 0x48e   :  { %3227 = vmatpush1.bf16.msra.mxu1 %v5738_v42  ;;  %3258 = vmatprep.mubr.bf16.mxu1 %v4307_v62  ;;  %v4233_v42 = vld [vmem:[%s5999_s7 + $0x94] ss:$8 sps:$4 sm:$0xff]  }
 0x48f   :  { %3322 = vmatprep.subr.bf16.mxu1 %v5744_v19  ;;  %v4234_v19 = vld [vmem:[%s5999_s7 + $0xa0] ss:$8 sps:$4 sm:$0xff]  }
 0x493   :  { %3961 = vmatmul.mubr.msk.bf16.vlgmr.msra.gmra.mrb[80].mxu0 %vm2111_vm7, %v3269_v60  ;;  %v4262_v60 = vld [vmem:[%s6001_s9 + $0x68] sm:$0xff]  }
 0x494   :  { %3370 = vmatpush1.bf16.msra.mxu0 %v5665_v29  ;;  %3401 = vmatprep.mubr.bf16.mxu0 %v4307_v62  ;;  %v4212_v29 = vld [vmem:[%s5999_s7 + $0x24] ss:$8 sps:$4 sm:$0xff]  }
 0x495   :  { %3960 = vmatmul.mubr.msk.bf16.vlgmr.msra.gmra.mrb[56].mxu1 %vm2111_vm7, %v3222_v61  ;;  %4038 = vmatprep.subr.bf16.mxu0 %v4252_v15 }
 0x496   :  { %3323 = vmatpush1.bf16.msra.mxu1 %v5755_v47  ;;  %3354 = vmatprep.mubr.bf16.mxu1 %v4307_v62  ;;  %v4209_v62 = vld [vmem:[%s5999_s7 + $0x14] ss:$8 sps:$4 sm:$0xff]   ;;  %v4242_v47 = vld [vmem:[%s5999_s7 + $0xc4] ss:$8 sps:$4 sm:$0xff]  }
 0x497   :  { %3631 = vmatprep.subr.bf16.mxu1 %v4206_v24 }
 0x49b   :  { %3963 = vmatmul.mubr.msk.bf16.vlgmr.msra.gmra.mrb[84].mxu0 %vm2111_vm7, %v3365_v23 }
 0x49c   :  { %4039 = vmatpush3.bf16.msra.mxu0 %v4253_v53 }
 0x49d   :  { %3962 = vmatmul.mubr.msk.bf16.vlgmr.msra.gmra.mrb[60].mxu1 %vm2111_vm7, %v3318_v18  ;;  %4040 = vmatprep.subr.bf16.mxu0 %v4254_v56 }
 0x49e   :  { %3632 = vmatpush1.bf16.msra.mxu1 %v4204_v27 }
 0x49f   :  { %3633 = vmatprep.subr.bf16.mxu1 %v4209_v62 }
 0x4a0   :  { %4041 = vmatpush3.bf16.msra.mxu0 %v4255_v22 }
 0x4a1   :  { %4042 = vmatprep.subr.bf16.mxu0 %v4256_v3 }
 0x4a2   :  { %3634 = vmatpush1.bf16.msra.mxu1 %v4207_v28 }
 0x4a3   :  { %3635 = vmatprep.subr.bf16.mxu1 %v4212_v29 }
 0x4a4   :  { %4043 = vmatpush3.bf16.msra.mxu0 %v4257_v5 }
 0x4a5   :  { %4044 = vmatprep.subr.bf16.mxu0 %v4258_v8 }
 0x4a6   :  { %3636 = vmatpush1.bf16.msra.mxu1 %v4210_v30  ;;  %v4263_v30 = vld [vmem:[%s6001_s9 + $0x28] sm:$0xff]  }
 0x4a7   :  { %3637 = vmatprep.subr.bf16.mxu1 %v4215_v32 }
 0x4a8   :  { %4045 = vmatpush3.bf16.msra.mxu0 %v4259_v16 }
 0x4a9   :  { %4046 = vmatprep.subr.bf16.mxu0 %v4260_v26 }
 0x4aa   :  { %3638 = vmatpush1.bf16.msra.mxu1 %v4213_v31 }
 0x4ab   :  { %3639 = vmatprep.subr.bf16.mxu1 %v4218_v33 }
 0x4ac   :  { %4047 = vmatpush3.bf16.msra.mxu0 %v4261_v17 }
 0x4ad   :  { %4048 = vmatprep.subr.bf16.mxu0 %v4262_v60 }
 0x4ae   :  { %3640 = vmatpush1.bf16.msra.mxu1 %v4216_v35 }
 0x4af   :  { %3641 = vmatprep.subr.bf16.mxu1 %v4221_v37 }
 0x4b0   :  { %4049 = vmatpush3.bf16.msra.mxu0 %v4263_v30 }
 0x4b2   :  { %3642 = vmatpush1.bf16.msra.mxu1 %v4219_v36 }
 0x4b3   :  { %3643 = vmatprep.subr.bf16.mxu1 %v4224_v7 }
 0x4b6   :  { %3644 = vmatpush1.bf16.msra.mxu1 %v4222_v46 }
 0x4b7   :  { %3645 = vmatprep.subr.bf16.mxu1 %v4227_v45 }
 0x4ba   :  { %3646 = vmatpush1.bf16.msra.mxu1 %v4225_v38 }
 0x4bb   :  { %3647 = vmatprep.subr.bf16.mxu1 %v4230_v39 }
 0x4be   :  { %3648 = vmatpush1.bf16.msra.mxu1 %v4228_v40 }
 0x4bf   :  { %3649 = vmatprep.subr.bf16.mxu1 %v4233_v42 }
 0x4c2   :  { %3650 = vmatpush1.bf16.msra.mxu1 %v4231_v41 }
 0x4c3   :  { %3651 = vmatprep.subr.bf16.mxu1 %v4236_v43 }
 0x4c6   :  { %3652 = vmatpush1.bf16.msra.mxu1 %v4234_v19 }
 0x4c7   :  { %3653 = vmatprep.subr.bf16.mxu1 %v4239_v44 }
 0x4ca   :  { %3654 = vmatpush1.bf16.msra.mxu1 %v4237_v20 }
 0x4cb   :  { %3655 = vmatprep.subr.bf16.mxu1 %v4242_v47 }
 0x4ce   :  { %3656 = vmatpush1.bf16.msra.mxu1 %v4240_v48 }
 0x4cf   :  { %3657 = vmatprep.subr.bf16.mxu1 %v4245_v49 }
 0x4d2   :  { %3658 = vmatpush1.bf16.msra.mxu1 %v4243_v50 }
 0x4d3   :  { %3659 = vmatprep.subr.bf16.mxu1 %v4248_v51 }
 0x4d6   :  { %3660 = vmatpush1.bf16.msra.mxu1 %v4246_v52 }
 0x4d7   :  { %3661 = vmatprep.subr.bf16.mxu1 %v4251_v55 }
 0x4da   :  { %3662 = vmatpush1.bf16.msra.mxu1 %v4249_v54 }
 0x500   :  { %v2149_v59 = vpop.f32.mrb[4].mxu1 }
 0x501   :  { %v2151_v13 = vpop.f32.mrb[5].mxu1 }
 0x502   :  { %v2153_v0 = vpop.f32.mrb[6].mxu1  ;;  %v5920_v1 = vpop.f32.mrb[52].mxu0 }
 0x503   :  { %v2154_v63 = vpop.f32.mrb[7].mxu1  ;;  %v5922_v21 = vpop.f32.mrb[53].mxu0 }
 0x504   :  { %v2565_v2 = vpop.f32.mrb[54].mxu0 }
 0x505   :  { %v2566_v4 = vpop.f32.mrb[55].mxu0 }
 0x508   :  { %v2202_v6 = vpop.f32.mrb[8].mxu1 }
 0x509   :  { %v2203_v9 = vadd.f32 %v2202_v6, %v2149_v59  ;;  %v2204_v10 = vpop.f32.mrb[9].mxu1 }
 0x50a   :  { %v2205_v34 = vadd.f32 %v2204_v10, %v2151_v13  ;;  %v2206_v57 = vpop.f32.mrb[10].mxu1  ;;  %v2682_v11 = vpop.f32.mrb[56].mxu0 }
 0x50b   :  { %v2207_v12 = vpop.f32.mrb[11].mxu1  ;;  %v2684_v14 = vpop.f32.mrb[57].mxu0 }
 0x50c   :  { %v2686_v25 = vpop.f32.mrb[58].mxu0 }
 0x50d   :  { %v2687_v58 = vpop.f32.mrb[59].mxu0 }
 0x510   :  { %v2261_v61 = vpop.f32.mrb[12].mxu1 }
 0x511   :  { %v2268_v23 = vadd.f32 %v2261_v61, %v2203_v9  ;;  %v2263_v18 = vpop.f32.mrb[13].mxu1 }
 0x512   :  { %v2269_v24 = vadd.f32 %v2263_v18, %v2205_v34  ;;  %v2265_v27 = vpop.f32.mrb[14].mxu1  ;;  %v2803_v62 = vpop.f32.mrb[60].mxu0 }
 0x513   :  { %v2266_v28 = vpop.f32.mrb[15].mxu1  ;;  %v2805_v29 = vpop.f32.mrb[61].mxu0 }
 0x514   :  { %v2807_v31 = vpop.f32.mrb[62].mxu0 }
 0x515   :  { %v2808_v32 = vpop.f32.mrb[63].mxu0 }
 0x518   :  { %v2321_v33 = vpop.f32.mrb[16].mxu1 }
 0x519   :  { %v2328_v35 = vadd.f32 %v2321_v33, %v2268_v23  ;;  %v2323_v36 = vpop.f32.mrb[17].mxu1 }
 0x51a   :  { %v2329_v37 = vadd.f32 %v2323_v36, %v2269_v24  ;;  %v2325_v7 = vpop.f32.mrb[18].mxu1 }
 0x51b   :  { %v2326_v46 = vpop.f32.mrb[19].mxu1 }
 0x520   :  { %v2381_v38 = vpop.f32.mrb[20].mxu1 }
 0x521   :  { %v2388_v45 = vadd.f32 %v2381_v38, %v2328_v35  ;;  %v2383_v39 = vpop.f32.mrb[21].mxu1 }
 0x522   :  { %v2389_v40 = vadd.f32 %v2383_v39, %v2329_v37  ;;  %v2385_v41 = vpop.f32.mrb[22].mxu1 }
 0x523   :  { %v2386_v42 = vpop.f32.mrb[23].mxu1 }
 0x528   :  { %v2441_v43 = vpop.f32.mrb[24].mxu1 }
 0x529   :  { %v2448_v19 = vadd.f32 %v2441_v43, %v2388_v45  ;;  %v2443_v20 = vpop.f32.mrb[25].mxu1 }
 0x52a   :  { %v2449_v44 = vadd.f32 %v2443_v20, %v2389_v40  ;;  %v2445_v47 = vpop.f32.mrb[26].mxu1 }
 0x52b   :  { %v2446_v48 = vpop.f32.mrb[27].mxu1 }
 0x530   :  { %v2501_v49 = vpop.f32.mrb[28].mxu1 }
 0x531   :  { %v2508_v50 = vadd.f32 %v2501_v49, %v2448_v19  ;;  %v2503_v51 = vpop.f32.mrb[29].mxu1 }
 0x532   :  { %v2509_v52 = vadd.f32 %v2503_v51, %v2449_v44  ;;  %v2505_v54 = vpop.f32.mrb[30].mxu1 }
 0x533   :  { %v2506_v55 = vpop.f32.mrb[31].mxu1  ;;  %v2568_v59 = vadd.f32 %v5920_v1, %v2508_v50 }
 0x534   :  { %v2569_v15 = vadd.f32 %v5922_v21, %v2509_v52 }
 0x538   :  { %v2621_v53 = vpop.f32.mrb[32].mxu1 }
 0x539   :  { %v2628_v56 = vadd.f32 %v2621_v53, %v2568_v59  ;;  %v2623_v13 = vpop.f32.mrb[33].mxu1  ;;  %v2814_v59 = vlaneseq }
 0x53a   :  { %v2629_v0 = vadd.f32 %v2623_v13, %v2569_v15  ;;  %v2625_v63 = vpop.f32.mrb[34].mxu1 }
 0x53b   :  { %v2626_v22 = vpop.f32.mrb[35].mxu1  ;;  %v2689_v2 = vadd.f32 %v2682_v11, %v2628_v56 }
 0x53c   :  { %v2690_v3 = vadd.f32 %v2684_v14, %v2629_v0  ;;  %v2815_v0 = vshrl.u32 %v2814_v59, 7 }
 0x540   :  { %v2743_v4 = vpop.f32.mrb[36].mxu1 }
 0x541   :  { %v2750_v5 = vadd.f32 %v2743_v4, %v2689_v2  ;;  %v2745_v6 = vpop.f32.mrb[37].mxu1 }
 0x542   :  { %v2751_v8 = vadd.f32 %v2745_v6, %v2690_v3  ;;  %v2747_v9 = vpop.f32.mrb[38].mxu1 }
 0x543   :  { %v5953_v10 = vadd.f32 %v2803_v62, %v2750_v5  ;;  %v2748_v34 = vpop.f32.mrb[39].mxu1  ;;  %v2816_v9 = vsub.s32 0, %v2815_v0 }
 0x544   :  { %v5955_v57 = vadd.f32 %v2805_v29, %v2751_v8  ;;  %v2812_v34 = vld [vmem:[%s5998_s6] sm:$0x3] }
 0x546   :  { %v2932_v1 = vpop.f32.mrb[64].mxu0 }
 0x547   :  { %v2934_v21 = vpop.f32.mrb[65].mxu0 }
 0x548   :  { %v2889_v12 = vpop.f32.mrb[40].mxu1  ;;  %v2936_v16 = vpop.f32.mrb[66].mxu0 }
 0x549   :  { %v2933_v25 = vadd.f32 %v2932_v1, %v2889_v12  ;;  %v2891_v26 = vpop.f32.mrb[41].mxu1  ;;  %v2937_v58 = vpop.f32.mrb[67].mxu0  ;;  %v2820_v1 = vsub.s32 1, %v2815_v0 }
 0x54a   :  { %v2935_v17 = vadd.f32 %v2934_v21, %v2891_v26  ;;  %v2893_v11 = vpop.f32.mrb[42].mxu1  ;;  %v2817_v26 = vrot.slane %v2812_v34, %v2816_v9 }
 0x54b   :  { %v2894_v14 = vpop.f32.mrb[43].mxu1 }
 0x54c   :  { %v2821_v14 = vrot.slane %v2812_v34, %v2820_v1 }
 0x54e   :  { %v3025_v61 = vpop.f32.mrb[68].mxu0 }
 0x54f   :  { %v3027_v60 = vpop.f32.mrb[69].mxu0 }
 0x550   :  { %v2978_v23 = vpop.f32.mrb[44].mxu1  ;;  %v3029_v18 = vpop.f32.mrb[70].mxu0 }
 0x551   :  { %v2985_v24 = vadd.f32 %v2978_v23, %v2933_v25  ;;  %v2980_v27 = vpop.f32.mrb[45].mxu1  ;;  %v3030_v62 = vpop.f32.mrb[71].mxu0 }
 0x552   :  { %v2986_v28 = vadd.f32 %v2980_v27, %v2935_v17  ;;  %v2982_v29 = vpop.f32.mrb[46].mxu1  ;;  %v2824_v27 = vadd.f32 %v2817_v26, %v5953_v10  ;;  %v4264_v10 = vld [vmem:[%s6001_s9 + $0x70] sm:$0xff]  }
 0x553   :  { %v2983_v30 = vpop.f32.mrb[47].mxu1  ;;  %v3032_v31 = vadd.f32 %v3025_v61, %v2985_v24  ;;  %4050 = vmatprep.subr.bf16.mxu0 %v4264_v10 }
 0x554   :  { %v3033_v32 = vadd.f32 %v3027_v60, %v2986_v28  ;;  %v2825_v28 = vadd.f32 %v2821_v14, %v5955_v57  ;;  %v4265_v57 = vld [vmem:[%s6001_s9 + $0x30] sm:$0xff]  }
 0x555   :  { %4051 = vmatpush3.bf16.msra.mxu0 %v4265_v57 }
 0x556   :  { %v3119_v33 = vpop.f32.mrb[72].mxu0 }
 0x557   :  { %v3121_v35 = vpop.f32.mrb[73].mxu0 }
 0x558   :  { %v3072_v36 = vpop.f32.mrb[48].mxu1  ;;  %v3123_v37 = vpop.f32.mrb[74].mxu0 }
 0x559   :  { %v3079_v7 = vadd.f32 %v3072_v36, %v3032_v31  ;;  %v3074_v46 = vpop.f32.mrb[49].mxu1  ;;  %v3124_v38 = vpop.f32.mrb[75].mxu0 }
 0x55a   :  { %v3080_v45 = vadd.f32 %v3074_v46, %v3033_v32  ;;  %v3076_v39 = vpop.f32.mrb[50].mxu1  ;;  %v2826_v32 = vmax.f32 %v2824_v27, 0.0 }
 0x55b   :  { %v3077_v40 = vpop.f32.mrb[51].mxu1  ;;  %v3126_v41 = vadd.f32 %v3119_v33, %v3079_v7  ;;  %v4267_v39 = vld [vmem:[%s6001_s9 + $0x38] sm:$0xff]  }
 0x55c   :  { %v3127_v42 = vadd.f32 %v3121_v35, %v3080_v45  ;;  %v2827_v35 = vmax.f32 %v2825_v28, 0.0  ;;  %v4266_v45 = vld [vmem:[%s6001_s9 + $0x78] sm:$0xff]   ;;  %v3459_v40 = vld [vmem:[%s6000_s8] sm:$0x3]  ;;  %s4308_s8 = smov [#allocation5]  }
 0x55d   :  { %4052 = vmatprep.subr.bf16.mxu0 %v4266_v45  ;;  %s3859_s2 = sshll.u32 %s4308_s8, 4  ;;  %s3860_s2 = int_to_ptr.vmem [resolvable:$true] %s3859_s2 }
 0x55e   :  { %v3213_v43 = vpop.f32.mrb[76].mxu0  ;;  %4053 = vmatpush3.bf16.msra.mxu0 %v4267_v39  ;;  %s4269_s24 = scalar_lea.vmem %s3860_s2, 32  ;;  %p4274_p1 = scmp.lt.s32.totalorder %s3860_s2, %s3860_s2 }
 0x55f   :  { %v3215_v19 = vpop.f32.mrb[77].mxu0  ;;  %p4270_p0 = scmp.ne.s32.totalorder %s3860_s2, %s4269_s24  ;;  %p4275_p2 = scmp.lt.s32.totalorder %s4269_s24, %s4269_s24 }
 0x560   :  { %v3166_v20 = vpop.f32.mrb[52].mxu1  ;;  %v3217_v44 = vpop.f32.mrb[78].mxu0 }
 0x561   :  { %v3173_v47 = vadd.f32 %v3166_v20, %v3126_v41  ;;  %v3168_v48 = vpop.f32.mrb[53].mxu1  ;;  %v3218_v49 = vpop.f32.mrb[79].mxu0  ;;  %v3464_v41 = vrot.slane %v3459_v40, %v2816_v9  ;;  %p4276_p3 = por %p4275_p2, %p4274_p1 }
 0x562   :  { %v3174_v50 = vadd.f32 %v3168_v48, %v3127_v42  ;;  %v3170_v51 = vpop.f32.mrb[54].mxu1  ;;  %v3468_v42 = vrot.slane %v3459_v40, %v2820_v1 }
 0x563   :  { %v3171_v52 = vpop.f32.mrb[55].mxu1  ;;  %v3220_v54 = vadd.f32 %v3213_v43, %v3173_v47  ;;  %p4277_p4 = pnand %p4276_p3, %p4270_p0 }
 0x564   :  { %v3221_v55 = vadd.f32 %v3215_v19, %v3174_v50 }
 0x566   :  { %v3308_v15 = vpop.f32.mrb[80].mxu0 }
 0x567   :  { %v3310_v53 = vpop.f32.mrb[81].mxu0 }
 0x568   :  { %v3260_v56 = vpop.f32.mrb[56].mxu1  ;;  %v3312_v13 = vpop.f32.mrb[82].mxu0 }
 0x569   :  { %v3267_v63 = vadd.f32 %v3260_v56, %v3220_v54  ;;  %v3262_v22 = vpop.f32.mrb[57].mxu1  ;;  %v3313_v2 = vpop.f32.mrb[83].mxu0 }
 0x56a   :  { %v3268_v3 = vadd.f32 %v3262_v22, %v3221_v55  ;;  %v3264_v4 = vpop.f32.mrb[58].mxu1  ;;  %v3996_v55 = vld [vmem:[%s6002_s10] ss:$0 sm:$0xff] }
 0x56b   :  { %v3265_v5 = vpop.f32.mrb[59].mxu1  ;;  %v3315_v6 = vadd.f32 %v3308_v15, %v3267_v63 }
 0x56c   :  { %v3316_v8 = vadd.f32 %v3310_v53, %v3268_v3 }
 0x56e   :  { %v3403_v21 = vpop.f32.mrb[84].mxu0 }
 0x56f   :  { %v3405_v12 = vpop.f32.mrb[85].mxu0 }
 0x570   :  { %v3356_v16 = vpop.f32.mrb[60].mxu1  ;;  %v3407_v25 = vpop.f32.mrb[86].mxu0 }
 0x571   :  { %v3363_v58 = vadd.f32 %v3356_v16, %v3315_v6  ;;  %v3358_v17 = vpop.f32.mrb[61].mxu1  ;;  %v3408_v11 = vpop.f32.mrb[87].mxu0 }
 0x572   :  { %v3364_v61 = vadd.f32 %v3358_v17, %v3316_v8  ;;  %v3360_v60 = vpop.f32.mrb[62].mxu1 }
 0x573   :  { %v3410_v23 = vadd.f32 %v3403_v21, %v3363_v58  ;;  %v3361_v18 = vpop.f32.mrb[63].mxu1 }
 0x574   :  { %v3411_v24 = vadd.f32 %v3405_v12, %v3364_v61 }
 0x575   :  { %v3412_v62 = vadd.f32 %v3410_v23, %v2817_v26 }
 0x576   :  { %v3413_v29 = vadd.f32 %v3411_v24, %v2821_v14 }
 0x577   :  { %v3414_v30 = vmax.f32 %v3412_v62, 0.0 }
 0x578   :  { %v3415_v31 = vmax.f32 %v3413_v29, 0.0 }
 0x579   :  { %v3418_v33 = vrot.slane %v3414_v30, 7 }
 0x57a   :  { %v3419_v36 = vrot.slane %v3415_v31, 7 }
 0x57b   :  { %v3423_v37 = vsel %vm3422_vm13, %v2826_v32, %v3418_v33 }
 0x57c   :  { %v3424_v7 = vsel %vm3422_vm13, %v2827_v35, %v3419_v36  ;;  %v3425_v38 = vpack.c.bf16 %v3423_v37, %v3423_v37 }
 0x57d   :  { %v3426_v46 = vpack.c.bf16 %v3424_v7, %v3424_v7 }
 0x57f   :  { %3663 = vmatprep.mubr.bf16.mxu1 %v3426_v46 }
 0x580   :  { %3664 = vmatmul.mubr.bf16.vlgmr.msra.gmra.mrb[64].mxu1 %v3425_v38 }
 0x653   :  { %v3665_v43 = vpop.f32.mrb[64].mxu1 }
 0x654   :  { %v3666_v19 = vadd.f32 %v3665_v43, %v3464_v41  ;;  %v3667_v20 = vpop.f32.mrb[65].mxu1 }
 0x655   :  { %v3668_v44 = vadd.f32 %v3667_v20, %v3468_v42  ;;  %v3669_v47 = vpop.f32.mrb[66].mxu1 }
 0x656   :  { %v3672_v48 = vmax.f32 %v3666_v19, 0.0  ;;  %v3670_v49 = vpop.f32.mrb[67].mxu1 }
 0x657   :  { %v3673_v50 = vmax.f32 %v3668_v44, 0.0 }
 0x658   :  { %v3674_v52 = vpack.c.bf16 %v3672_v48, %v3672_v48 }
 0x659   :  { %v3675_v51 = vpack.c.bf16 %v3673_v50, %v3673_v50 }
 0x65b   :  { %3843 = vmatprep.mubr.bf16.mxu0 %v3675_v51 }
 0x65c   :  { %3844 = vmatmul.mubr.bf16.vlgmr.msra.gmra.mrb[88].mxu0 %v3674_v52 }
 0x72f   :  { %v4054_v54 = vpop.f32.mrb[88].mxu0 }
 0x730   :  { %v4055_v59 = vpop.f32.mrb[89].mxu0 }
 0x731   :  { %v4056_v15 = vadd.f32 %v4055_v59, %v4054_v54  ;;  %v4057_v53 = vpop.f32.mrb[90].mxu0 }
 0x732   :  { %v4058_v56 = vpop.f32.mrb[91].mxu0 }
 0x733   :  { %v3846_v13 = vadd.f32 %v4056_v15, %v3996_v55 }
 0x735   :  { %3852 = vst.msk [vmem:[#allocation5] sm:$0x3] %vm3851_vm0, %v3846_v13 }
 0x736   :  { %4280 = shalt.err (!%p4277_p4)
}
 0x737   :  { %s4281_s10 = scalar_lea.hbm %s6003_s11, 32 }
 0x738   :  { %p4282_p5 = scmp.ne.s32.totalorder %s6003_s11, %s4281_s10  ;;  %p4285_p6 = scmp.lt.u32.totalorder %s4281_s10, %s6003_s11 }
 0x73a   :  { %p4287_p7 = pnand %p4285_p6, %p4282_p5 }
 0x73c   :  { %4290 = shalt.err (!%p4287_p7)
}
 0x73d   :  { %3862 = dma.vmem_to_hbm [thread:$0]  %s3860_s2, 32, %s6003_s11, [#allocation6]  }
 0x73e   :  { %4291 = dma.done.wait [#allocation6], 32  }
 0x73f   :  { %4292 = vsyncadd [#allocation6], 4294967264 }
 0x740   :  { %3866 = vsyncpa [#allocation6], 1 }

</bundles_post_ra>
